<compile_context>
chip_gen: v7x
topology: tpu7x:2x2x1
jax: 0.10.0
libtpu: 0.0.40
codegen_flags: <defaults>
</compile_context>

<pallas_src>
import jax
import jax.numpy as jnp
from jax import lax
from jax.experimental import pallas as pl
from jax.experimental.pallas import tpu as pltpu


def conv_block_kernel(x_ref, w1_ref, b1_ref, w2_ref, b2_ref, s_ref, o_ref):
    """One image per grid step.

    x_ref : (1, C_in,  P)   bf16   flattened image (P = H*W)
    w1_ref: (9, C_out, C_in)  bf16   conv1 weights, one (C_out, C_in) slice per tap
    b1_ref: (C_out, 1)        f32
    w2_ref: (9, C_out, C_out) bf16   conv2 weights
    b2_ref: (C_out, 1)        f32
    s_ref : (9, P, P)         bf16   0/1 shift-and-mask selection matrices
    o_ref : (1, C_out, P)     f32
    """
    x = x_ref[0]  # (C_in, P) bf16

    def conv3x3_relu(inp_bf16, w_ref, b_ref):
        c_out = w_ref.shape[1]
        p = inp_bf16.shape[1]
        acc = jnp.zeros((c_out, p), jnp.float32)
        for t in range(9):  # static unroll over the 9 taps
            # Exact shifted-and-masked copy of the input (S_t is a 0/1 matrix).
            tap = jnp.dot(inp_bf16, s_ref[t],
                          preferred_element_type=jnp.float32).astype(jnp.bfloat16)
            # bf16 x bf16 matmul, f32 accumulation on the MXU.
            acc = acc + jnp.dot(w_ref[t], tap,
                                preferred_element_type=jnp.float32)
        return jnp.maximum(acc + b_ref[...], 0.0)  # bias + ReLU in f32

    h = conv3x3_relu(x, w1_ref, b1_ref).astype(jnp.bfloat16)  # (C_out, P)
    y = conv3x3_relu(h, w2_ref, b2_ref)                       # (C_out, P) f32
    o_ref[0] = y.astype(o_ref.dtype)


def _build_tap_matrices(H, W, dtype=jnp.bfloat16):
    """S[t, q, p] = 1 iff pixel q is the (dy,dx)-shifted source of output pixel p
    (t = ky*3 + kx, dy = ky-1, dx = kx-1) and the source lies inside the image."""
    P = H * W
    p = jnp.arange(P)
    y = p // W
    x = p % W
    q = jnp.arange(P)
    mats = []
    for ky in range(3):
        for kx in range(3):
            dy, dx = ky - 1, kx - 1
            src = p + dy * W + dx
            valid = (y + dy >= 0) & (y + dy < H) & (x + dx >= 0) & (x + dx < W)
            m = (q[:, None] == src[None, :]) & valid[None, :]
            mats.append(m.astype(dtype))
    return jnp.stack(mats, axis=0)  # (9, P, P)


def conv_block_forward(x, w1, b1, w2, b2):
    """x: (B, C_in, H, W) f32, weights in PyTorch Conv2d layout (O, I, 3, 3)."""
    B, C_in, H, W = x.shape
    C_out = w1.shape[0]
    P = H * W

    # Layout plumbing + bf16 quantization of matmul operands (f32 accumulation
    # happens inside the kernel).
    x2 = x.reshape(B, C_in, P).astype(jnp.bfloat16)
    w1k = jnp.transpose(w1, (2, 3, 0, 1)).reshape(9, C_out, C_in).astype(jnp.bfloat16)
    w2k = jnp.transpose(w2, (2, 3, 0, 1)).reshape(9, C_out, C_out).astype(jnp.bfloat16)
    b1c = b1.reshape(C_out, 1).astype(jnp.float32)
    b2c = b2.reshape(C_out, 1).astype(jnp.float32)
    smat = _build_tap_matrices(H, W, jnp.bfloat16)

    out2 = pl.pallas_call(
        conv_block_kernel,
        out_shape=jax.ShapeDtypeStruct((B, C_out, P), jnp.float32),
        grid_spec=pltpu.PrefetchScalarGridSpec(
            num_scalar_prefetch=0,
            grid=(B,),
            in_specs=[
                pl.BlockSpec((1, C_in, P), lambda b: (b, 0, 0)),       # image
                pl.BlockSpec((9, C_out, C_in), lambda b: (0, 0, 0)),   # W1 (resident)
                pl.BlockSpec((C_out, 1), lambda b: (0, 0)),            # b1
                pl.BlockSpec((9, C_out, C_out), lambda b: (0, 0, 0)),  # W2 (resident)
                pl.BlockSpec((C_out, 1), lambda b: (0, 0)),            # b2
                pl.BlockSpec((9, P, P), lambda b: (0, 0, 0)),          # tap matrices
            ],
            out_specs=pl.BlockSpec((1, C_out, P), lambda b: (b, 0, 0)),
        ),
        compiler_params=pltpu.CompilerParams(
            dimension_semantics=("parallel",),
            vmem_limit_bytes=32 * 1024 * 1024,
        ),
    )(x2, w1k, b1c, w2k, b2c, smat)

    return out2.reshape(B, C_out, H, W)


def conv_block_reference(x, w1, b1, w2, b2):
    """Pure-JAX reference: Conv2d(3x3, pad=1) + ReLU, twice (NCHW / OIHW)."""
    dn = ("NCHW", "OIHW", "NCHW")
    h = lax.conv_general_dilated(x, w1, (1, 1), ((1, 1), (1, 1)), dimension_numbers=dn)
    h = jnp.maximum(h + b1.reshape(1, -1, 1, 1), 0.0)
    y = lax.conv_general_dilated(h, w2, (1, 1), ((1, 1), (1, 1)), dimension_numbers=dn)
    return jnp.maximum(y + b2.reshape(1, -1, 1, 1), 0.0)


if __name__ == "__main__":
    # Module config: conv_block(in_ch=4, out_ch=8) on a 2x4x16x16 input.
    B, C_in, C_out, H, W = 2, 4, 8, 16, 16

    key = jax.random.PRNGKey(0)
    kx, k1, k2, k3, k4 = jax.random.split(key, 5)

    x = jax.random.normal(kx, (B, C_in, H, W), dtype=jnp.float32)
    w1 = jax.random.normal(k1, (C_out, C_in, 3, 3), jnp.float32) * (1.0 / jnp.sqrt(C_in * 9))
    b1 = jax.random.normal(k2, (C_out,), jnp.float32) * 0.01
    w2 = jax.random.normal(k3, (C_out, C_out, 3, 3), jnp.float32) * (1.0 / jnp.sqrt(C_out * 9))
    b2 = jax.random.normal(k4, (C_out,), jnp.float32) * 0.01

    out = conv_block_forward(x, w1, b1, w2, b2)
    out = jax.block_until_ready(out)

    # Reference uses the same bf16-quantized operands (the kernel feeds bf16 to
    # the MXU with f32 accumulation); remaining delta is the bf16 intermediate.
    q = lambda a: a.astype(jnp.bfloat16).astype(jnp.float32)
    ref = conv_block_reference(q(x), q(w1), b1, q(w2), b2)

    assert out.shape == (B, C_out, H, W)
    assert jnp.allclose(out, ref, atol=2e-2, rtol=2e-2), "mismatch vs reference"

    print("KERNEL_OK")
</pallas_src>

<mosaic_0001>
module attributes {stable_mosaic.version = 11 : i64} {
  func.func @conv_block_kernel(%arg0: i32, %arg1: memref<1x4x256xbf16, #tpu.memory_space<vmem>>, %arg2: memref<9x8x4xbf16, #tpu.memory_space<vmem>>, %arg3: memref<8x1xf32, #tpu.memory_space<vmem>>, %arg4: memref<9x8x8xbf16, #tpu.memory_space<vmem>>, %arg5: memref<8x1xf32, #tpu.memory_space<vmem>>, %arg6: memref<9x256x256xbf16, #tpu.memory_space<vmem>>, %arg7: memref<1x8x256xf32, #tpu.memory_space<vmem>>) attributes {dimension_semantics = [#tpu.dimension_semantics<parallel>], iteration_bounds = array<i64: 2>, scalar_prefetch = 0 : i64, scratch_operands = 0 : i64, tpu.core_type = #tpu.core_type<tc>, window_params = [{transform_indices = @transform_0, window_bounds = array<i64: 1, 4, 256>}, {pipeline_mode = #tpu.pipeline_mode<synchronous>, transform_indices = @transform_1, window_bounds = array<i64: 9, 8, 4>}, {pipeline_mode = #tpu.pipeline_mode<synchronous>, transform_indices = @transform_2, window_bounds = array<i64: 8, 1>}, {pipeline_mode = #tpu.pipeline_mode<synchronous>, transform_indices = @transform_3, window_bounds = array<i64: 9, 8, 8>}, {pipeline_mode = #tpu.pipeline_mode<synchronous>, transform_indices = @transform_4, window_bounds = array<i64: 8, 1>}, {pipeline_mode = #tpu.pipeline_mode<synchronous>, transform_indices = @transform_5, window_bounds = array<i64: 9, 256, 256>}, {transform_indices = @transform_6, window_bounds = array<i64: 1, 8, 256>}]} {
    %c0 = arith.constant 0 : index
    %c0_0 = arith.constant 0 : index
    %c0_1 = arith.constant 0 : index
    %0 = vector.load %arg1[%c0, %c0_0, %c0_1] : memref<1x4x256xbf16, #tpu.memory_space<vmem>>, vector<1x4x256xbf16>
    %1 = vector.shape_cast %0 : vector<1x4x256xbf16> to vector<4x256xbf16>
    %cst = arith.constant 0.000000e+00 : f32
    %2 = vector.broadcast %cst : f32 to vector<8x256xf32>
    %c0_2 = arith.constant 0 : index
    %c0_3 = arith.constant 0 : index
    %c0_4 = arith.constant 0 : index
    %3 = vector.load %arg6[%c0_2, %c0_3, %c0_4] : memref<9x256x256xbf16, #tpu.memory_space<vmem>>, vector<1x256x256xbf16>
    %4 = vector.shape_cast %3 : vector<1x256x256xbf16> to vector<256x256xbf16>
    %cst_5 = arith.constant dense<0.000000e+00> : vector<4x256xf32>
    %5 = tpu.matmul %1, %4, %cst_5 {dimension_numbers = #tpu.dot_dimension_numbers<[1], [0], [0], [1], [0, 0, 1, 1], [], []>} : vector<4x256xbf16>, vector<256x256xbf16>, vector<4x256xf32> -> vector<4x256xf32>
    %6 = arith.truncf %5 : vector<4x256xf32> to vector<4x256xbf16>
    %c0_6 = arith.constant 0 : index
    %c0_7 = arith.constant 0 : index
    %c0_8 = arith.constant 0 : index
    %7 = vector.load %arg2[%c0_6, %c0_7, %c0_8] : memref<9x8x4xbf16, #tpu.memory_space<vmem>>, vector<1x8x4xbf16>
    %8 = vector.shape_cast %7 : vector<1x8x4xbf16> to vector<8x4xbf16>
    %cst_9 = arith.constant dense<0.000000e+00> : vector<8x256xf32>
    %9 = tpu.matmul %8, %6, %cst_9 {dimension_numbers = #tpu.dot_dimension_numbers<[1], [0], [0], [1], [0, 0, 1, 1], [], []>} : vector<8x4xbf16>, vector<4x256xbf16>, vector<8x256xf32> -> vector<8x256xf32>
    %10 = arith.addf %2, %9 : vector<8x256xf32>
    %c1 = arith.constant 1 : index
    %c0_10 = arith.constant 0 : index
    %c0_11 = arith.constant 0 : index
    %11 = vector.load %arg6[%c1, %c0_10, %c0_11] : memref<9x256x256xbf16, #tpu.memory_space<vmem>>, vector<1x256x256xbf16>
    %12 = vector.shape_cast %11 : vector<1x256x256xbf16> to vector<256x256xbf16>
    %cst_12 = arith.constant dense<0.000000e+00> : vector<4x256xf32>
    %13 = tpu.matmul %1, %12, %cst_12 {dimension_numbers = #tpu.dot_dimension_numbers<[1], [0], [0], [1], [0, 0, 1, 1], [], []>} : vector<4x256xbf16>, vector<256x256xbf16>, vector<4x256xf32> -> vector<4x256xf32>
    %14 = arith.truncf %13 : vector<4x256xf32> to vector<4x256xbf16>
    %c1_13 = arith.constant 1 : index
    %c0_14 = arith.constant 0 : index
    %c0_15 = arith.constant 0 : index
    %15 = vector.load %arg2[%c1_13, %c0_14, %c0_15] : memref<9x8x4xbf16, #tpu.memory_space<vmem>>, vector<1x8x4xbf16>
    %16 = vector.shape_cast %15 : vector<1x8x4xbf16> to vector<8x4xbf16>
    %cst_16 = arith.constant dense<0.000000e+00> : vector<8x256xf32>
    %17 = tpu.matmul %16, %14, %cst_16 {dimension_numbers = #tpu.dot_dimension_numbers<[1], [0], [0], [1], [0, 0, 1, 1], [], []>} : vector<8x4xbf16>, vector<4x256xbf16>, vector<8x256xf32> -> vector<8x256xf32>
    %18 = arith.addf %10, %17 : vector<8x256xf32>
    %c2 = arith.constant 2 : index
    %c0_17 = arith.constant 0 : index
    %c0_18 = arith.constant 0 : index
    %19 = vector.load %arg6[%c2, %c0_17, %c0_18] : memref<9x256x256xbf16, #tpu.memory_space<vmem>>, vector<1x256x256xbf16>
    %20 = vector.shape_cast %19 : vector<1x256x256xbf16> to vector<256x256xbf16>
    %cst_19 = arith.constant dense<0.000000e+00> : vector<4x256xf32>
    %21 = tpu.matmul %1, %20, %cst_19 {dimension_numbers = #tpu.dot_dimension_numbers<[1], [0], [0], [1], [0, 0, 1, 1], [], []>} : vector<4x256xbf16>, vector<256x256xbf16>, vector<4x256xf32> -> vector<4x256xf32>
    %22 = arith.truncf %21 : vector<4x256xf32> to vector<4x256xbf16>
    %c2_20 = arith.constant 2 : index
    %c0_21 = arith.constant 0 : index
    %c0_22 = arith.constant 0 : index
    %23 = vector.load %arg2[%c2_20, %c0_21, %c0_22] : memref<9x8x4xbf16, #tpu.memory_space<vmem>>, vector<1x8x4xbf16>
    %24 = vector.shape_cast %23 : vector<1x8x4xbf16> to vector<8x4xbf16>
    %cst_23 = arith.constant dense<0.000000e+00> : vector<8x256xf32>
    %25 = tpu.matmul %24, %22, %cst_23 {dimension_numbers = #tpu.dot_dimension_numbers<[1], [0], [0], [1], [0, 0, 1, 1], [], []>} : vector<8x4xbf16>, vector<4x256xbf16>, vector<8x256xf32> -> vector<8x256xf32>
    %26 = arith.addf %18, %25 : vector<8x256xf32>
    %c3 = arith.constant 3 : index
    %c0_24 = arith.constant 0 : index
    %c0_25 = arith.constant 0 : index
    %27 = vector.load %arg6[%c3, %c0_24, %c0_25] : memref<9x256x256xbf16, #tpu.memory_space<vmem>>, vector<1x256x256xbf16>
    %28 = vector.shape_cast %27 : vector<1x256x256xbf16> to vector<256x256xbf16>
    %cst_26 = arith.constant dense<0.000000e+00> : vector<4x256xf32>
    %29 = tpu.matmul %1, %28, %cst_26 {dimension_numbers = #tpu.dot_dimension_numbers<[1], [0], [0], [1], [0, 0, 1, 1], [], []>} : vector<4x256xbf16>, vector<256x256xbf16>, vector<4x256xf32> -> vector<4x256xf32>
    %30 = arith.truncf %29 : vector<4x256xf32> to vector<4x256xbf16>
    %c3_27 = arith.constant 3 : index
    %c0_28 = arith.constant 0 : index
    %c0_29 = arith.constant 0 : index
    %31 = vector.load %arg2[%c3_27, %c0_28, %c0_29] : memref<9x8x4xbf16, #tpu.memory_space<vmem>>, vector<1x8x4xbf16>
    %32 = vector.shape_cast %31 : vector<1x8x4xbf16> to vector<8x4xbf16>
    %cst_30 = arith.constant dense<0.000000e+00> : vector<8x256xf32>
    %33 = tpu.matmul %32, %30, %cst_30 {dimension_numbers = #tpu.dot_dimension_numbers<[1], [0], [0], [1], [0, 0, 1, 1], [], []>} : vector<8x4xbf16>, vector<4x256xbf16>, vector<8x256xf32> -> vector<8x256xf32>
    %34 = arith.addf %26, %33 : vector<8x256xf32>
    %c4 = arith.constant 4 : index
    %c0_31 = arith.constant 0 : index
    %c0_32 = arith.constant 0 : index
    %35 = vector.load %arg6[%c4, %c0_31, %c0_32] : memref<9x256x256xbf16, #tpu.memory_space<vmem>>, vector<1x256x256xbf16>
    %36 = vector.shape_cast %35 : vector<1x256x256xbf16> to vector<256x256xbf16>
    %cst_33 = arith.constant dense<0.000000e+00> : vector<4x256xf32>
    %37 = tpu.matmul %1, %36, %cst_33 {dimension_numbers = #tpu.dot_dimension_numbers<[1], [0], [0], [1], [0, 0, 1, 1], [], []>} : vector<4x256xbf16>, vector<256x256xbf16>, vector<4x256xf32> -> vector<4x256xf32>
    %38 = arith.truncf %37 : vector<4x256xf32> to vector<4x256xbf16>
    %c4_34 = arith.constant 4 : index
    %c0_35 = arith.constant 0 : index
    %c0_36 = arith.constant 0 : index
    %39 = vector.load %arg2[%c4_34, %c0_35, %c0_36] : memref<9x8x4xbf16, #tpu.memory_space<vmem>>, vector<1x8x4xbf16>
    %40 = vector.shape_cast %39 : vector<1x8x4xbf16> to vector<8x4xbf16>
    %cst_37 = arith.constant dense<0.000000e+00> : vector<8x256xf32>
    %41 = tpu.matmul %40, %38, %cst_37 {dimension_numbers = #tpu.dot_dimension_numbers<[1], [0], [0], [1], [0, 0, 1, 1], [], []>} : vector<8x4xbf16>, vector<4x256xbf16>, vector<8x256xf32> -> vector<8x256xf32>
    %42 = arith.addf %34, %41 : vector<8x256xf32>
    %c5 = arith.constant 5 : index
    %c0_38 = arith.constant 0 : index
    %c0_39 = arith.constant 0 : index
    %43 = vector.load %arg6[%c5, %c0_38, %c0_39] : memref<9x256x256xbf16, #tpu.memory_space<vmem>>, vector<1x256x256xbf16>
    %44 = vector.shape_cast %43 : vector<1x256x256xbf16> to vector<256x256xbf16>
    %cst_40 = arith.constant dense<0.000000e+00> : vector<4x256xf32>
    %45 = tpu.matmul %1, %44, %cst_40 {dimension_numbers = #tpu.dot_dimension_numbers<[1], [0], [0], [1], [0, 0, 1, 1], [], []>} : vector<4x256xbf16>, vector<256x256xbf16>, vector<4x256xf32> -> vector<4x256xf32>
    %46 = arith.truncf %45 : vector<4x256xf32> to vector<4x256xbf16>
    %c5_41 = arith.constant 5 : index
    %c0_42 = arith.constant 0 : index
    %c0_43 = arith.constant 0 : index
    %47 = vector.load %arg2[%c5_41, %c0_42, %c0_43] : memref<9x8x4xbf16, #tpu.memory_space<vmem>>, vector<1x8x4xbf16>
    %48 = vector.shape_cast %47 : vector<1x8x4xbf16> to vector<8x4xbf16>
    %cst_44 = arith.constant dense<0.000000e+00> : vector<8x256xf32>
    %49 = tpu.matmul %48, %46, %cst_44 {dimension_numbers = #tpu.dot_dimension_numbers<[1], [0], [0], [1], [0, 0, 1, 1], [], []>} : vector<8x4xbf16>, vector<4x256xbf16>, vector<8x256xf32> -> vector<8x256xf32>
    %50 = arith.addf %42, %49 : vector<8x256xf32>
    %c6 = arith.constant 6 : index
    %c0_45 = arith.constant 0 : index
    %c0_46 = arith.constant 0 : index
    %51 = vector.load %arg6[%c6, %c0_45, %c0_46] : memref<9x256x256xbf16, #tpu.memory_space<vmem>>, vector<1x256x256xbf16>
    %52 = vector.shape_cast %51 : vector<1x256x256xbf16> to vector<256x256xbf16>
    %cst_47 = arith.constant dense<0.000000e+00> : vector<4x256xf32>
    %53 = tpu.matmul %1, %52, %cst_47 {dimension_numbers = #tpu.dot_dimension_numbers<[1], [0], [0], [1], [0, 0, 1, 1], [], []>} : vector<4x256xbf16>, vector<256x256xbf16>, vector<4x256xf32> -> vector<4x256xf32>
    %54 = arith.truncf %53 : vector<4x256xf32> to vector<4x256xbf16>
    %c6_48 = arith.constant 6 : index
    %c0_49 = arith.constant 0 : index
    %c0_50 = arith.constant 0 : index
    %55 = vector.load %arg2[%c6_48, %c0_49, %c0_50] : memref<9x8x4xbf16, #tpu.memory_space<vmem>>, vector<1x8x4xbf16>
    %56 = vector.shape_cast %55 : vector<1x8x4xbf16> to vector<8x4xbf16>
    %cst_51 = arith.constant dense<0.000000e+00> : vector<8x256xf32>
    %57 = tpu.matmul %56, %54, %cst_51 {dimension_numbers = #tpu.dot_dimension_numbers<[1], [0], [0], [1], [0, 0, 1, 1], [], []>} : vector<8x4xbf16>, vector<4x256xbf16>, vector<8x256xf32> -> vector<8x256xf32>
    %58 = arith.addf %50, %57 : vector<8x256xf32>
    %c7 = arith.constant 7 : index
    %c0_52 = arith.constant 0 : index
    %c0_53 = arith.constant 0 : index
    %59 = vector.load %arg6[%c7, %c0_52, %c0_53] : memref<9x256x256xbf16, #tpu.memory_space<vmem>>, vector<1x256x256xbf16>
    %60 = vector.shape_cast %59 : vector<1x256x256xbf16> to vector<256x256xbf16>
    %cst_54 = arith.constant dense<0.000000e+00> : vector<4x256xf32>
    %61 = tpu.matmul %1, %60, %cst_54 {dimension_numbers = #tpu.dot_dimension_numbers<[1], [0], [0], [1], [0, 0, 1, 1], [], []>} : vector<4x256xbf16>, vector<256x256xbf16>, vector<4x256xf32> -> vector<4x256xf32>
    %62 = arith.truncf %61 : vector<4x256xf32> to vector<4x256xbf16>
    %c7_55 = arith.constant 7 : index
    %c0_56 = arith.constant 0 : index
    %c0_57 = arith.constant 0 : index
    %63 = vector.load %arg2[%c7_55, %c0_56, %c0_57] : memref<9x8x4xbf16, #tpu.memory_space<vmem>>, vector<1x8x4xbf16>
    %64 = vector.shape_cast %63 : vector<1x8x4xbf16> to vector<8x4xbf16>
    %cst_58 = arith.constant dense<0.000000e+00> : vector<8x256xf32>
    %65 = tpu.matmul %64, %62, %cst_58 {dimension_numbers = #tpu.dot_dimension_numbers<[1], [0], [0], [1], [0, 0, 1, 1], [], []>} : vector<8x4xbf16>, vector<4x256xbf16>, vector<8x256xf32> -> vector<8x256xf32>
    %66 = arith.addf %58, %65 : vector<8x256xf32>
    %c8 = arith.constant 8 : index
    %c0_59 = arith.constant 0 : index
    %c0_60 = arith.constant 0 : index
    %67 = vector.load %arg6[%c8, %c0_59, %c0_60] : memref<9x256x256xbf16, #tpu.memory_space<vmem>>, vector<1x256x256xbf16>
    %68 = vector.shape_cast %67 : vector<1x256x256xbf16> to vector<256x256xbf16>
    %cst_61 = arith.constant dense<0.000000e+00> : vector<4x256xf32>
    %69 = tpu.matmul %1, %68, %cst_61 {dimension_numbers = #tpu.dot_dimension_numbers<[1], [0], [0], [1], [0, 0, 1, 1], [], []>} : vector<4x256xbf16>, vector<256x256xbf16>, vector<4x256xf32> -> vector<4x256xf32>
    %70 = arith.truncf %69 : vector<4x256xf32> to vector<4x256xbf16>
    %c8_62 = arith.constant 8 : index
    %c0_63 = arith.constant 0 : index
    %c0_64 = arith.constant 0 : index
    %71 = vector.load %arg2[%c8_62, %c0_63, %c0_64] : memref<9x8x4xbf16, #tpu.memory_space<vmem>>, vector<1x8x4xbf16>
    %72 = vector.shape_cast %71 : vector<1x8x4xbf16> to vector<8x4xbf16>
    %cst_65 = arith.constant dense<0.000000e+00> : vector<8x256xf32>
    %73 = tpu.matmul %72, %70, %cst_65 {dimension_numbers = #tpu.dot_dimension_numbers<[1], [0], [0], [1], [0, 0, 1, 1], [], []>} : vector<8x4xbf16>, vector<4x256xbf16>, vector<8x256xf32> -> vector<8x256xf32>
    %74 = arith.addf %66, %73 : vector<8x256xf32>
    %c0_66 = arith.constant 0 : index
    %c0_67 = arith.constant 0 : index
    %75 = vector.load %arg3[%c0_66, %c0_67] : memref<8x1xf32, #tpu.memory_space<vmem>>, vector<8x1xf32>
    %76 = vector.broadcast %75 : vector<8x1xf32> to vector<8x256xf32>
    %77 = arith.addf %74, %76 : vector<8x256xf32>
    %cst_68 = arith.constant 0.000000e+00 : f32
    %78 = vector.broadcast %cst_68 : f32 to vector<8x256xf32>
    %79 = arith.maximumf %77, %78 : vector<8x256xf32>
    %80 = arith.truncf %79 : vector<8x256xf32> to vector<8x256xbf16>
    %cst_69 = arith.constant 0.000000e+00 : f32
    %81 = vector.broadcast %cst_69 : f32 to vector<8x256xf32>
    %c0_70 = arith.constant 0 : index
    %c0_71 = arith.constant 0 : index
    %c0_72 = arith.constant 0 : index
    %82 = vector.load %arg6[%c0_70, %c0_71, %c0_72] : memref<9x256x256xbf16, #tpu.memory_space<vmem>>, vector<1x256x256xbf16>
    %83 = vector.shape_cast %82 : vector<1x256x256xbf16> to vector<256x256xbf16>
    %cst_73 = arith.constant dense<0.000000e+00> : vector<8x256xf32>
    %84 = tpu.matmul %80, %83, %cst_73 {dimension_numbers = #tpu.dot_dimension_numbers<[1], [0], [0], [1], [0, 0, 1, 1], [], []>} : vector<8x256xbf16>, vector<256x256xbf16>, vector<8x256xf32> -> vector<8x256xf32>
    %85 = arith.truncf %84 : vector<8x256xf32> to vector<8x256xbf16>
    %c0_74 = arith.constant 0 : index
    %c0_75 = arith.constant 0 : index
    %c0_76 = arith.constant 0 : index
    %86 = vector.load %arg4[%c0_74, %c0_75, %c0_76] : memref<9x8x8xbf16, #tpu.memory_space<vmem>>, vector<1x8x8xbf16>
    %87 = vector.shape_cast %86 : vector<1x8x8xbf16> to vector<8x8xbf16>
    %cst_77 = arith.constant dense<0.000000e+00> : vector<8x256xf32>
    %88 = tpu.matmul %87, %85, %cst_77 {dimension_numbers = #tpu.dot_dimension_numbers<[1], [0], [0], [1], [0, 0, 1, 1], [], []>} : vector<8x8xbf16>, vector<8x256xbf16>, vector<8x256xf32> -> vector<8x256xf32>
    %89 = arith.addf %81, %88 : vector<8x256xf32>
    %c1_78 = arith.constant 1 : index
    %c0_79 = arith.constant 0 : index
    %c0_80 = arith.constant 0 : index
    %90 = vector.load %arg6[%c1_78, %c0_79, %c0_80] : memref<9x256x256xbf16, #tpu.memory_space<vmem>>, vector<1x256x256xbf16>
    %91 = vector.shape_cast %90 : vector<1x256x256xbf16> to vector<256x256xbf16>
    %cst_81 = arith.constant dense<0.000000e+00> : vector<8x256xf32>
    %92 = tpu.matmul %80, %91, %cst_81 {dimension_numbers = #tpu.dot_dimension_numbers<[1], [0], [0], [1], [0, 0, 1, 1], [], []>} : vector<8x256xbf16>, vector<256x256xbf16>, vector<8x256xf32> -> vector<8x256xf32>
    %93 = arith.truncf %92 : vector<8x256xf32> to vector<8x256xbf16>
    %c1_82 = arith.constant 1 : index
    %c0_83 = arith.constant 0 : index
    %c0_84 = arith.constant 0 : index
    %94 = vector.load %arg4[%c1_82, %c0_83, %c0_84] : memref<9x8x8xbf16, #tpu.memory_space<vmem>>, vector<1x8x8xbf16>
    %95 = vector.shape_cast %94 : vector<1x8x8xbf16> to vector<8x8xbf16>
    %cst_85 = arith.constant dense<0.000000e+00> : vector<8x256xf32>
    %96 = tpu.matmul %95, %93, %cst_85 {dimension_numbers = #tpu.dot_dimension_numbers<[1], [0], [0], [1], [0, 0, 1, 1], [], []>} : vector<8x8xbf16>, vector<8x256xbf16>, vector<8x256xf32> -> vector<8x256xf32>
    %97 = arith.addf %89, %96 : vector<8x256xf32>
    %c2_86 = arith.constant 2 : index
    %c0_87 = arith.constant 0 : index
    %c0_88 = arith.constant 0 : index
    %98 = vector.load %arg6[%c2_86, %c0_87, %c0_88] : memref<9x256x256xbf16, #tpu.memory_space<vmem>>, vector<1x256x256xbf16>
    %99 = vector.shape_cast %98 : vector<1x256x256xbf16> to vector<256x256xbf16>
    %cst_89 = arith.constant dense<0.000000e+00> : vector<8x256xf32>
    %100 = tpu.matmul %80, %99, %cst_89 {dimension_numbers = #tpu.dot_dimension_numbers<[1], [0], [0], [1], [0, 0, 1, 1], [], []>} : vector<8x256xbf16>, vector<256x256xbf16>, vector<8x256xf32> -> vector<8x256xf32>
    %101 = arith.truncf %100 : vector<8x256xf32> to vector<8x256xbf16>
    %c2_90 = arith.constant 2 : index
    %c0_91 = arith.constant 0 : index
    %c0_92 = arith.constant 0 : index
    %102 = vector.load %arg4[%c2_90, %c0_91, %c0_92] : memref<9x8x8xbf16, #tpu.memory_space<vmem>>, vector<1x8x8xbf16>
    %103 = vector.shape_cast %102 : vector<1x8x8xbf16> to vector<8x8xbf16>
    %cst_93 = arith.constant dense<0.000000e+00> : vector<8x256xf32>
    %104 = tpu.matmul %103, %101, %cst_93 {dimension_numbers = #tpu.dot_dimension_numbers<[1], [0], [0], [1], [0, 0, 1, 1], [], []>} : vector<8x8xbf16>, vector<8x256xbf16>, vector<8x256xf32> -> vector<8x256xf32>
    %105 = arith.addf %97, %104 : vector<8x256xf32>
    %c3_94 = arith.constant 3 : index
    %c0_95 = arith.constant 0 : index
    %c0_96 = arith.constant 0 : index
    %106 = vector.load %arg6[%c3_94, %c0_95, %c0_96] : memref<9x256x256xbf16, #tpu.memory_space<vmem>>, vector<1x256x256xbf16>
    %107 = vector.shape_cast %106 : vector<1x256x256xbf16> to vector<256x256xbf16>
    %cst_97 = arith.constant dense<0.000000e+00> : vector<8x256xf32>
    %108 = tpu.matmul %80, %107, %cst_97 {dimension_numbers = #tpu.dot_dimension_numbers<[1], [0], [0], [1], [0, 0, 1, 1], [], []>} : vector<8x256xbf16>, vector<256x256xbf16>, vector<8x256xf32> -> vector<8x256xf32>
    %109 = arith.truncf %108 : vector<8x256xf32> to vector<8x256xbf16>
    %c3_98 = arith.constant 3 : index
    %c0_99 = arith.constant 0 : index
    %c0_100 = arith.constant 0 : index
    %110 = vector.load %arg4[%c3_98, %c0_99, %c0_100] : memref<9x8x8xbf16, #tpu.memory_space<vmem>>, vector<1x8x8xbf16>
    %111 = vector.shape_cast %110 : vector<1x8x8xbf16> to vector<8x8xbf16>
    %cst_101 = arith.constant dense<0.000000e+00> : vector<8x256xf32>
    %112 = tpu.matmul %111, %109, %cst_101 {dimension_numbers = #tpu.dot_dimension_numbers<[1], [0], [0], [1], [0, 0, 1, 1], [], []>} : vector<8x8xbf16>, vector<8x256xbf16>, vector<8x256xf32> -> vector<8x256xf32>
    %113 = arith.addf %105, %112 : vector<8x256xf32>
    %c4_102 = arith.constant 4 : index
    %c0_103 = arith.constant 0 : index
    %c0_104 = arith.constant 0 : index
    %114 = vector.load %arg6[%c4_102, %c0_103, %c0_104] : memref<9x256x256xbf16, #tpu.memory_space<vmem>>, vector<1x256x256xbf16>
    %115 = vector.shape_cast %114 : vector<1x256x256xbf16> to vector<256x256xbf16>
    %cst_105 = arith.constant dense<0.000000e+00> : vector<8x256xf32>
    %116 = tpu.matmul %80, %115, %cst_105 {dimension_numbers = #tpu.dot_dimension_numbers<[1], [0], [0], [1], [0, 0, 1, 1], [], []>} : vector<8x256xbf16>, vector<256x256xbf16>, vector<8x256xf32> -> vector<8x256xf32>
    %117 = arith.truncf %116 : vector<8x256xf32> to vector<8x256xbf16>
    %c4_106 = arith.constant 4 : index
    %c0_107 = arith.constant 0 : index
    %c0_108 = arith.constant 0 : index
    %118 = vector.load %arg4[%c4_106, %c0_107, %c0_108] : memref<9x8x8xbf16, #tpu.memory_space<vmem>>, vector<1x8x8xbf16>
    %119 = vector.shape_cast %118 : vector<1x8x8xbf16> to vector<8x8xbf16>
    %cst_109 = arith.constant dense<0.000000e+00> : vector<8x256xf32>
    %120 = tpu.matmul %119, %117, %cst_109 {dimension_numbers = #tpu.dot_dimension_numbers<[1], [0], [0], [1], [0, 0, 1, 1], [], []>} : vector<8x8xbf16>, vector<8x256xbf16>, vector<8x256xf32> -> vector<8x256xf32>
    %121 = arith.addf %113, %120 : vector<8x256xf32>
    %c5_110 = arith.constant 5 : index
    %c0_111 = arith.constant 0 : index
    %c0_112 = arith.constant 0 : index
    %122 = vector.load %arg6[%c5_110, %c0_111, %c0_112] : memref<9x256x256xbf16, #tpu.memory_space<vmem>>, vector<1x256x256xbf16>
    %123 = vector.shape_cast %122 : vector<1x256x256xbf16> to vector<256x256xbf16>
    %cst_113 = arith.constant dense<0.000000e+00> : vector<8x256xf32>
    %124 = tpu.matmul %80, %123, %cst_113 {dimension_numbers = #tpu.dot_dimension_numbers<[1], [0], [0], [1], [0, 0, 1, 1], [], []>} : vector<8x256xbf16>, vector<256x256xbf16>, vector<8x256xf32> -> vector<8x256xf32>
    %125 = arith.truncf %124 : vector<8x256xf32> to vector<8x256xbf16>
    %c5_114 = arith.constant 5 : index
    %c0_115 = arith.constant 0 : index
    %c0_116 = arith.constant 0 : index
    %126 = vector.load %arg4[%c5_114, %c0_115, %c0_116] : memref<9x8x8xbf16, #tpu.memory_space<vmem>>, vector<1x8x8xbf16>
    %127 = vector.shape_cast %126 : vector<1x8x8xbf16> to vector<8x8xbf16>
    %cst_117 = arith.constant dense<0.000000e+00> : vector<8x256xf32>
    %128 = tpu.matmul %127, %125, %cst_117 {dimension_numbers = #tpu.dot_dimension_numbers<[1], [0], [0], [1], [0, 0, 1, 1], [], []>} : vector<8x8xbf16>, vector<8x256xbf16>, vector<8x256xf32> -> vector<8x256xf32>
    %129 = arith.addf %121, %128 : vector<8x256xf32>
    %c6_118 = arith.constant 6 : index
    %c0_119 = arith.constant 0 : index
    %c0_120 = arith.constant 0 : index
    %130 = vector.load %arg6[%c6_118, %c0_119, %c0_120] : memref<9x256x256xbf16, #tpu.memory_space<vmem>>, vector<1x256x256xbf16>
    %131 = vector.shape_cast %130 : vector<1x256x256xbf16> to vector<256x256xbf16>
    %cst_121 = arith.constant dense<0.000000e+00> : vector<8x256xf32>
    %132 = tpu.matmul %80, %131, %cst_121 {dimension_numbers = #tpu.dot_dimension_numbers<[1], [0], [0], [1], [0, 0, 1, 1], [], []>} : vector<8x256xbf16>, vector<256x256xbf16>, vector<8x256xf32> -> vector<8x256xf32>
    %133 = arith.truncf %132 : vector<8x256xf32> to vector<8x256xbf16>
    %c6_122 = arith.constant 6 : index
    %c0_123 = arith.constant 0 : index
    %c0_124 = arith.constant 0 : index
    %134 = vector.load %arg4[%c6_122, %c0_123, %c0_124] : memref<9x8x8xbf16, #tpu.memory_space<vmem>>, vector<1x8x8xbf16>
    %135 = vector.shape_cast %134 : vector<1x8x8xbf16> to vector<8x8xbf16>
    %cst_125 = arith.constant dense<0.000000e+00> : vector<8x256xf32>
    %136 = tpu.matmul %135, %133, %cst_125 {dimension_numbers = #tpu.dot_dimension_numbers<[1], [0], [0], [1], [0, 0, 1, 1], [], []>} : vector<8x8xbf16>, vector<8x256xbf16>, vector<8x256xf32> -> vector<8x256xf32>
    %137 = arith.addf %129, %136 : vector<8x256xf32>
    %c7_126 = arith.constant 7 : index
    %c0_127 = arith.constant 0 : index
    %c0_128 = arith.constant 0 : index
    %138 = vector.load %arg6[%c7_126, %c0_127, %c0_128] : memref<9x256x256xbf16, #tpu.memory_space<vmem>>, vector<1x256x256xbf16>
    %139 = vector.shape_cast %138 : vector<1x256x256xbf16> to vector<256x256xbf16>
    %cst_129 = arith.constant dense<0.000000e+00> : vector<8x256xf32>
    %140 = tpu.matmul %80, %139, %cst_129 {dimension_numbers = #tpu.dot_dimension_numbers<[1], [0], [0], [1], [0, 0, 1, 1], [], []>} : vector<8x256xbf16>, vector<256x256xbf16>, vector<8x256xf32> -> vector<8x256xf32>
    %141 = arith.truncf %140 : vector<8x256xf32> to vector<8x256xbf16>
    %c7_130 = arith.constant 7 : index
    %c0_131 = arith.constant 0 : index
    %c0_132 = arith.constant 0 : index
    %142 = vector.load %arg4[%c7_130, %c0_131, %c0_132] : memref<9x8x8xbf16, #tpu.memory_space<vmem>>, vector<1x8x8xbf16>
    %143 = vector.shape_cast %142 : vector<1x8x8xbf16> to vector<8x8xbf16>
    %cst_133 = arith.constant dense<0.000000e+00> : vector<8x256xf32>
    %144 = tpu.matmul %143, %141, %cst_133 {dimension_numbers = #tpu.dot_dimension_numbers<[1], [0], [0], [1], [0, 0, 1, 1], [], []>} : vector<8x8xbf16>, vector<8x256xbf16>, vector<8x256xf32> -> vector<8x256xf32>
    %145 = arith.addf %137, %144 : vector<8x256xf32>
    %c8_134 = arith.constant 8 : index
    %c0_135 = arith.constant 0 : index
    %c0_136 = arith.constant 0 : index
    %146 = vector.load %arg6[%c8_134, %c0_135, %c0_136] : memref<9x256x256xbf16, #tpu.memory_space<vmem>>, vector<1x256x256xbf16>
    %147 = vector.shape_cast %146 : vector<1x256x256xbf16> to vector<256x256xbf16>
    %cst_137 = arith.constant dense<0.000000e+00> : vector<8x256xf32>
    %148 = tpu.matmul %80, %147, %cst_137 {dimension_numbers = #tpu.dot_dimension_numbers<[1], [0], [0], [1], [0, 0, 1, 1], [], []>} : vector<8x256xbf16>, vector<256x256xbf16>, vector<8x256xf32> -> vector<8x256xf32>
    %149 = arith.truncf %148 : vector<8x256xf32> to vector<8x256xbf16>
    %c8_138 = arith.constant 8 : index
    %c0_139 = arith.constant 0 : index
    %c0_140 = arith.constant 0 : index
    %150 = vector.load %arg4[%c8_138, %c0_139, %c0_140] : memref<9x8x8xbf16, #tpu.memory_space<vmem>>, vector<1x8x8xbf16>
    %151 = vector.shape_cast %150 : vector<1x8x8xbf16> to vector<8x8xbf16>
    %cst_141 = arith.constant dense<0.000000e+00> : vector<8x256xf32>
    %152 = tpu.matmul %151, %149, %cst_141 {dimension_numbers = #tpu.dot_dimension_numbers<[1], [0], [0], [1], [0, 0, 1, 1], [], []>} : vector<8x8xbf16>, vector<8x256xbf16>, vector<8x256xf32> -> vector<8x256xf32>
    %153 = arith.addf %145, %152 : vector<8x256xf32>
    %c0_142 = arith.constant 0 : index
    %c0_143 = arith.constant 0 : index
    %154 = vector.load %arg5[%c0_142, %c0_143] : memref<8x1xf32, #tpu.memory_space<vmem>>, vector<8x1xf32>
    %155 = vector.broadcast %154 : vector<8x1xf32> to vector<8x256xf32>
    %156 = arith.addf %153, %155 : vector<8x256xf32>
    %cst_144 = arith.constant 0.000000e+00 : f32
    %157 = vector.broadcast %cst_144 : f32 to vector<8x256xf32>
    %158 = arith.maximumf %156, %157 : vector<8x256xf32>
    %c0_145 = arith.constant 0 : index
    %c0_146 = arith.constant 0 : index
    %c0_147 = arith.constant 0 : index
    %159 = vector.load %arg7[%c0_145, %c0_146, %c0_147] : memref<1x8x256xf32, #tpu.memory_space<vmem>>, vector<1x8x256xf32>
    %160 = vector.shape_cast %159 : vector<1x8x256xf32> to vector<8x256xf32>
    %161 = vector.shape_cast %158 : vector<8x256xf32> to vector<1x8x256xf32>
    tpu.vector_store %arg7[%c0_145, %c0_146, %c0_147], %161 {strides = array<i32>} : memref<1x8x256xf32, #tpu.memory_space<vmem>>, vector<1x8x256xf32>,
    return
  }
  func.func @transform_0(%arg0: i32) -> (i32, i32, i32) {
    %c0_i32 = arith.constant 0 : i32
    %c0_i32_0 = arith.constant 0 : i32
    %c0_i32_1 = arith.constant 0 : i32
    return %arg0, %c0_i32, %c0_i32_0 : i32, i32, i32
  }
  func.func @transform_1(%arg0: i32) -> (i32, i32, i32) {
    %c0_i32 = arith.constant 0 : i32
    %c0_i32_0 = arith.constant 0 : i32
    %c0_i32_1 = arith.constant 0 : i32
    %c0_i32_2 = arith.constant 0 : i32
    return %c0_i32, %c0_i32_0, %c0_i32_1 : i32, i32, i32
  }
  func.func @transform_2(%arg0: i32) -> (i32, i32) {
    %c0_i32 = arith.constant 0 : i32
    %c0_i32_0 = arith.constant 0 : i32
    %c0_i32_1 = arith.constant 0 : i32
    return %c0_i32, %c0_i32_0 : i32, i32
  }
  func.func @transform_3(%arg0: i32) -> (i32, i32, i32) {
    %c0_i32 = arith.constant 0 : i32
    %c0_i32_0 = arith.constant 0 : i32
    %c0_i32_1 = arith.constant 0 : i32
    %c0_i32_2 = arith.constant 0 : i32
    return %c0_i32, %c0_i32_0, %c0_i32_1 : i32, i32, i32
  }
  func.func @transform_4(%arg0: i32) -> (i32, i32) {
    %c0_i32 = arith.constant 0 : i32
    %c0_i32_0 = arith.constant 0 : i32
    %c0_i32_1 = arith.constant 0 : i32
    return %c0_i32, %c0_i32_0 : i32, i32
  }
  func.func @transform_5(%arg0: i32) -> (i32, i32, i32) {
    %c0_i32 = arith.constant 0 : i32
    %c0_i32_0 = arith.constant 0 : i32
    %c0_i32_1 = arith.constant 0 : i32
    %c0_i32_2 = arith.constant 0 : i32
    return %c0_i32, %c0_i32_0, %c0_i32_1 : i32, i32, i32
  }
  func.func @transform_6(%arg0: i32) -> (i32, i32, i32) {
    %c0_i32 = arith.constant 0 : i32
    %c0_i32_0 = arith.constant 0 : i32
    %c0_i32_1 = arith.constant 0 : i32
    return %arg0, %c0_i32, %c0_i32_0 : i32, i32, i32
  }
}

</mosaic_0001>

<bundles_post_ra>
// kernel: tpu_custom_call.1
= control target key start
LH: loop header
LB: loop body
LE: loop exit
PB: predicated region body
PF: predicated region fallthrough
CT: control target
= control target key end

     0   :  { %11 = vsyncpa [#allocation3], 0  ;;  %s5744_s0 = inlined_call_operand.hbm [shape: bf16[2,4,256], index: 0, kind: input, shape index: {}]   ;;  %s5745_s1 = inlined_call_operand.vmem [shape: bf16[9,8,4], index: 1, kind: input, shape index: {}]   ;;  %s5746_s2 = inlined_call_operand.vmem [shape: f32[8,1], index: 2, kind: input, shape index: {}]   ;;  %s5747_s3 = inlined_call_operand.vmem [shape: bf16[9,8,8], index: 3, kind: input, shape index: {}]   ;;  %s5748_s4 = inlined_call_operand.vmem [shape: f32[8,1], index: 4, kind: input, shape index: {}]   ;;  %s5749_s5 = inlined_call_operand.hbm [shape: bf16[9,256,256], index: 5, kind: input, shape index: {}]   ;;  %s5750_s6 = inlined_call_operand.hbm [shape: f32[2,8,256], index: 6, kind: output, shape index: {}]  }
   0x1   :  { %13 = vsyncpa [#allocation3 + $0x1], 0 }
   0x2   :  { %14 = vsyncpa [#allocation6], 0 }
   0x3   :  { %15 = vsyncpa [#allocation4], 0 }
   0x4   :  { %17 = vsyncpa [#allocation4 + $0x1], 0  ;;  %s5174_s21 = smov 0   ;;  %s5176_s22 = smov 0  }
   0x5   :  { %s5178_s23 = smov 0   ;;  %s5180_s24 = smov 0  }
   0x6 LB: > { %s5195_s25 = sadd.s32 4294967295, %s5131_s24   ;;  %s3891_s26 = sadd.s32 4294967294, %s5131_s24   ;;  %s5131_s24 = sphi %s5180_s24, %s5770_s24   ;;  %s5127_s23 = sphi %s5178_s23, %s5769_s23   ;;  %s5123_s22 = sphi %s5176_s22, %s5768_s22   ;;  %s5119_s21 = sphi %s5174_s21, %s5767_s21  }
   0x7   : > { %p43_p0 = scmp.ne.s32.totalorder %s5123_s22, %s5119_s21  ;;  %p5751_p1 = scmp.eq.s32.totalorder %s5195_s25, 0 }
   0x8   : > { %p178_p3 = scmp.eq.s32.totalorder %s3891_s26, 1  ;;  %p3892_p5 = scmp.ge.s32.totalorder %s5131_s24, 1 }
   0x9   : > { %p5204_p4 = por %p5751_p1, %p43_p0  ;;  %p185_p7 = scmp.lt.s32.totalorder %s5131_s24, 3 }
   0xa   : > { %p5209_p6 = por %p178_p3, %p43_p0  ;;  %s5133_s30 = smov [#allocation5]  }
   0xb   : > { %s5754_s27 = scalar_select %p5204_p4, 1, 0 }
   0xc   : > { %s5755_s28 = scalar_select %p5209_p6, 1, 0 }
   0xd   : > { %p5214_p8 = pnand %p3892_p5, %p185_p7  ;;  %s209_s7 = sshll.u32 %s5133_s30, 4  ;;  %s5218_s7 = int_to_ptr.vmem [resolvable:$true] %s209_s7 }
   0xe   : > { %s5230_s9 = sadd.s32 1, %s5131_s24   ;;  %s30_s10 = sadd.s32 1, %s5127_s23 }
   0xf   : > { %s5756_s29 = scalar_select %p5214_p8, 1, 0 }
  0x10   : > { %p4258_p9 = pneg %p5214_p8  ;;  %s27_s11 = ssub.s32 %s5131_s24, %s5230_s9 }
  0x11   : > { %s5003_s14 = scalar_lea.hbm %s5749_s5, 36864 }
  0x12   : > { %p5225_p11 = pnand %p4258_p9, %p5751_p1  ;;  %p5004_p12 = scmp.ne.s32.totalorder %s5749_s5, %s5003_s14 }
  0x13   : > { %p5010_p5 = scmp.lt.u32.totalorder %s5003_s14, %s5749_s5 }
  0x14   : > { %p5005_p13 = pneg %p5225_p11 }
  0x16   : > { %p5006_p0 = pnand %p5005_p13, %p5004_p12 }
  0x18   : > { %p5007_p3 = pneg %p5006_p0 }
  0x1a   : > { %p5012_p7 = pnand %p5010_p5, %p5007_p3 }
  0x1c   : > { %5015 = shalt.err (!%p5012_p7)
}
  0x1d   : > { %s5016_s19 = scalar_lea.vmem %s5218_s7, 36864  ;;  %p5024_p2 = scmp.lt.s32.totalorder %s5218_s7, %s5218_s7 }
  0x1e   : > { %p5017_p9 = scmp.ne.s32.totalorder %s5218_s7, %s5016_s19  ;;  %p5025_p6 = scmp.lt.s32.totalorder %s5016_s19, %s5016_s19 }
  0x20   : > { %p5019_p10 = pnand %p5017_p9, %p5005_p13  ;;  %p5026_p4 = por %p5025_p6, %p5024_p2 }
  0x22   : > { %p5020_p1 = pneg %p5019_p10 }
  0x24   : > { %p5027_p8 = pnand %p5026_p4, %p5020_p1 }
  0x26   : > { %5030 = shalt.err (!%p5027_p8)
}
  0x27   : > { %s5134_s20 = smov 128   ;;  %s5135_s26 = smov 8  }
  0x28   : > { %4261 = dma.hbm_to_vmem [thread:$0]  (!%p5225_p11), %s5749_s5, 36864, %s5218_s7, [#allocation6], %s5134_s20, %s5134_s20, %s5135_s26  }
  0x29   : > { %p28_p2 = scmp.eq.s32.totalorder %s27_s11, 0  ;;  %p37_p1 = scmp.ne.s32.totalorder %s5127_s23, %s5123_s22 }
  0x2a   : > { %p38_p4 = scmp.eq.s32.totalorder %s5131_s24, 0  ;;  %p4271_p6 = scmp.lt.s32.totalorder %s5131_s24, 2 }
  0x2b   : > { %s5261_s13 = scalar_select %p28_p2, %s5127_s23, %s30_s10  }
  0x2c   : > { %p39_p8 = por %p38_p4, %p37_p1  ;;  %p5758_p10 = scmp.eq.s32.totalorder %s5195_s25, 1 }
  0x2d   : > { %s223_s15 = sand.u32 1, %s5127_s23   ;;  %s4248_s16 = sshll.u32 %s5131_s24, 6 }
  0x2e   : > { %p5265_p12 = por %p5758_p10, %p37_p1  ;;  %s3895_s17 = sshll.u32 %s223_s15, 2 }
  0x2f   : > { %s5274_s19 = scalar_lea.hbm %s5744_s0, %s4248_s16  ;;  %s227_s7 = scalar_lea.vmem [#allocation2], %s3895_s17 }
  0x30   : > { %s235_s10 = sshll.u32 %s227_s7, 4  ;;  %p5276_p11 = pnand %p4271_p6, %p39_p8  ;;  %s5280_s10 = int_to_ptr.vmem [resolvable:$true] %s235_s10 }
  0x31   : > { %s224_s20 = scalar_lea.sflag [#allocation3], %s223_s15  ;;  %s5031_s26 = scalar_lea.hbm %s5274_s19, 64 }
  0x32   : > { %p5032_p13 = scmp.ne.s32.totalorder %s5274_s19, %s5031_s26  ;;  %p5033_p0 = pneg %p5276_p11 }
  0x33   : > { %s5036_s16 = scalar_lea.hbm %s5744_s0, 128  ;;  %p5037_p7 = scmp.lt.u32.totalorder %s5274_s19, %s5744_s0 }
  0x34   : > { %p5034_p3 = pnand %p5033_p0, %p5032_p13  ;;  %p5038_p9 = scmp.lt.u32.totalorder %s5036_s16, %s5031_s26 }
  0x35   : > { %p5040_p1 = scmp.lt.u32.totalorder %s5031_s26, %s5274_s19 }
  0x36   : > { %p5035_p5 = pneg %p5034_p3  ;;  %p5039_p2 = por %p5038_p9, %p5037_p7 }
  0x38   : > { %p5041_p4 = por %p5040_p1, %p5039_p2 }
  0x3a   : > { %p5042_p6 = pnand %p5041_p4, %p5035_p5 }
  0x3c   : > { %5045 = shalt.err (!%p5042_p6)
}
  0x3d   : > { %s5046_s15 = scalar_lea.vmem %s5280_s10, 64  ;;  %s5136_s18 = smov [#allocation2]  }
  0x3e   : > { %p5047_p8 = scmp.ne.s32.totalorder %s5280_s10, %s5046_s15  ;;  %s5051_s7 = sshll.u32 %s5136_s18, 4  ;;  %s5052_s7 = int_to_ptr.vmem [resolvable:$false] %s5051_s7 }
  0x3f   : > { %s5053_s30 = scalar_lea.vmem %s5052_s7, 128  ;;  %p5054_p3 = scmp.lt.s32.totalorder %s5280_s10, %s5052_s7 }
  0x40   : > { %p5049_p10 = pnand %p5047_p8, %p5033_p0  ;;  %p5055_p7 = scmp.lt.s32.totalorder %s5053_s30, %s5046_s15 }
  0x42   : > { %p5050_p13 = pneg %p5049_p10  ;;  %p5056_p9 = por %p5055_p7, %p5054_p3 }
  0x44   : > { %p5057_p2 = pnand %p5056_p9, %p5050_p13 }
  0x46   : > { %5060 = shalt.err (!%p5057_p2)
}
  0x47   : > { %4265 = dma.hbm_to_vmem [thread:$0]  (!%p5276_p11), %s5274_s19, 64, %s5280_s10, %s224_s20  }
  0x48   : > { %p5761_p5 = scmp.ne.s32.totalorder %s5756_s29, 0 }
  0x49   : > { %s5310_s26 = sand.u32 (!%p5761_p5), 1, %s5123_s22   ;;  %p5762_p0 = scmp.ne.s32.totalorder (!%p5761_p5), %s5754_s27, 0 }
  0x4a   : > { %244 = sbr.rel (%p5761_p5) target bundleno = 5021 (0x139d), region = 44  ;;  %s3899_s12 = sshll.u32 (!%p5761_p5), %s5310_s26, 2 }
  0x4b   : > { %s247_s16 = scalar_lea.sflag (!%p5761_p5), [#allocation3], %s5310_s26  ;;  %s5314_s17 = scalar_lea.vmem (!%p5761_p5), [#allocation2], %s3899_s12 }
  0x51   : > { %5106 = dma.done.wait (%p5762_p0), %s247_s16, 64  }
  0x52   : > { %5108 = vsyncadd (%p5762_p0), %s247_s16, 4294967232  ;;  %p5763_p11 = scmp.eq.s32.totalorder %s5195_s25, 0 }
  0x54   : > { %5110 = dma.done.wait (%p5763_p11), [#allocation6], 36864   ;;  %p5764_p1 = pmov %p5763_p11 }
  0x55   : > { %v4311_v0 = vld [vmem:[#allocation5 + $0x104] ss:$8 sps:$4 sm:$0xff]   ;;  %v4313_v1 = vld [vmem:[#allocation5 + $0x100] ss:$8 sps:$4 sm:$0xff]   ;;  %v4316_v3 = vld [vmem:[#allocation5 + $0x114] ss:$8 sps:$4 sm:$0xff]  }
  0x56   : > { %5112 = vsyncadd (%p5764_p1), [#allocation6], 4294930432  ;;  %725 = vmatprep.subr.bf16.mxu1 %v4311_v0  ;;  %v4314_v2 = vld [vmem:[#allocation5 + $0x4] ss:$8 sps:$4 sm:$0xff]   ;;  %v4318_v4 = vld [vmem:[#allocation5] ss:$8 sps:$4 sm:$0xff]  }
  0x57   : > { %726 = vmatpush1.bf16.msra.mxu1 %v4313_v1  ;;  %v4319_v5 = vld [vmem:[#allocation5 + $0x110] ss:$8 sps:$4 sm:$0xff]   ;;  %488 = vmatprep.subr.bf16.mxu0 %v4314_v2  ;;  %v4320_v6 = vld [vmem:[#allocation5 + $0x14] ss:$8 sps:$4 sm:$0xff]   ;;  %v4322_v7 = vld [vmem:[#allocation5 + $0x124] ss:$8 sps:$4 sm:$0xff]  }
  0x58   : > { %727 = vmatprep.subr.bf16.mxu1 %v4316_v3  ;;  %489 = vmatpush1.bf16.msra.mxu0 %v4318_v4  ;;  %v4324_v8 = vld [vmem:[#allocation5 + $0x10] ss:$8 sps:$4 sm:$0xff]   ;;  %v4325_v9 = vld [vmem:[#allocation5 + $0x120] ss:$8 sps:$4 sm:$0xff]   ;;  %v4326_v10 = vld [vmem:[#allocation5 + $0x24] ss:$8 sps:$4 sm:$0xff]  }
  0x59   : > { %490 = vmatprep.subr.bf16.mxu0 %v4320_v6  ;;  %v4328_v11 = vld [vmem:[#allocation5 + $0x134] ss:$8 sps:$4 sm:$0xff]   ;;  %v4330_v12 = vld [vmem:[#allocation5 + $0x20] ss:$8 sps:$4 sm:$0xff]   ;;  %v4331_v14 = vld [vmem:[#allocation5 + $0x130] ss:$8 sps:$4 sm:$0xff]  }
  0x5a   : > { %v4332_v13 = vld [vmem:[#allocation5 + $0x34] ss:$8 sps:$4 sm:$0xff]   ;;  %v4334_v15 = vld [vmem:[#allocation5 + $0x144] ss:$8 sps:$4 sm:$0xff]   ;;  %v4336_v16 = vld [vmem:[#allocation5 + $0x30] ss:$8 sps:$4 sm:$0xff]  }
  0x5b   : > { %728 = vmatpush1.bf16.msra.mxu1 %v4319_v5  ;;  %v4338_v17 = vld [vmem:[#allocation5 + $0x44] ss:$8 sps:$4 sm:$0xff]   ;;  %v4337_v18 = vld [vmem:[#allocation5 + $0x140] ss:$8 sps:$4 sm:$0xff]   ;;  %v4340_v19 = vld [vmem:[#allocation5 + $0x154] ss:$8 sps:$4 sm:$0xff]  }
  0x5c   : > { %729 = vmatprep.subr.bf16.mxu1 %v4322_v7  ;;  %491 = vmatpush1.bf16.msra.mxu0 %v4324_v8  ;;  %v4342_v20 = vld [vmem:[#allocation5 + $0x40] ss:$8 sps:$4 sm:$0xff]   ;;  %v4344_v21 = vld [vmem:[#allocation5 + $0x54] ss:$8 sps:$4 sm:$0xff]   ;;  %v4343_v22 = vld [vmem:[#allocation5 + $0x150] ss:$8 sps:$4 sm:$0xff]  }
  0x5d   : > { %492 = vmatprep.subr.bf16.mxu0 %v4326_v10  ;;  %v4346_v23 = vld [vmem:[#allocation5 + $0x164] ss:$8 sps:$4 sm:$0xff]   ;;  %v4348_v24 = vld [vmem:[#allocation5 + $0x50] ss:$8 sps:$4 sm:$0xff]   ;;  %v4349_v26 = vld [vmem:[#allocation5 + $0x160] ss:$8 sps:$4 sm:$0xff]  }
  0x5e   : > { %v4350_v25 = vld [vmem:[#allocation5 + $0x64] ss:$8 sps:$4 sm:$0xff]   ;;  %v4352_v27 = vld [vmem:[#allocation5 + $0x174] ss:$8 sps:$4 sm:$0xff]   ;;  %v4354_v28 = vld [vmem:[#allocation5 + $0x60] ss:$8 sps:$4 sm:$0xff]  }
  0x5f   : > { %730 = vmatpush1.bf16.msra.mxu1 %v4325_v9  ;;  %v4356_v29 = vld [vmem:[#allocation5 + $0x74] ss:$8 sps:$4 sm:$0xff]   ;;  %v4355_v30 = vld [vmem:[#allocation5 + $0x170] ss:$8 sps:$4 sm:$0xff]   ;;  %v4358_v31 = vld [vmem:[#allocation5 + $0x184] ss:$8 sps:$4 sm:$0xff]  }
  0x60   : > { %731 = vmatprep.subr.bf16.mxu1 %v4328_v11  ;;  %493 = vmatpush1.bf16.msra.mxu0 %v4330_v12  ;;  %v4360_v32 = vld [vmem:[#allocation5 + $0x70] ss:$8 sps:$4 sm:$0xff]   ;;  %v4362_v33 = vld [vmem:[#allocation5 + $0x84] ss:$8 sps:$4 sm:$0xff]   ;;  %v4361_v34 = vld [vmem:[#allocation5 + $0x180] ss:$8 sps:$4 sm:$0xff]  }
  0x61   : > { %494 = vmatprep.subr.bf16.mxu0 %v4332_v13  ;;  %v4364_v35 = vld [vmem:[#allocation5 + $0x194] ss:$8 sps:$4 sm:$0xff]   ;;  %v4366_v36 = vld [vmem:[#allocation5 + $0x80] ss:$8 sps:$4 sm:$0xff]   ;;  %v4367_v38 = vld [vmem:[#allocation5 + $0x190] ss:$8 sps:$4 sm:$0xff]  }
  0x62   : > { %v4368_v37 = vld [vmem:[#allocation5 + $0x94] ss:$8 sps:$4 sm:$0xff]   ;;  %v4370_v39 = vld [vmem:[#allocation5 + $0x1a4] ss:$8 sps:$4 sm:$0xff]   ;;  %v4372_v40 = vld [vmem:[#allocation5 + $0x90] ss:$8 sps:$4 sm:$0xff]  }
  0x63   : > { %732 = vmatpush1.bf16.msra.mxu1 %v4331_v14  ;;  %v4374_v41 = vld [vmem:[#allocation5 + $0xa4] ss:$8 sps:$4 sm:$0xff]   ;;  %v4373_v42 = vld [vmem:[#allocation5 + $0x1a0] ss:$8 sps:$4 sm:$0xff]   ;;  %v4376_v43 = vld [vmem:[#allocation5 + $0x1b4] ss:$8 sps:$4 sm:$0xff]  }
  0x64   : > { %733 = vmatprep.subr.bf16.mxu1 %v4334_v15  ;;  %495 = vmatpush1.bf16.msra.mxu0 %v4336_v16  ;;  %v4378_v44 = vld [vmem:[#allocation5 + $0xa0] ss:$8 sps:$4 sm:$0xff]   ;;  %v4379_v45 = vld [vmem:[#allocation5 + $0x1b0] ss:$8 sps:$4 sm:$0xff]   ;;  %v4380_v46 = vld [vmem:[#allocation5 + $0xb4] ss:$8 sps:$4 sm:$0xff]  }
  0x65   : > { %496 = vmatprep.subr.bf16.mxu0 %v4338_v17  ;;  %v5325_v47 = vld.sshfl [vmem:[%s5314_s17] sm:$0x33 pattern:$0x76325410]  ;;  %v4382_v48 = vld [vmem:[#allocation5 + $0x1c4] ss:$8 sps:$4 sm:$0xff]  }
  0x66   : > { %v5329_v49 = vcombine.high %v5325_v47, %v5325_v47  ;;  %v4384_v50 = vld [vmem:[#allocation5 + $0xb0] ss:$8 sps:$4 sm:$0xff]   ;;  %v4386_v51 = vld [vmem:[#allocation5 + $0xc4] ss:$8 sps:$4 sm:$0xff]   ;;  %v4385_v52 = vld [vmem:[#allocation5 + $0x1c0] ss:$8 sps:$4 sm:$0xff]  }
  0x67   : > { %734 = vmatpush1.bf16.msra.mxu1 %v4337_v18  ;;  %v4388_v53 = vld [vmem:[#allocation5 + $0x1d4] ss:$8 sps:$4 sm:$0xff]   ;;  %v4390_v54 = vld [vmem:[#allocation5 + $0xc0] ss:$8 sps:$4 sm:$0xff]   ;;  %v4391_v56 = vld [vmem:[#allocation5 + $0x1d0] ss:$8 sps:$4 sm:$0xff]  }
  0x68   : > { %735 = vmatprep.subr.bf16.mxu1 %v4340_v19  ;;  %497 = vmatpush1.bf16.msra.mxu0 %v4342_v20  ;;  %v4392_v55 = vld [vmem:[#allocation5 + $0xd4] ss:$8 sps:$4 sm:$0xff]   ;;  %v4394_v57 = vld [vmem:[#allocation5 + $0x1e4] ss:$8 sps:$4 sm:$0xff]   ;;  %v4396_v58 = vld [vmem:[#allocation5 + $0xd0] ss:$8 sps:$4 sm:$0xff]  }
  0x69   : > { %498 = vmatprep.subr.bf16.mxu0 %v4344_v21  ;;  %757 = vmatprep.mubr.bf16.mxu1 %v5329_v49  ;;  %v4398_v59 = vld [vmem:[#allocation5 + $0xe4] ss:$8 sps:$4 sm:$0xff]   ;;  %v4397_v60 = vld [vmem:[#allocation5 + $0x1e0] ss:$8 sps:$4 sm:$0xff]   ;;  %v4400_v61 = vld [vmem:[#allocation5 + $0x1f4] ss:$8 sps:$4 sm:$0xff]  }
  0x6a   : > { %520 = vmatprep.mubr.bf16.mxu0 %v5329_v49  ;;  %v4402_v62 = vld [vmem:[#allocation5 + $0xe0] ss:$8 sps:$4 sm:$0xff]   ;;  %v4404_v63 = vld [vmem:[#allocation5 + $0xf4] ss:$8 sps:$4 sm:$0xff]   ;;  %v4403_v0 = vld [vmem:[#allocation5 + $0x1f0] ss:$8 sps:$4 sm:$0xff]  }
  0x6b   : > { %736 = vmatpush1.bf16.msra.mxu1 %v4343_v22  ;;  %v4406_v1 = vld [vmem:[#allocation5 + $0xf0] ss:$8 sps:$4 sm:$0xff]   ;;  %v5137_v2 = vmov 0   ;;  %vm774_vm0 = vcmask 1041408   ;;  %v3967_v16 = vld [vmem:[%s5745_s1 + $0x4] sm:$0xf] }
  0x6c   : > { %737 = vmatprep.subr.bf16.mxu1 %v4346_v23  ;;  %499 = vmatpush1.bf16.msra.mxu0 %v4348_v24  ;;  %vm770_vm1 = vcmask 31744   ;;  %v4409_v18 = vld [vmem:[#allocation5 + $0x204] ss:$8 sps:$4 sm:$0xff]   ;;  %v4407_v19 = vld [vmem:[#allocation5 + $0x200] ss:$8 sps:$4 sm:$0xff]   ;;  %vm3007_vm2 = vcmask 1043456  }
  0x6d   : > { %500 = vmatprep.subr.bf16.mxu0 %v4350_v25  ;;  %4310 = vset.pattern.permute.xlu0 %v5137_v2  ;;  %v531_v20 = vld [vmem:[%s5745_s1] sm:$0xf]  ;;  %v4412_v21 = vld [vmem:[#allocation5 + $0x214] ss:$8 sps:$4 sm:$0xff]   ;;  %v4415_v23 = vld [vmem:[#allocation5 + $0x224] ss:$8 sps:$4 sm:$0xff]  }
  0x6e   : > { %v4410_v22 = vld [vmem:[#allocation5 + $0x210] ss:$8 sps:$4 sm:$0xff]   ;;  %v4413_v24 = vld [vmem:[#allocation5 + $0x220] ss:$8 sps:$4 sm:$0xff]   ;;  %v4418_v25 = vld [vmem:[#allocation5 + $0x234] ss:$8 sps:$4 sm:$0xff]  }
  0x6f   : > { %738 = vmatpush1.bf16.msra.mxu1 %v4349_v26  ;;  %v4416_v26 = vld [vmem:[#allocation5 + $0x230] ss:$8 sps:$4 sm:$0xff]   ;;  %vm3003_vm3 = vcmask 64512   ;;  %s3901_s16 = sshll.u32 %s5310_s26, 4  ;;  %s3797_s20 = scalar_lea.sflag [#allocation4], %s5310_s26 }
  0x70   : > { %739 = vmatprep.subr.bf16.mxu1 %v4352_v27  ;;  %501 = vmatpush1.bf16.msra.mxu0 %v4354_v28  ;;  %v4421_v27 = vld [vmem:[#allocation5 + $0x244] ss:$8 sps:$4 sm:$0xff]   ;;  %v4419_v28 = vld [vmem:[#allocation5 + $0x240] ss:$8 sps:$4 sm:$0xff]   ;;  %s282_s27 = scalar_lea.vmem [#allocation7], %s3901_s16 }
  0x71   : > { %502 = vmatprep.subr.bf16.mxu0 %v4356_v29  ;;  %v4424_v29 = vld [vmem:[#allocation5 + $0x254] ss:$8 sps:$4 sm:$0xff]   ;;  %s3811_s29 = sshll.u32 %s282_s27, 4  ;;  %s5702_s29 = int_to_ptr.vmem [resolvable:$true] %s3811_s29 }
  0x72   : > { %s5061_s8 = scalar_lea.vmem %s5702_s29, 256 }
  0x73   : > { %740 = vmatpush1.bf16.msra.mxu1 %v4355_v30  ;;  %v4422_v30 = vld [vmem:[#allocation5 + $0x250] ss:$8 sps:$4 sm:$0xff]   ;;  %p5062_p4 = scmp.ne.s32.totalorder %s5702_s29, %s5061_s8 }
  0x74   : > { %741 = vmatprep.subr.bf16.mxu1 %v4358_v31  ;;  %503 = vmatpush1.bf16.msra.mxu0 %v4360_v32  ;;  %v4427_v31 = vld [vmem:[#allocation5 + $0x264] ss:$8 sps:$4 sm:$0xff]   ;;  %v4425_v32 = vld [vmem:[#allocation5 + $0x260] ss:$8 sps:$4 sm:$0xff]  }
  0x75   : > { %504 = vmatprep.subr.bf16.mxu0 %v4362_v33  ;;  %v4430_v33 = vld [vmem:[#allocation5 + $0x274] ss:$8 sps:$4 sm:$0xff]   ;;  %p5063_p6 = pnand %p5062_p4, %p5265_p12 }
  0x77   : > { %742 = vmatpush1.bf16.msra.mxu1 %v4361_v34  ;;  %v4428_v34 = vld [vmem:[#allocation5 + $0x270] ss:$8 sps:$4 sm:$0xff]   ;;  %p5064_p8 = pneg %p5063_p6 }
  0x78   : > { %743 = vmatprep.subr.bf16.mxu1 %v4364_v35  ;;  %505 = vmatpush1.bf16.msra.mxu0 %v4366_v36  ;;  %v4433_v35 = vld [vmem:[#allocation5 + $0x284] ss:$8 sps:$4 sm:$0xff]   ;;  %v4431_v36 = vld [vmem:[#allocation5 + $0x280] ss:$8 sps:$4 sm:$0xff]  }
  0x79   : > { %506 = vmatprep.subr.bf16.mxu0 %v4368_v37  ;;  %v4436_v37 = vld [vmem:[#allocation5 + $0x294] ss:$8 sps:$4 sm:$0xff]  }
  0x7b   : > { %744 = vmatpush1.bf16.msra.mxu1 %v4367_v38  ;;  %v4434_v38 = vld [vmem:[#allocation5 + $0x290] ss:$8 sps:$4 sm:$0xff]  }
  0x7c   : > { %745 = vmatprep.subr.bf16.mxu1 %v4370_v39  ;;  %507 = vmatpush1.bf16.msra.mxu0 %v4372_v40  ;;  %v4439_v39 = vld [vmem:[#allocation5 + $0x2a4] ss:$8 sps:$4 sm:$0xff]   ;;  %v4437_v40 = vld [vmem:[#allocation5 + $0x2a0] ss:$8 sps:$4 sm:$0xff]  }
  0x7d   : > { %508 = vmatprep.subr.bf16.mxu0 %v4374_v41  ;;  %v4442_v41 = vld [vmem:[#allocation5 + $0x2b4] ss:$8 sps:$4 sm:$0xff]  }
  0x7f   : > { %746 = vmatpush1.bf16.msra.mxu1 %v4373_v42  ;;  %v4440_v42 = vld [vmem:[#allocation5 + $0x2b0] ss:$8 sps:$4 sm:$0xff]  }
  0x80   : > { %747 = vmatprep.subr.bf16.mxu1 %v4376_v43  ;;  %509 = vmatpush1.bf16.msra.mxu0 %v4378_v44  ;;  %v4445_v43 = vld [vmem:[#allocation5 + $0x2c4] ss:$8 sps:$4 sm:$0xff]   ;;  %v4443_v44 = vld [vmem:[#allocation5 + $0x2c0] ss:$8 sps:$4 sm:$0xff]  }
  0x81   : > { %510 = vmatprep.subr.bf16.mxu0 %v4380_v46  ;;  %v4446_v46 = vld [vmem:[#allocation5 + $0x2d0] ss:$8 sps:$4 sm:$0xff]  }
  0x83   : > { %748 = vmatpush1.bf16.msra.mxu1 %v4379_v45  ;;  %v4448_v45 = vld [vmem:[#allocation5 + $0x2d4] ss:$8 sps:$4 sm:$0xff]  }
  0x84   : > { %749 = vmatprep.subr.bf16.mxu1 %v4382_v48  ;;  %511 = vmatpush1.bf16.msra.mxu0 %v4384_v50  ;;  %v4451_v48 = vld [vmem:[#allocation5 + $0x2e4] ss:$8 sps:$4 sm:$0xff]   ;;  %v4449_v50 = vld [vmem:[#allocation5 + $0x2e0] ss:$8 sps:$4 sm:$0xff]  }
  0x85   : > { %512 = vmatprep.subr.bf16.mxu0 %v4386_v51  ;;  %v4454_v51 = vld [vmem:[#allocation5 + $0x2f4] ss:$8 sps:$4 sm:$0xff]  }
  0x87   : > { %750 = vmatpush1.bf16.msra.mxu1 %v4385_v52  ;;  %v4452_v52 = vld [vmem:[#allocation5 + $0x2f0] ss:$8 sps:$4 sm:$0xff]  }
  0x88   : > { %751 = vmatprep.subr.bf16.mxu1 %v4388_v53  ;;  %513 = vmatpush1.bf16.msra.mxu0 %v4390_v54 }
  0x89   : > { %514 = vmatprep.subr.bf16.mxu0 %v4392_v55 }
  0x8b   : > { %752 = vmatpush1.bf16.msra.mxu1 %v4391_v56 }
  0x8c   : > { %753 = vmatprep.subr.bf16.mxu1 %v4394_v57  ;;  %515 = vmatpush1.bf16.msra.mxu0 %v4396_v58 }
  0x8d   : > { %516 = vmatprep.subr.bf16.mxu0 %v4398_v59 }
  0x8f   : > { %754 = vmatpush1.bf16.msra.mxu1 %v4397_v60 }
  0x90   : > { %755 = vmatprep.subr.bf16.mxu1 %v4400_v61  ;;  %517 = vmatpush1.bf16.msra.mxu0 %v4402_v62 }
  0x91   : > { %518 = vmatprep.subr.bf16.mxu0 %v4404_v63 }
  0x93   : > { %756 = vmatpush1.bf16.msra.mxu1 %v4403_v0 }
  0x94   : > { %519 = vmatpush1.bf16.msra.mxu0 %v4406_v1 }
  0x96   : > { %758 = vmatmul.mubr.bf16.vlgmr.msra.gmra.mrb[0].mxu1 %v5325_v47 }
  0x97   : > { %521 = vmatmul.mubr.bf16.vlgmr.msra.gmra.mrb[0].mxu0 %v5325_v47  ;;  %1151 = vmatprep.mubr.bf16.mxu1 %v5137_v2 }
  0x98   : > { %813 = vmatprep.mubr.bf16.mxu0 %v5137_v2 }
 0x169   : > { %v759_v3 = vpop.f32.mrb[0].mxu1 }
 0x16a   : > { %v766_v4 = vpack.c.bf16 %v759_v3, %v759_v3  ;;  %v761_v5 = vpop.f32.mrb[1].mxu1  ;;  %v522_v8 = vpop.f32.mrb[0].mxu0 }
 0x16b   : > { %v767_v6 = vpack.c.bf16 %v761_v5, %v761_v5  ;;  %v763_v7 = vpop.f32.mrb[2].mxu1  ;;  %v529_v11 = vpack.c.bf16 %v522_v8, %v522_v8  ;;  %v524_v12 = vpop.f32.mrb[1].mxu0  ;;  %v4457_v5 = vld [vmem:[#allocation5 + $0x304] ss:$8 sps:$4 sm:$0xff]   ;;  %v4004_v8 = vld [vmem:[%s5745_s1 + $0x8] sm:$0xf] }
 0x16c   : > { %v776_v9 = vsel %vm774_vm0, %v766_v4, 0  ;;  %v764_v10 = vpop.f32.mrb[3].mxu1  ;;  %v530_v13 = vpack.c.bf16 %v524_v12, %v524_v12  ;;  %v526_v14 = vpop.f32.mrb[2].mxu0  ;;  %v4463_v12 = vld [vmem:[#allocation5 + $0x324] ss:$8 sps:$4 sm:$0xff]  }
 0x16d   : > { %3968 = vmatprep.subr.msk.bf16.mxu0 %vm774_vm0, %v767_v6  ;;  %v527_v15 = vpop.f32.mrb[3].mxu0  ;;  %v826_v17 = vsel %vm774_vm0, %v529_v11, 0  ;;  %v4460_v10 = vld [vmem:[#allocation5 + $0x314] ss:$8 sps:$4 sm:$0xff]   ;;  %v4458_v11 = vld [vmem:[#allocation5 + $0x310] ss:$8 sps:$4 sm:$0xff]  }
 0x16e   : > { %782 = vmatpush1.bf16.msra.mxu0 %v776_v9  ;;  %v4455_v9 = vld [vmem:[#allocation5 + $0x300] ss:$8 sps:$4 sm:$0xff]   ;;  %v4466_v14 = vld [vmem:[#allocation5 + $0x334] ss:$8 sps:$4 sm:$0xff]   ;;  %v4464_v15 = vld [vmem:[#allocation5 + $0x330] ss:$8 sps:$4 sm:$0xff]  }
 0x16f   : > { %3970 = vmatprep.subr.msk.bf16.mxu0 %vm774_vm0, %v530_v13  ;;  %v4461_v13 = vld [vmem:[#allocation5 + $0x320] ss:$8 sps:$4 sm:$0xff]  }
 0x171   : > { %3969 = vmatmul.mubr.msk.bf16.vlgmr.msra.gmra.mrb[4].mxu0 %vm770_vm1, %v3967_v16  ;;  %v4469_v16 = vld [vmem:[#allocation5 + $0x344] ss:$8 sps:$4 sm:$0xff]  }
 0x172   : > { %832 = vmatpush1.bf16.msra.mxu0 %v826_v17  ;;  %863 = vmatprep.mubr.bf16.mxu0 %v5137_v2  ;;  %v4467_v17 = vld [vmem:[#allocation5 + $0x340] ss:$8 sps:$4 sm:$0xff]  }
 0x173   : > { %1065 = vmatprep.subr.bf16.mxu0 %v4409_v18  ;;  %v4472_v18 = vld [vmem:[#allocation5 + $0x354] ss:$8 sps:$4 sm:$0xff]  }
 0x179   : > { %3971 = vmatmul.mubr.msk.bf16.vlgmr.msra.gmra.mrb[8].mxu0 %vm770_vm1, %v531_v20  ;;  %v4475_v20 = vld [vmem:[#allocation5 + $0x364] ss:$8 sps:$4 sm:$0xff]  }
 0x17a   : > { %1066 = vmatpush1.bf16.msra.mxu0 %v4407_v19  ;;  %1097 = vmatprep.mubr.bf16.mxu0 %v5329_v49  ;;  %v4470_v19 = vld [vmem:[#allocation5 + $0x350] ss:$8 sps:$4 sm:$0xff]  }
 0x17b   : > { %1067 = vmatprep.subr.bf16.mxu0 %v4412_v21  ;;  %v4473_v21 = vld [vmem:[#allocation5 + $0x360] ss:$8 sps:$4 sm:$0xff]  }
 0x17e   : > { %1068 = vmatpush1.bf16.msra.mxu0 %v4410_v22  ;;  %v4478_v22 = vld [vmem:[#allocation5 + $0x374] ss:$8 sps:$4 sm:$0xff]  }
 0x17f   : > { %1069 = vmatprep.subr.bf16.mxu0 %v4415_v23  ;;  %v4476_v23 = vld [vmem:[#allocation5 + $0x370] ss:$8 sps:$4 sm:$0xff]  }
 0x182   : > { %1070 = vmatpush1.bf16.msra.mxu0 %v4413_v24  ;;  %v4481_v24 = vld [vmem:[#allocation5 + $0x384] ss:$8 sps:$4 sm:$0xff]  }
 0x183   : > { %1071 = vmatprep.subr.bf16.mxu0 %v4418_v25  ;;  %v4479_v25 = vld [vmem:[#allocation5 + $0x380] ss:$8 sps:$4 sm:$0xff]  }
 0x186   : > { %1072 = vmatpush1.bf16.msra.mxu0 %v4416_v26  ;;  %v4484_v26 = vld [vmem:[#allocation5 + $0x394] ss:$8 sps:$4 sm:$0xff]  }
 0x187   : > { %1073 = vmatprep.subr.bf16.mxu0 %v4421_v27  ;;  %v4482_v27 = vld [vmem:[#allocation5 + $0x390] ss:$8 sps:$4 sm:$0xff]  }
 0x18a   : > { %1074 = vmatpush1.bf16.msra.mxu0 %v4419_v28  ;;  %v4487_v28 = vld [vmem:[#allocation5 + $0x3a4] ss:$8 sps:$4 sm:$0xff]  }
 0x18b   : > { %1075 = vmatprep.subr.bf16.mxu0 %v4424_v29  ;;  %v4485_v29 = vld [vmem:[#allocation5 + $0x3a0] ss:$8 sps:$4 sm:$0xff]  }
 0x18e   : > { %1076 = vmatpush1.bf16.msra.mxu0 %v4422_v30  ;;  %v4490_v30 = vld [vmem:[#allocation5 + $0x3b4] ss:$8 sps:$4 sm:$0xff]  }
 0x18f   : > { %1077 = vmatprep.subr.bf16.mxu0 %v4427_v31  ;;  %v4488_v31 = vld [vmem:[#allocation5 + $0x3b0] ss:$8 sps:$4 sm:$0xff]  }
 0x192   : > { %1078 = vmatpush1.bf16.msra.mxu0 %v4425_v32  ;;  %v4493_v32 = vld [vmem:[#allocation5 + $0x3c4] ss:$8 sps:$4 sm:$0xff]  }
 0x193   : > { %1079 = vmatprep.subr.bf16.mxu0 %v4430_v33  ;;  %v4491_v33 = vld [vmem:[#allocation5 + $0x3c0] ss:$8 sps:$4 sm:$0xff]  }
 0x196   : > { %1080 = vmatpush1.bf16.msra.mxu0 %v4428_v34  ;;  %v4496_v34 = vld [vmem:[#allocation5 + $0x3d4] ss:$8 sps:$4 sm:$0xff]  }
 0x197   : > { %1081 = vmatprep.subr.bf16.mxu0 %v4433_v35  ;;  %v4494_v35 = vld [vmem:[#allocation5 + $0x3d0] ss:$8 sps:$4 sm:$0xff]  }
 0x19a   : > { %1082 = vmatpush1.bf16.msra.mxu0 %v4431_v36  ;;  %v4499_v36 = vld [vmem:[#allocation5 + $0x3e4] ss:$8 sps:$4 sm:$0xff]  }
 0x19b   : > { %1083 = vmatprep.subr.bf16.mxu0 %v4436_v37  ;;  %v4497_v37 = vld [vmem:[#allocation5 + $0x3e0] ss:$8 sps:$4 sm:$0xff]  }
 0x19e   : > { %1084 = vmatpush1.bf16.msra.mxu0 %v4434_v38  ;;  %v4502_v38 = vld [vmem:[#allocation5 + $0x3f4] ss:$8 sps:$4 sm:$0xff]  }
 0x19f   : > { %1085 = vmatprep.subr.bf16.mxu0 %v4439_v39  ;;  %v4500_v39 = vld [vmem:[#allocation5 + $0x3f0] ss:$8 sps:$4 sm:$0xff]  }
 0x1a2   : > { %1086 = vmatpush1.bf16.msra.mxu0 %v4437_v40 }
 0x1a3   : > { %1087 = vmatprep.subr.bf16.mxu0 %v4442_v41 }
 0x1a6   : > { %1088 = vmatpush1.bf16.msra.mxu0 %v4440_v42 }
 0x1a7   : > { %1089 = vmatprep.subr.bf16.mxu0 %v4445_v43 }
 0x1aa   : > { %1090 = vmatpush1.bf16.msra.mxu0 %v4443_v44 }
 0x1ab   : > { %1091 = vmatprep.subr.bf16.mxu0 %v4448_v45 }
 0x1ae   : > { %1092 = vmatpush1.bf16.msra.mxu0 %v4446_v46 }
 0x1af   : > { %1093 = vmatprep.subr.bf16.mxu0 %v4451_v48 }
 0x1b2   : > { %1094 = vmatpush1.bf16.msra.mxu0 %v4449_v50 }
 0x1b3   : > { %1095 = vmatprep.subr.bf16.mxu0 %v4454_v51 }
 0x1b6   : > { %1096 = vmatpush1.bf16.msra.mxu0 %v4452_v52 }
 0x1b9   : > { %1098 = vmatmul.mubr.bf16.vlgmr.msra.gmra.mrb[12].mxu0 %v5325_v47 }
 0x1ba   : > { %1441 = vmatprep.mubr.bf16.mxu0 %v5137_v2 }
 0x244   : > { %v815_v53 = vpop.f32.mrb[4].mxu0 }
 0x245   : > { %v817_v54 = vpop.f32.mrb[5].mxu0 }
 0x246   : > { %v819_v55 = vpop.f32.mrb[6].mxu0 }
 0x247   : > { %v820_v56 = vpop.f32.mrb[7].mxu0  ;;  %v4039_v55 = vld [vmem:[%s5745_s1 + $0xc] sm:$0xf] }
 0x248   : > { %v4503_v56 = vld [vmem:[#allocation5 + $0x400] ss:$8 sps:$4 sm:$0xff]  }
 0x24c   : > { %v865_v57 = vpop.f32.mrb[8].mxu0 }
 0x24d   : > { %v5354_v58 = vadd.f32 %v865_v57, %v815_v53  ;;  %v867_v59 = vpop.f32.mrb[9].mxu0  ;;  %v4505_v53 = vld [vmem:[#allocation5 + $0x404] ss:$8 sps:$4 sm:$0xff]   ;;  %v4508_v57 = vld [vmem:[#allocation5 + $0x414] ss:$8 sps:$4 sm:$0xff]  }
 0x24e   : > { %v5356_v60 = vadd.f32 %v867_v59, %v817_v54  ;;  %v869_v61 = vpop.f32.mrb[10].mxu0  ;;  %v4511_v59 = vld [vmem:[#allocation5 + $0x424] ss:$8 sps:$4 sm:$0xff]  }
 0x24f   : > { %v870_v62 = vpop.f32.mrb[11].mxu0  ;;  %v4514_v61 = vld [vmem:[#allocation5 + $0x434] ss:$8 sps:$4 sm:$0xff]  }
 0x250   : > { %v4512_v62 = vld [vmem:[#allocation5 + $0x430] ss:$8 sps:$4 sm:$0xff]  }
 0x28c   : > { %v1099_v63 = vpop.f32.mrb[12].mxu0 }
 0x28d   : > { %v1106_v0 = vpack.c.bf16 %v1099_v63, %v1099_v63  ;;  %v1101_v1 = vpop.f32.mrb[13].mxu0  ;;  %v4517_v63 = vld [vmem:[#allocation5 + $0x444] ss:$8 sps:$4 sm:$0xff]  }
 0x28e   : > { %v1107_v3 = vpack.c.bf16 %v1101_v1, %v1101_v1  ;;  %v1103_v4 = vpop.f32.mrb[14].mxu0  ;;  %v4520_v1 = vld [vmem:[#allocation5 + $0x454] ss:$8 sps:$4 sm:$0xff]  }
 0x28f   : > { %v1114_v6 = vsel %vm774_vm0, %v1106_v0, 0  ;;  %v1104_v7 = vpop.f32.mrb[15].mxu0  ;;  %v4515_v0 = vld [vmem:[#allocation5 + $0x440] ss:$8 sps:$4 sm:$0xff]   ;;  %v4523_v4 = vld [vmem:[#allocation5 + $0x464] ss:$8 sps:$4 sm:$0xff]  }
 0x290   : > { %4005 = vmatprep.subr.msk.bf16.mxu1 %vm774_vm0, %v1107_v3  ;;  %v4518_v3 = vld [vmem:[#allocation5 + $0x450] ss:$8 sps:$4 sm:$0xff]  }
 0x291   : > { %1120 = vmatpush1.bf16.msra.mxu1 %v1114_v6  ;;  %v4526_v6 = vld [vmem:[#allocation5 + $0x474] ss:$8 sps:$4 sm:$0xff]   ;;  %v4524_v7 = vld [vmem:[#allocation5 + $0x470] ss:$8 sps:$4 sm:$0xff]  }
 0x292   : > { %1355 = vmatprep.subr.bf16.mxu1 %v4457_v5  ;;  %v4521_v5 = vld [vmem:[#allocation5 + $0x460] ss:$8 sps:$4 sm:$0xff]  }
 0x294   : > { %4006 = vmatmul.mubr.msk.bf16.vlgmr.msra.gmra.mrb[4].mxu1 %vm770_vm1, %v4004_v8  ;;  %v4529_v8 = vld [vmem:[#allocation5 + $0x484] ss:$8 sps:$4 sm:$0xff]  }
 0x295   : > { %1356 = vmatpush1.bf16.msra.mxu1 %v4455_v9  ;;  %1387 = vmatprep.mubr.bf16.mxu1 %v5329_v49  ;;  %v4527_v9 = vld [vmem:[#allocation5 + $0x480] ss:$8 sps:$4 sm:$0xff]  }
 0x296   : > { %1357 = vmatprep.subr.bf16.mxu1 %v4460_v10  ;;  %v4532_v10 = vld [vmem:[#allocation5 + $0x494] ss:$8 sps:$4 sm:$0xff]  }
 0x299   : > { %1358 = vmatpush1.bf16.msra.mxu1 %v4458_v11  ;;  %v4530_v11 = vld [vmem:[#allocation5 + $0x490] ss:$8 sps:$4 sm:$0xff]  }
 0x29a   : > { %1359 = vmatprep.subr.bf16.mxu1 %v4463_v12  ;;  %v4535_v12 = vld [vmem:[#allocation5 + $0x4a4] ss:$8 sps:$4 sm:$0xff]  }
 0x29d   : > { %1360 = vmatpush1.bf16.msra.mxu1 %v4461_v13  ;;  %v4533_v13 = vld [vmem:[#allocation5 + $0x4a0] ss:$8 sps:$4 sm:$0xff]  }
 0x29e   : > { %1361 = vmatprep.subr.bf16.mxu1 %v4466_v14  ;;  %v4538_v14 = vld [vmem:[#allocation5 + $0x4b4] ss:$8 sps:$4 sm:$0xff]  }
 0x2a1   : > { %1362 = vmatpush1.bf16.msra.mxu1 %v4464_v15  ;;  %v4536_v15 = vld [vmem:[#allocation5 + $0x4b0] ss:$8 sps:$4 sm:$0xff]  }
 0x2a2   : > { %1363 = vmatprep.subr.bf16.mxu1 %v4469_v16  ;;  %v4541_v16 = vld [vmem:[#allocation5 + $0x4c4] ss:$8 sps:$4 sm:$0xff]  }
 0x2a5   : > { %1364 = vmatpush1.bf16.msra.mxu1 %v4467_v17  ;;  %v4539_v17 = vld [vmem:[#allocation5 + $0x4c0] ss:$8 sps:$4 sm:$0xff]  }
 0x2a6   : > { %1365 = vmatprep.subr.bf16.mxu1 %v4472_v18  ;;  %v4544_v18 = vld [vmem:[#allocation5 + $0x4d4] ss:$8 sps:$4 sm:$0xff]  }
 0x2a9   : > { %1366 = vmatpush1.bf16.msra.mxu1 %v4470_v19  ;;  %v4542_v19 = vld [vmem:[#allocation5 + $0x4d0] ss:$8 sps:$4 sm:$0xff]  }
 0x2aa   : > { %1367 = vmatprep.subr.bf16.mxu1 %v4475_v20  ;;  %v4547_v20 = vld [vmem:[#allocation5 + $0x4e4] ss:$8 sps:$4 sm:$0xff]  }
 0x2ad   : > { %1368 = vmatpush1.bf16.msra.mxu1 %v4473_v21  ;;  %v4545_v21 = vld [vmem:[#allocation5 + $0x4e0] ss:$8 sps:$4 sm:$0xff]  }
 0x2ae   : > { %1369 = vmatprep.subr.bf16.mxu1 %v4478_v22  ;;  %v4550_v22 = vld [vmem:[#allocation5 + $0x4f4] ss:$8 sps:$4 sm:$0xff]  }
 0x2b1   : > { %1370 = vmatpush1.bf16.msra.mxu1 %v4476_v23  ;;  %v4548_v23 = vld [vmem:[#allocation5 + $0x4f0] ss:$8 sps:$4 sm:$0xff]  }
 0x2b2   : > { %1371 = vmatprep.subr.bf16.mxu1 %v4481_v24  ;;  %v5381_v24 = vld.sshfl [vmem:[%s5314_s17] sm:$0x33 pattern:$0x76325410]  ;;  %s4249_s17 = sshll.u32 %s5195_s25, 8  ;;  %s5138_s25 = smov [#allocation7]  }
 0x2b3   : > { %s5700_s11 = scalar_lea.hbm %s5750_s6, %s4249_s17  ;;  %s5065_s15 = sshll.u32 %s5138_s25, 4  ;;  %s5066_s15 = int_to_ptr.vmem [resolvable:$false] %s5065_s15 }
 0x2b4   : > { %s5067_s18 = scalar_lea.vmem %s5066_s15, 512  ;;  %p5068_p10 = scmp.lt.s32.totalorder %s5702_s29, %s5066_s15 }
 0x2b5   : > { %1372 = vmatpush1.bf16.msra.mxu1 %v4479_v25  ;;  %p5069_p13 = scmp.lt.s32.totalorder %s5067_s18, %s5061_s8 }
 0x2b6   : > { %1373 = vmatprep.subr.bf16.mxu1 %v4484_v26 }
 0x2b7   : > { %p5070_p3 = por %p5069_p13, %p5068_p10 }
 0x2b9   : > { %1374 = vmatpush1.bf16.msra.mxu1 %v4482_v27  ;;  %p5071_p7 = pnand %p5070_p3, %p5064_p8 }
 0x2ba   : > { %1375 = vmatprep.subr.bf16.mxu1 %v4487_v28 }
 0x2bd   : > { %1376 = vmatpush1.bf16.msra.mxu1 %v4485_v29 }
 0x2be   : > { %1377 = vmatprep.subr.bf16.mxu1 %v4490_v30 }
 0x2c1   : > { %1378 = vmatpush1.bf16.msra.mxu1 %v4488_v31 }
 0x2c2   : > { %1379 = vmatprep.subr.bf16.mxu1 %v4493_v32 }
 0x2c5   : > { %1380 = vmatpush1.bf16.msra.mxu1 %v4491_v33 }
 0x2c6   : > { %1381 = vmatprep.subr.bf16.mxu1 %v4496_v34 }
 0x2c9   : > { %1382 = vmatpush1.bf16.msra.mxu1 %v4494_v35 }
 0x2ca   : > { %1383 = vmatprep.subr.bf16.mxu1 %v4499_v36  ;;  %v4553_v36 = vld [vmem:[#allocation5 + $0x504] ss:$8 sps:$4 sm:$0xff]  }
 0x2cd   : > { %1384 = vmatpush1.bf16.msra.mxu1 %v4497_v37 }
 0x2ce   : > { %1385 = vmatprep.subr.bf16.mxu1 %v4502_v38 }
 0x2d1   : > { %1386 = vmatpush1.bf16.msra.mxu1 %v4500_v39  ;;  %v4074_v39 = vld [vmem:[%s5745_s1 + $0x10] sm:$0xf] }
 0x2d4   : > { %1388 = vmatmul.mubr.bf16.vlgmr.msra.gmra.mrb[8].mxu1 %v5325_v47 }
 0x2d5   : > { %1731 = vmatprep.mubr.bf16.mxu1 %v5137_v2 }
 0x367   : > { %v1153_v40 = vpop.f32.mrb[4].mxu1 }
 0x368   : > { %v5368_v41 = vadd.f32 %v1153_v40, %v5354_v58  ;;  %v1155_v42 = vpop.f32.mrb[5].mxu1  ;;  %v4506_v58 = vld [vmem:[#allocation5 + $0x410] ss:$8 sps:$4 sm:$0xff]   ;;  %v4551_v40 = vld [vmem:[#allocation5 + $0x500] ss:$8 sps:$4 sm:$0xff]  }
 0x369   : > { %v5371_v43 = vadd.f32 %v1155_v42, %v5356_v60  ;;  %v1157_v44 = vpop.f32.mrb[6].mxu1  ;;  %v4509_v60 = vld [vmem:[#allocation5 + $0x420] ss:$8 sps:$4 sm:$0xff]   ;;  %v4554_v42 = vld [vmem:[#allocation5 + $0x510] ss:$8 sps:$4 sm:$0xff]  }
 0x36a   : > { %v1158_v45 = vpop.f32.mrb[7].mxu1  ;;  %v4557_v44 = vld [vmem:[#allocation5 + $0x520] ss:$8 sps:$4 sm:$0xff]  }
 0x36b   : > { %v4562_v45 = vld [vmem:[#allocation5 + $0x534] ss:$8 sps:$4 sm:$0xff]  }
 0x3a7   : > { %v1389_v46 = vpop.f32.mrb[8].mxu1 }
 0x3a8   : > { %v1396_v48 = vpack.c.bf16 %v1389_v46, %v1389_v46  ;;  %v1391_v50 = vpop.f32.mrb[9].mxu1  ;;  %v4560_v46 = vld [vmem:[#allocation5 + $0x530] ss:$8 sps:$4 sm:$0xff]  }
 0x3a9   : > { %v1397_v51 = vpack.c.bf16 %v1391_v50, %v1391_v50  ;;  %v1393_v52 = vpop.f32.mrb[10].mxu1  ;;  %v4563_v50 = vld [vmem:[#allocation5 + $0x540] ss:$8 sps:$4 sm:$0xff]  }
 0x3aa   : > { %v1404_v47 = vsel %vm774_vm0, %v1396_v48, 0  ;;  %v1394_v54 = vpop.f32.mrb[11].mxu1  ;;  %v4565_v48 = vld [vmem:[#allocation5 + $0x544] ss:$8 sps:$4 sm:$0xff]   ;;  %v4566_v52 = vld [vmem:[#allocation5 + $0x550] ss:$8 sps:$4 sm:$0xff]  }
 0x3ab   : > { %4040 = vmatprep.subr.msk.bf16.mxu0 %vm774_vm0, %v1397_v51  ;;  %v4568_v51 = vld [vmem:[#allocation5 + $0x554] ss:$8 sps:$4 sm:$0xff]  }
 0x3ac   : > { %1410 = vmatpush1.bf16.msra.mxu0 %v1404_v47  ;;  %v4569_v47 = vld [vmem:[#allocation5 + $0x560] ss:$8 sps:$4 sm:$0xff]   ;;  %v4574_v54 = vld [vmem:[#allocation5 + $0x574] ss:$8 sps:$4 sm:$0xff]  }
 0x3ad   : > { %1645 = vmatprep.subr.bf16.mxu0 %v4505_v53  ;;  %v4571_v53 = vld [vmem:[#allocation5 + $0x564] ss:$8 sps:$4 sm:$0xff]  }
 0x3af   : > { %4041 = vmatmul.mubr.msk.bf16.vlgmr.msra.gmra.mrb[16].mxu0 %vm770_vm1, %v4039_v55  ;;  %v4572_v55 = vld [vmem:[#allocation5 + $0x570] ss:$8 sps:$4 sm:$0xff]  }
 0x3b0   : > { %1646 = vmatpush1.bf16.msra.mxu0 %v4503_v56  ;;  %1677 = vmatprep.mubr.bf16.mxu0 %v5329_v49  ;;  %v4577_v56 = vld [vmem:[#allocation5 + $0x584] ss:$8 sps:$4 sm:$0xff]  }
 0x3b1   : > { %1647 = vmatprep.subr.bf16.mxu0 %v4508_v57  ;;  %v4575_v57 = vld [vmem:[#allocation5 + $0x580] ss:$8 sps:$4 sm:$0xff]  }
 0x3b4   : > { %1648 = vmatpush1.bf16.msra.mxu0 %v4506_v58  ;;  %v4580_v58 = vld [vmem:[#allocation5 + $0x594] ss:$8 sps:$4 sm:$0xff]  }
 0x3b5   : > { %1649 = vmatprep.subr.bf16.mxu0 %v4511_v59  ;;  %v4578_v59 = vld [vmem:[#allocation5 + $0x590] ss:$8 sps:$4 sm:$0xff]  }
 0x3b8   : > { %1650 = vmatpush1.bf16.msra.mxu0 %v4509_v60  ;;  %v4583_v60 = vld [vmem:[#allocation5 + $0x5a4] ss:$8 sps:$4 sm:$0xff]  }
 0x3b9   : > { %1651 = vmatprep.subr.bf16.mxu0 %v4514_v61  ;;  %v4581_v61 = vld [vmem:[#allocation5 + $0x5a0] ss:$8 sps:$4 sm:$0xff]  }
 0x3bc   : > { %1652 = vmatpush1.bf16.msra.mxu0 %v4512_v62  ;;  %v4586_v62 = vld [vmem:[#allocation5 + $0x5b4] ss:$8 sps:$4 sm:$0xff]  }
 0x3bd   : > { %1653 = vmatprep.subr.bf16.mxu0 %v4517_v63  ;;  %v4584_v63 = vld [vmem:[#allocation5 + $0x5b0] ss:$8 sps:$4 sm:$0xff]  }
 0x3c0   : > { %1654 = vmatpush1.bf16.msra.mxu0 %v4515_v0  ;;  %v4589_v0 = vld [vmem:[#allocation5 + $0x5c4] ss:$8 sps:$4 sm:$0xff]  }
 0x3c1   : > { %1655 = vmatprep.subr.bf16.mxu0 %v4520_v1  ;;  %v4587_v1 = vld [vmem:[#allocation5 + $0x5c0] ss:$8 sps:$4 sm:$0xff]  }
 0x3c4   : > { %1656 = vmatpush1.bf16.msra.mxu0 %v4518_v3  ;;  %v4592_v3 = vld [vmem:[#allocation5 + $0x5d4] ss:$8 sps:$4 sm:$0xff]  }
 0x3c5   : > { %1657 = vmatprep.subr.bf16.mxu0 %v4523_v4  ;;  %v4590_v4 = vld [vmem:[#allocation5 + $0x5d0] ss:$8 sps:$4 sm:$0xff]  }
 0x3c8   : > { %1658 = vmatpush1.bf16.msra.mxu0 %v4521_v5  ;;  %v4595_v5 = vld [vmem:[#allocation5 + $0x5e4] ss:$8 sps:$4 sm:$0xff]  }
 0x3c9   : > { %1659 = vmatprep.subr.bf16.mxu0 %v4526_v6  ;;  %v4593_v6 = vld [vmem:[#allocation5 + $0x5e0] ss:$8 sps:$4 sm:$0xff]  }
 0x3cc   : > { %1660 = vmatpush1.bf16.msra.mxu0 %v4524_v7  ;;  %v4598_v7 = vld [vmem:[#allocation5 + $0x5f4] ss:$8 sps:$4 sm:$0xff]  }
 0x3cd   : > { %1661 = vmatprep.subr.bf16.mxu0 %v4529_v8  ;;  %v4596_v8 = vld [vmem:[#allocation5 + $0x5f0] ss:$8 sps:$4 sm:$0xff]  }
 0x3d0   : > { %1662 = vmatpush1.bf16.msra.mxu0 %v4527_v9 }
 0x3d1   : > { %1663 = vmatprep.subr.bf16.mxu0 %v4532_v10 }
 0x3d4   : > { %1664 = vmatpush1.bf16.msra.mxu0 %v4530_v11 }
 0x3d5   : > { %1665 = vmatprep.subr.bf16.mxu0 %v4535_v12 }
 0x3d8   : > { %1666 = vmatpush1.bf16.msra.mxu0 %v4533_v13 }
 0x3d9   : > { %1667 = vmatprep.subr.bf16.mxu0 %v4538_v14 }
 0x3dc   : > { %1668 = vmatpush1.bf16.msra.mxu0 %v4536_v15 }
 0x3dd   : > { %1669 = vmatprep.subr.bf16.mxu0 %v4541_v16 }
 0x3e0   : > { %1670 = vmatpush1.bf16.msra.mxu0 %v4539_v17 }
 0x3e1   : > { %1671 = vmatprep.subr.bf16.mxu0 %v4544_v18 }
 0x3e4   : > { %1672 = vmatpush1.bf16.msra.mxu0 %v4542_v19 }
 0x3e5   : > { %1673 = vmatprep.subr.bf16.mxu0 %v4547_v20  ;;  %v4601_v20 = vld [vmem:[#allocation5 + $0x604] ss:$8 sps:$4 sm:$0xff]  }
 0x3e8   : > { %1674 = vmatpush1.bf16.msra.mxu0 %v4545_v21 }
 0x3e9   : > { %1675 = vmatprep.subr.bf16.mxu0 %v4550_v22 }
 0x3ec   : > { %1676 = vmatpush1.bf16.msra.mxu0 %v4548_v23  ;;  %v4109_v23 = vld [vmem:[%s5745_s1 + $0x14] sm:$0xf] }
 0x3ef   : > { %1678 = vmatmul.mubr.bf16.vlgmr.msra.gmra.mrb[20].mxu0 %v5381_v24 }
 0x3f0   : > { %2021 = vmatprep.mubr.bf16.mxu0 %v5137_v2 }
 0x482   : > { %v1443_v25 = vpop.f32.mrb[16].mxu0 }
 0x483   : > { %v5386_v26 = vadd.f32 %v1443_v25, %v5368_v41  ;;  %v1445_v27 = vpop.f32.mrb[17].mxu0  ;;  %v4556_v41 = vld [vmem:[#allocation5 + $0x514] ss:$8 sps:$4 sm:$0xff]   ;;  %v4599_v25 = vld [vmem:[#allocation5 + $0x600] ss:$8 sps:$4 sm:$0xff]  }
 0x484   : > { %v5389_v28 = vadd.f32 %v1445_v27, %v5371_v43  ;;  %v1447_v29 = vpop.f32.mrb[18].mxu0  ;;  %v4559_v43 = vld [vmem:[#allocation5 + $0x524] ss:$8 sps:$4 sm:$0xff]   ;;  %v4602_v27 = vld [vmem:[#allocation5 + $0x610] ss:$8 sps:$4 sm:$0xff]  }
 0x485   : > { %v1448_v30 = vpop.f32.mrb[19].mxu0  ;;  %v4605_v29 = vld [vmem:[#allocation5 + $0x620] ss:$8 sps:$4 sm:$0xff]  }
 0x486   : > { %v4610_v30 = vld [vmem:[#allocation5 + $0x634] ss:$8 sps:$4 sm:$0xff]  }
 0x4c2   : > { %v1679_v31 = vpop.f32.mrb[20].mxu0 }
 0x4c3   : > { %v1686_v32 = vpack.c.bf16 %v1679_v31, %v1679_v31  ;;  %v1681_v33 = vpop.f32.mrb[21].mxu0  ;;  %v4608_v31 = vld [vmem:[#allocation5 + $0x630] ss:$8 sps:$4 sm:$0xff]  }
 0x4c4   : > { %v1687_v34 = vpack.c.bf16 %v1681_v33, %v1681_v33  ;;  %v1683_v35 = vpop.f32.mrb[22].mxu0  ;;  %v4611_v33 = vld [vmem:[#allocation5 + $0x640] ss:$8 sps:$4 sm:$0xff]  }
 0x4c5   : > { %v1694_v37 = vsel %vm774_vm0, %v1686_v32, 0  ;;  %v1684_v38 = vpop.f32.mrb[23].mxu0  ;;  %v4613_v32 = vld [vmem:[#allocation5 + $0x644] ss:$8 sps:$4 sm:$0xff]   ;;  %v4614_v35 = vld [vmem:[#allocation5 + $0x650] ss:$8 sps:$4 sm:$0xff]  }
 0x4c6   : > { %4075 = vmatprep.subr.msk.bf16.mxu1 %vm774_vm0, %v1687_v34  ;;  %v4616_v34 = vld [vmem:[#allocation5 + $0x654] ss:$8 sps:$4 sm:$0xff]  }
 0x4c7   : > { %1700 = vmatpush1.bf16.msra.mxu1 %v1694_v37  ;;  %v4617_v37 = vld [vmem:[#allocation5 + $0x660] ss:$8 sps:$4 sm:$0xff]   ;;  %v4622_v38 = vld [vmem:[#allocation5 + $0x674] ss:$8 sps:$4 sm:$0xff]  }
 0x4c8   : > { %1935 = vmatprep.subr.bf16.mxu1 %v4553_v36  ;;  %v4619_v36 = vld [vmem:[#allocation5 + $0x664] ss:$8 sps:$4 sm:$0xff]  }
 0x4ca   : > { %4076 = vmatmul.mubr.msk.bf16.vlgmr.msra.gmra.mrb[12].mxu1 %vm770_vm1, %v4074_v39  ;;  %v4620_v39 = vld [vmem:[#allocation5 + $0x670] ss:$8 sps:$4 sm:$0xff]  }
 0x4cb   : > { %1936 = vmatpush1.bf16.msra.mxu1 %v4551_v40  ;;  %1967 = vmatprep.mubr.bf16.mxu1 %v5329_v49  ;;  %v4625_v40 = vld [vmem:[#allocation5 + $0x684] ss:$8 sps:$4 sm:$0xff]  }
 0x4cc   : > { %1937 = vmatprep.subr.bf16.mxu1 %v4556_v41  ;;  %v4623_v41 = vld [vmem:[#allocation5 + $0x680] ss:$8 sps:$4 sm:$0xff]  }
 0x4cf   : > { %1938 = vmatpush1.bf16.msra.mxu1 %v4554_v42  ;;  %v4628_v42 = vld [vmem:[#allocation5 + $0x694] ss:$8 sps:$4 sm:$0xff]  }
 0x4d0   : > { %1939 = vmatprep.subr.bf16.mxu1 %v4559_v43  ;;  %v4626_v43 = vld [vmem:[#allocation5 + $0x690] ss:$8 sps:$4 sm:$0xff]  }
 0x4d3   : > { %1940 = vmatpush1.bf16.msra.mxu1 %v4557_v44  ;;  %v4631_v44 = vld [vmem:[#allocation5 + $0x6a4] ss:$8 sps:$4 sm:$0xff]  }
 0x4d4   : > { %1941 = vmatprep.subr.bf16.mxu1 %v4562_v45  ;;  %v4629_v45 = vld [vmem:[#allocation5 + $0x6a0] ss:$8 sps:$4 sm:$0xff]  }
 0x4d7   : > { %1942 = vmatpush1.bf16.msra.mxu1 %v4560_v46  ;;  %v4634_v46 = vld [vmem:[#allocation5 + $0x6b4] ss:$8 sps:$4 sm:$0xff]  }
 0x4d8   : > { %1943 = vmatprep.subr.bf16.mxu1 %v4565_v48  ;;  %v4632_v48 = vld [vmem:[#allocation5 + $0x6b0] ss:$8 sps:$4 sm:$0xff]  }
 0x4db   : > { %1944 = vmatpush1.bf16.msra.mxu1 %v4563_v50  ;;  %v4637_v50 = vld [vmem:[#allocation5 + $0x6c4] ss:$8 sps:$4 sm:$0xff]  }
 0x4dc   : > { %1945 = vmatprep.subr.bf16.mxu1 %v4568_v51  ;;  %v4635_v51 = vld [vmem:[#allocation5 + $0x6c0] ss:$8 sps:$4 sm:$0xff]  }
 0x4df   : > { %1946 = vmatpush1.bf16.msra.mxu1 %v4566_v52  ;;  %v4640_v52 = vld [vmem:[#allocation5 + $0x6d4] ss:$8 sps:$4 sm:$0xff]  }
 0x4e0   : > { %1947 = vmatprep.subr.bf16.mxu1 %v4571_v53  ;;  %v4638_v53 = vld [vmem:[#allocation5 + $0x6d0] ss:$8 sps:$4 sm:$0xff]  }
 0x4e3   : > { %1948 = vmatpush1.bf16.msra.mxu1 %v4569_v47  ;;  %v4643_v47 = vld [vmem:[#allocation5 + $0x6e4] ss:$8 sps:$4 sm:$0xff]  }
 0x4e4   : > { %1949 = vmatprep.subr.bf16.mxu1 %v4574_v54  ;;  %v4641_v54 = vld [vmem:[#allocation5 + $0x6e0] ss:$8 sps:$4 sm:$0xff]  }
 0x4e7   : > { %1950 = vmatpush1.bf16.msra.mxu1 %v4572_v55  ;;  %v4646_v55 = vld [vmem:[#allocation5 + $0x6f4] ss:$8 sps:$4 sm:$0xff]  }
 0x4e8   : > { %1951 = vmatprep.subr.bf16.mxu1 %v4577_v56  ;;  %v4644_v56 = vld [vmem:[#allocation5 + $0x6f0] ss:$8 sps:$4 sm:$0xff]  }
 0x4eb   : > { %1952 = vmatpush1.bf16.msra.mxu1 %v4575_v57 }
 0x4ec   : > { %1953 = vmatprep.subr.bf16.mxu1 %v4580_v58 }
 0x4ef   : > { %1954 = vmatpush1.bf16.msra.mxu1 %v4578_v59 }
 0x4f0   : > { %1955 = vmatprep.subr.bf16.mxu1 %v4583_v60 }
 0x4f3   : > { %1956 = vmatpush1.bf16.msra.mxu1 %v4581_v61 }
 0x4f4   : > { %1957 = vmatprep.subr.bf16.mxu1 %v4586_v62 }
 0x4f7   : > { %1958 = vmatpush1.bf16.msra.mxu1 %v4584_v63 }
 0x4f8   : > { %1959 = vmatprep.subr.bf16.mxu1 %v4589_v0 }
 0x4fb   : > { %1960 = vmatpush1.bf16.msra.mxu1 %v4587_v1 }
 0x4fc   : > { %1961 = vmatprep.subr.bf16.mxu1 %v4592_v3 }
 0x4ff   : > { %1962 = vmatpush1.bf16.msra.mxu1 %v4590_v4 }
 0x500   : > { %1963 = vmatprep.subr.bf16.mxu1 %v4595_v5  ;;  %v4649_v5 = vld [vmem:[#allocation5 + $0x704] ss:$8 sps:$4 sm:$0xff]  }
 0x503   : > { %1964 = vmatpush1.bf16.msra.mxu1 %v4593_v6 }
 0x504   : > { %1965 = vmatprep.subr.bf16.mxu1 %v4598_v7 }
 0x507   : > { %1966 = vmatpush1.bf16.msra.mxu1 %v4596_v8  ;;  %v4144_v8 = vld [vmem:[%s5745_s1 + $0x18] sm:$0xf] }
 0x50a   : > { %1968 = vmatmul.mubr.bf16.vlgmr.msra.gmra.mrb[16].mxu1 %v5381_v24 }
 0x50b   : > { %2311 = vmatprep.mubr.bf16.mxu1 %v5137_v2 }
 0x59d   : > { %v1733_v9 = vpop.f32.mrb[12].mxu1 }
 0x59e   : > { %v5401_v10 = vadd.f32 %v1733_v9, %v5386_v26  ;;  %v1735_v11 = vpop.f32.mrb[13].mxu1  ;;  %v4604_v26 = vld [vmem:[#allocation5 + $0x614] ss:$8 sps:$4 sm:$0xff]   ;;  %v4647_v9 = vld [vmem:[#allocation5 + $0x700] ss:$8 sps:$4 sm:$0xff]  }
 0x59f   : > { %v5404_v12 = vadd.f32 %v1735_v11, %v5389_v28  ;;  %v1737_v13 = vpop.f32.mrb[14].mxu1  ;;  %v4607_v28 = vld [vmem:[#allocation5 + $0x624] ss:$8 sps:$4 sm:$0xff]   ;;  %v4650_v11 = vld [vmem:[#allocation5 + $0x710] ss:$8 sps:$4 sm:$0xff]  }
 0x5a0   : > { %v1738_v14 = vpop.f32.mrb[15].mxu1  ;;  %v4653_v13 = vld [vmem:[#allocation5 + $0x720] ss:$8 sps:$4 sm:$0xff]  }
 0x5a1   : > { %v4658_v14 = vld [vmem:[#allocation5 + $0x734] ss:$8 sps:$4 sm:$0xff]  }
 0x5dd   : > { %v1969_v15 = vpop.f32.mrb[16].mxu1 }
 0x5de   : > { %v1976_v16 = vpack.c.bf16 %v1969_v15, %v1969_v15  ;;  %v1971_v17 = vpop.f32.mrb[17].mxu1  ;;  %v4656_v15 = vld [vmem:[#allocation5 + $0x730] ss:$8 sps:$4 sm:$0xff]  }
 0x5df   : > { %v1977_v18 = vpack.c.bf16 %v1971_v17, %v1971_v17  ;;  %v1973_v19 = vpop.f32.mrb[18].mxu1  ;;  %v4659_v17 = vld [vmem:[#allocation5 + $0x740] ss:$8 sps:$4 sm:$0xff]  }
 0x5e0   : > { %v1984_v21 = vsel %vm774_vm0, %v1976_v16, 0  ;;  %v1974_v22 = vpop.f32.mrb[19].mxu1  ;;  %v4661_v16 = vld [vmem:[#allocation5 + $0x744] ss:$8 sps:$4 sm:$0xff]   ;;  %v4662_v19 = vld [vmem:[#allocation5 + $0x750] ss:$8 sps:$4 sm:$0xff]  }
 0x5e1   : > { %4110 = vmatprep.subr.msk.bf16.mxu0 %vm774_vm0, %v1977_v18  ;;  %v4664_v18 = vld [vmem:[#allocation5 + $0x754] ss:$8 sps:$4 sm:$0xff]  }
 0x5e2   : > { %1990 = vmatpush1.bf16.msra.mxu0 %v1984_v21  ;;  %v4665_v21 = vld [vmem:[#allocation5 + $0x760] ss:$8 sps:$4 sm:$0xff]   ;;  %v4670_v22 = vld [vmem:[#allocation5 + $0x774] ss:$8 sps:$4 sm:$0xff]  }
 0x5e3   : > { %2225 = vmatprep.subr.bf16.mxu0 %v4601_v20  ;;  %v4667_v20 = vld [vmem:[#allocation5 + $0x764] ss:$8 sps:$4 sm:$0xff]  }
 0x5e5   : > { %4111 = vmatmul.mubr.msk.bf16.vlgmr.msra.gmra.mrb[24].mxu0 %vm770_vm1, %v4109_v23  ;;  %v4668_v23 = vld [vmem:[#allocation5 + $0x770] ss:$8 sps:$4 sm:$0xff]  }
 0x5e6   : > { %2226 = vmatpush1.bf16.msra.mxu0 %v4599_v25  ;;  %2257 = vmatprep.mubr.bf16.mxu0 %v5329_v49  ;;  %v4673_v25 = vld [vmem:[#allocation5 + $0x784] ss:$8 sps:$4 sm:$0xff]  }
 0x5e7   : > { %2227 = vmatprep.subr.bf16.mxu0 %v4604_v26  ;;  %v4671_v26 = vld [vmem:[#allocation5 + $0x780] ss:$8 sps:$4 sm:$0xff]  }
 0x5ea   : > { %2228 = vmatpush1.bf16.msra.mxu0 %v4602_v27  ;;  %v4676_v27 = vld [vmem:[#allocation5 + $0x794] ss:$8 sps:$4 sm:$0xff]  }
 0x5eb   : > { %2229 = vmatprep.subr.bf16.mxu0 %v4607_v28  ;;  %v4674_v28 = vld [vmem:[#allocation5 + $0x790] ss:$8 sps:$4 sm:$0xff]  }
 0x5ee   : > { %2230 = vmatpush1.bf16.msra.mxu0 %v4605_v29  ;;  %v4679_v29 = vld [vmem:[#allocation5 + $0x7a4] ss:$8 sps:$4 sm:$0xff]  }
 0x5ef   : > { %2231 = vmatprep.subr.bf16.mxu0 %v4610_v30  ;;  %v4677_v30 = vld [vmem:[#allocation5 + $0x7a0] ss:$8 sps:$4 sm:$0xff]  }
 0x5f2   : > { %2232 = vmatpush1.bf16.msra.mxu0 %v4608_v31  ;;  %v4682_v31 = vld [vmem:[#allocation5 + $0x7b4] ss:$8 sps:$4 sm:$0xff]  }
 0x5f3   : > { %2233 = vmatprep.subr.bf16.mxu0 %v4613_v32  ;;  %v4680_v32 = vld [vmem:[#allocation5 + $0x7b0] ss:$8 sps:$4 sm:$0xff]  }
 0x5f6   : > { %2234 = vmatpush1.bf16.msra.mxu0 %v4611_v33  ;;  %v4685_v33 = vld [vmem:[#allocation5 + $0x7c4] ss:$8 sps:$4 sm:$0xff]  }
 0x5f7   : > { %2235 = vmatprep.subr.bf16.mxu0 %v4616_v34  ;;  %v4683_v34 = vld [vmem:[#allocation5 + $0x7c0] ss:$8 sps:$4 sm:$0xff]  }
 0x5fa   : > { %2236 = vmatpush1.bf16.msra.mxu0 %v4614_v35  ;;  %v4688_v35 = vld [vmem:[#allocation5 + $0x7d4] ss:$8 sps:$4 sm:$0xff]  }
 0x5fb   : > { %2237 = vmatprep.subr.bf16.mxu0 %v4619_v36  ;;  %v4686_v36 = vld [vmem:[#allocation5 + $0x7d0] ss:$8 sps:$4 sm:$0xff]  }
 0x5fe   : > { %2238 = vmatpush1.bf16.msra.mxu0 %v4617_v37  ;;  %v4691_v37 = vld [vmem:[#allocation5 + $0x7e4] ss:$8 sps:$4 sm:$0xff]  }
 0x5ff   : > { %2239 = vmatprep.subr.bf16.mxu0 %v4622_v38  ;;  %v4689_v38 = vld [vmem:[#allocation5 + $0x7e0] ss:$8 sps:$4 sm:$0xff]  }
 0x602   : > { %2240 = vmatpush1.bf16.msra.mxu0 %v4620_v39  ;;  %v4694_v39 = vld [vmem:[#allocation5 + $0x7f4] ss:$8 sps:$4 sm:$0xff]  }
 0x603   : > { %2241 = vmatprep.subr.bf16.mxu0 %v4625_v40  ;;  %v4692_v40 = vld [vmem:[#allocation5 + $0x7f0] ss:$8 sps:$4 sm:$0xff]  }
 0x606   : > { %2242 = vmatpush1.bf16.msra.mxu0 %v4623_v41 }
 0x607   : > { %2243 = vmatprep.subr.bf16.mxu0 %v4628_v42 }
 0x60a   : > { %2244 = vmatpush1.bf16.msra.mxu0 %v4626_v43 }
 0x60b   : > { %2245 = vmatprep.subr.bf16.mxu0 %v4631_v44 }
 0x60e   : > { %2246 = vmatpush1.bf16.msra.mxu0 %v4629_v45 }
 0x60f   : > { %2247 = vmatprep.subr.bf16.mxu0 %v4634_v46 }
 0x612   : > { %2248 = vmatpush1.bf16.msra.mxu0 %v4632_v48 }
 0x613   : > { %2249 = vmatprep.subr.bf16.mxu0 %v4637_v50 }
 0x616   : > { %2250 = vmatpush1.bf16.msra.mxu0 %v4635_v51 }
 0x617   : > { %2251 = vmatprep.subr.bf16.mxu0 %v4640_v52 }
 0x61a   : > { %2252 = vmatpush1.bf16.msra.mxu0 %v4638_v53 }
 0x61b   : > { %2253 = vmatprep.subr.bf16.mxu0 %v4643_v47  ;;  %v4697_v47 = vld [vmem:[#allocation5 + $0x804] ss:$8 sps:$4 sm:$0xff]  }
 0x61e   : > { %2254 = vmatpush1.bf16.msra.mxu0 %v4641_v54 }
 0x61f   : > { %2255 = vmatprep.subr.bf16.mxu0 %v4646_v55 }
 0x622   : > { %2256 = vmatpush1.bf16.msra.mxu0 %v4644_v56  ;;  %v4179_v56 = vld [vmem:[%s5745_s1 + $0x1c] sm:$0xf] }
 0x625   : > { %2258 = vmatmul.mubr.bf16.vlgmr.msra.gmra.mrb[28].mxu0 %v5381_v24 }
 0x626   : > { %2601 = vmatprep.mubr.bf16.mxu0 %v5137_v2 }
 0x6b8   : > { %v2023_v57 = vpop.f32.mrb[24].mxu0 }
 0x6b9   : > { %v5416_v58 = vadd.f32 %v2023_v57, %v5401_v10  ;;  %v2025_v59 = vpop.f32.mrb[25].mxu0  ;;  %v4652_v10 = vld [vmem:[#allocation5 + $0x714] ss:$8 sps:$4 sm:$0xff]   ;;  %v4695_v57 = vld [vmem:[#allocation5 + $0x800] ss:$8 sps:$4 sm:$0xff]  }
 0x6ba   : > { %v5419_v60 = vadd.f32 %v2025_v59, %v5404_v12  ;;  %v2027_v61 = vpop.f32.mrb[26].mxu0  ;;  %v4655_v12 = vld [vmem:[#allocation5 + $0x724] ss:$8 sps:$4 sm:$0xff]   ;;  %v5442_v59 = vld [vmem:[#allocation5 + $0x810] ss:$8 sps:$4 sm:$0xff]  }
 0x6bb   : > { %v2028_v62 = vpop.f32.mrb[27].mxu0  ;;  %v5448_v61 = vld [vmem:[#allocation5 + $0x820] ss:$8 sps:$4 sm:$0xff]  }
 0x6bc   : > { %v5451_v62 = vld [vmem:[#allocation5 + $0x834] ss:$8 sps:$4 sm:$0xff]  }
 0x6f8   : > { %v2259_v63 = vpop.f32.mrb[28].mxu0 }
 0x6f9   : > { %v2266_v0 = vpack.c.bf16 %v2259_v63, %v2259_v63  ;;  %v2261_v1 = vpop.f32.mrb[29].mxu0  ;;  %v5454_v63 = vld [vmem:[#allocation5 + $0x830] ss:$8 sps:$4 sm:$0xff]  }
 0x6fa   : > { %v2267_v3 = vpack.c.bf16 %v2261_v1, %v2261_v1  ;;  %v2263_v4 = vpop.f32.mrb[30].mxu0  ;;  %v5463_v1 = vld [vmem:[#allocation5 + $0x854] ss:$8 sps:$4 sm:$0xff]  }
 0x6fb   : > { %v2274_v6 = vsel %vm774_vm0, %v2266_v0, 0  ;;  %v2264_v7 = vpop.f32.mrb[31].mxu0  ;;  %v5457_v0 = vld [vmem:[#allocation5 + $0x844] ss:$8 sps:$4 sm:$0xff]  }
 0x6fc   : > { %4145 = vmatprep.subr.msk.bf16.mxu1 %vm774_vm0, %v2267_v3  ;;  %v5466_v3 = vld [vmem:[#allocation5 + $0x850] ss:$8 sps:$4 sm:$0xff]   ;;  %v5469_v4 = vld [vmem:[#allocation5 + $0x864] ss:$8 sps:$4 sm:$0xff]  }
 0x6fd   : > { %2280 = vmatpush1.bf16.msra.mxu1 %v2274_v6  ;;  %v5475_v6 = vld [vmem:[#allocation5 + $0x874] ss:$8 sps:$4 sm:$0xff]   ;;  %v5478_v7 = vld [vmem:[#allocation5 + $0x870] ss:$8 sps:$4 sm:$0xff]  }
 0x6fe   : > { %2515 = vmatprep.subr.bf16.mxu1 %v4649_v5  ;;  %v5472_v5 = vld [vmem:[#allocation5 + $0x860] ss:$8 sps:$4 sm:$0xff]  }
 0x700   : > { %4146 = vmatmul.mubr.msk.bf16.vlgmr.msra.gmra.mrb[20].mxu1 %vm770_vm1, %v4144_v8  ;;  %v5481_v8 = vld [vmem:[#allocation5 + $0x884] ss:$8 sps:$4 sm:$0xff]  }
 0x701   : > { %2516 = vmatpush1.bf16.msra.mxu1 %v4647_v9  ;;  %2547 = vmatprep.mubr.bf16.mxu1 %v5329_v49  ;;  %v5484_v9 = vld [vmem:[#allocation5 + $0x880] ss:$8 sps:$4 sm:$0xff]  }
 0x702   : > { %2517 = vmatprep.subr.bf16.mxu1 %v4652_v10  ;;  %v5487_v10 = vld [vmem:[#allocation5 + $0x894] ss:$8 sps:$4 sm:$0xff]  }
 0x705   : > { %2518 = vmatpush1.bf16.msra.mxu1 %v4650_v11  ;;  %v5490_v11 = vld [vmem:[#allocation5 + $0x890] ss:$8 sps:$4 sm:$0xff]  }
 0x706   : > { %2519 = vmatprep.subr.bf16.mxu1 %v4655_v12  ;;  %v5493_v12 = vld [vmem:[#allocation5 + $0x8a4] ss:$8 sps:$4 sm:$0xff]  }
 0x709   : > { %2520 = vmatpush1.bf16.msra.mxu1 %v4653_v13  ;;  %v5496_v13 = vld [vmem:[#allocation5 + $0x8a0] ss:$8 sps:$4 sm:$0xff]  }
 0x70a   : > { %2521 = vmatprep.subr.bf16.mxu1 %v4658_v14  ;;  %v5499_v14 = vld [vmem:[#allocation5 + $0x8b4] ss:$8 sps:$4 sm:$0xff]  }
 0x70d   : > { %2522 = vmatpush1.bf16.msra.mxu1 %v4656_v15  ;;  %v5502_v15 = vld [vmem:[#allocation5 + $0x8b0] ss:$8 sps:$4 sm:$0xff]  }
 0x70e   : > { %2523 = vmatprep.subr.bf16.mxu1 %v4661_v16  ;;  %v5505_v16 = vld [vmem:[#allocation5 + $0x8c4] ss:$8 sps:$4 sm:$0xff]  }
 0x711   : > { %2524 = vmatpush1.bf16.msra.mxu1 %v4659_v17  ;;  %v5508_v17 = vld [vmem:[#allocation5 + $0x8c0] ss:$8 sps:$4 sm:$0xff]  }
 0x712   : > { %2525 = vmatprep.subr.bf16.mxu1 %v4664_v18  ;;  %v5511_v18 = vld [vmem:[#allocation5 + $0x8d4] ss:$8 sps:$4 sm:$0xff]  }
 0x715   : > { %2526 = vmatpush1.bf16.msra.mxu1 %v4662_v19  ;;  %v5514_v19 = vld [vmem:[#allocation5 + $0x8d0] ss:$8 sps:$4 sm:$0xff]  }
 0x716   : > { %2527 = vmatprep.subr.bf16.mxu1 %v4667_v20  ;;  %v5517_v20 = vld [vmem:[#allocation5 + $0x8e4] ss:$8 sps:$4 sm:$0xff]  }
 0x719   : > { %2528 = vmatpush1.bf16.msra.mxu1 %v4665_v21  ;;  %v5520_v21 = vld [vmem:[#allocation5 + $0x8e0] ss:$8 sps:$4 sm:$0xff]  }
 0x71a   : > { %2529 = vmatprep.subr.bf16.mxu1 %v4670_v22  ;;  %v5523_v22 = vld [vmem:[#allocation5 + $0x8f4] ss:$8 sps:$4 sm:$0xff]  }
 0x71d   : > { %2530 = vmatpush1.bf16.msra.mxu1 %v4668_v23  ;;  %v5526_v23 = vld [vmem:[#allocation5 + $0x8f0] ss:$8 sps:$4 sm:$0xff]  }
 0x71e   : > { %2531 = vmatprep.subr.bf16.mxu1 %v4673_v25  ;;  %v4744_v25 = vld [vmem:[#allocation5 + $0x104] ss:$8 sps:$4 sm:$0xff]  }
 0x721   : > { %2532 = vmatpush1.bf16.msra.mxu1 %v4671_v26  ;;  %v4745_v26 = vld [vmem:[#allocation5 + $0x100] ss:$8 sps:$4 sm:$0xff]  }
 0x722   : > { %2533 = vmatprep.subr.bf16.mxu1 %v4676_v27  ;;  %v4746_v27 = vld [vmem:[#allocation5 + $0x114] ss:$8 sps:$4 sm:$0xff]  }
 0x725   : > { %2534 = vmatpush1.bf16.msra.mxu1 %v4674_v28  ;;  %v4747_v28 = vld [vmem:[#allocation5 + $0x110] ss:$8 sps:$4 sm:$0xff]  }
 0x726   : > { %2535 = vmatprep.subr.bf16.mxu1 %v4679_v29  ;;  %v4748_v29 = vld [vmem:[#allocation5 + $0x124] ss:$8 sps:$4 sm:$0xff]  }
 0x729   : > { %2536 = vmatpush1.bf16.msra.mxu1 %v4677_v30  ;;  %v4749_v30 = vld [vmem:[#allocation5 + $0x120] ss:$8 sps:$4 sm:$0xff]  }
 0x72a   : > { %2537 = vmatprep.subr.bf16.mxu1 %v4682_v31  ;;  %v4750_v31 = vld [vmem:[#allocation5 + $0x134] ss:$8 sps:$4 sm:$0xff]  }
 0x72d   : > { %2538 = vmatpush1.bf16.msra.mxu1 %v4680_v32  ;;  %v4751_v32 = vld [vmem:[#allocation5 + $0x130] ss:$8 sps:$4 sm:$0xff]  }
 0x72e   : > { %2539 = vmatprep.subr.bf16.mxu1 %v4685_v33  ;;  %v4752_v33 = vld [vmem:[#allocation5 + $0x144] ss:$8 sps:$4 sm:$0xff]  }
 0x731   : > { %2540 = vmatpush1.bf16.msra.mxu1 %v4683_v34  ;;  %v4753_v34 = vld [vmem:[#allocation5 + $0x140] ss:$8 sps:$4 sm:$0xff]  }
 0x732   : > { %2541 = vmatprep.subr.bf16.mxu1 %v4688_v35  ;;  %v4754_v35 = vld [vmem:[#allocation5 + $0x154] ss:$8 sps:$4 sm:$0xff]  }
 0x735   : > { %2542 = vmatpush1.bf16.msra.mxu1 %v4686_v36  ;;  %v4756_v36 = vld [vmem:[#allocation5 + $0x164] ss:$8 sps:$4 sm:$0xff]  }
 0x736   : > { %2543 = vmatprep.subr.bf16.mxu1 %v4691_v37  ;;  %v4757_v37 = vld [vmem:[#allocation5 + $0x160] ss:$8 sps:$4 sm:$0xff]  }
 0x739   : > { %2544 = vmatpush1.bf16.msra.mxu1 %v4689_v38  ;;  %v4758_v38 = vld [vmem:[#allocation5 + $0x174] ss:$8 sps:$4 sm:$0xff]  }
 0x73a   : > { %2545 = vmatprep.subr.bf16.mxu1 %v4694_v39  ;;  %v4759_v39 = vld [vmem:[#allocation5 + $0x170] ss:$8 sps:$4 sm:$0xff]  }
 0x73d   : > { %2546 = vmatpush1.bf16.msra.mxu1 %v4692_v40  ;;  %v4760_v40 = vld [vmem:[#allocation5 + $0x184] ss:$8 sps:$4 sm:$0xff]  }
 0x740   : > { %2548 = vmatmul.mubr.bf16.vlgmr.msra.gmra.mrb[24].mxu1 %v5381_v24 }
 0x741   : > { %2891 = vmatprep.mubr.bf16.mxu1 %v5137_v2 }
 0x7d3   : > { %v2313_v41 = vpop.f32.mrb[20].mxu1 }
 0x7d4   : > { %v5431_v42 = vadd.f32 %v2313_v41, %v5416_v58  ;;  %v2315_v43 = vpop.f32.mrb[21].mxu1  ;;  %v4700_v58 = vld [vmem:[#allocation5 + $0x814] ss:$8 sps:$4 sm:$0xff]   ;;  %v4761_v41 = vld [vmem:[#allocation5 + $0x180] ss:$8 sps:$4 sm:$0xff]  }
 0x7d5   : > { %v5434_v44 = vadd.f32 %v2315_v43, %v5419_v60  ;;  %v2317_v45 = vpop.f32.mrb[22].mxu1  ;;  %v5445_v60 = vld [vmem:[#allocation5 + $0x824] ss:$8 sps:$4 sm:$0xff]   ;;  %v4762_v43 = vld [vmem:[#allocation5 + $0x194] ss:$8 sps:$4 sm:$0xff]  }
 0x7d6   : > { %v2318_v46 = vpop.f32.mrb[23].mxu1  ;;  %v4763_v45 = vld [vmem:[#allocation5 + $0x190] ss:$8 sps:$4 sm:$0xff]  }
 0x7d7   : > { %v4764_v46 = vld [vmem:[#allocation5 + $0x1a4] ss:$8 sps:$4 sm:$0xff]  }
 0x813   : > { %v2549_v48 = vpop.f32.mrb[24].mxu1 }
 0x814   : > { %v2556_v50 = vpack.c.bf16 %v2549_v48, %v2549_v48  ;;  %v2551_v51 = vpop.f32.mrb[25].mxu1  ;;  %v4765_v48 = vld [vmem:[#allocation5 + $0x1a0] ss:$8 sps:$4 sm:$0xff]  }
 0x815   : > { %v2557_v52 = vpack.c.bf16 %v2551_v51, %v2551_v51  ;;  %v2553_v53 = vpop.f32.mrb[26].mxu1  ;;  %v4767_v51 = vld [vmem:[#allocation5 + $0x1b0] ss:$8 sps:$4 sm:$0xff]  }
 0x816   : > { %v2564_v54 = vsel %vm774_vm0, %v2556_v50, 0  ;;  %v2554_v55 = vpop.f32.mrb[27].mxu1  ;;  %v4766_v50 = vld [vmem:[#allocation5 + $0x1b4] ss:$8 sps:$4 sm:$0xff]   ;;  %v4769_v53 = vld [vmem:[#allocation5 + $0x1c0] ss:$8 sps:$4 sm:$0xff]  }
 0x817   : > { %4180 = vmatprep.subr.msk.bf16.mxu0 %vm774_vm0, %v2557_v52  ;;  %v4768_v52 = vld [vmem:[#allocation5 + $0x1c4] ss:$8 sps:$4 sm:$0xff]  }
 0x818   : > { %2570 = vmatpush1.bf16.msra.mxu0 %v2564_v54  ;;  %v4771_v54 = vld [vmem:[#allocation5 + $0x1d0] ss:$8 sps:$4 sm:$0xff]   ;;  %v4772_v55 = vld [vmem:[#allocation5 + $0x1e4] ss:$8 sps:$4 sm:$0xff]  }
 0x819   : > { %2805 = vmatprep.subr.bf16.mxu0 %v4697_v47  ;;  %v4770_v47 = vld [vmem:[#allocation5 + $0x1d4] ss:$8 sps:$4 sm:$0xff]  }
 0x81b   : > { %4181 = vmatmul.mubr.msk.bf16.vlgmr.msra.gmra.mrb[32].mxu0 %vm770_vm1, %v4179_v56  ;;  %v4773_v56 = vld [vmem:[#allocation5 + $0x1e0] ss:$8 sps:$4 sm:$0xff]  }
 0x81c   : > { %2806 = vmatpush1.bf16.msra.mxu0 %v4695_v57  ;;  %2837 = vmatprep.mubr.bf16.mxu0 %v5329_v49  ;;  %v5460_v49 = vld [vmem:[#allocation5 + $0x840] ss:$8 sps:$4 sm:$0xff]   ;;  %v4774_v57 = vld [vmem:[#allocation5 + $0x1f4] ss:$8 sps:$4 sm:$0xff]  }
 0x81d   : > { %2807 = vmatprep.subr.bf16.mxu0 %v4700_v58  ;;  %v4775_v58 = vld [vmem:[#allocation5 + $0x1f0] ss:$8 sps:$4 sm:$0xff]  }
 0x820   : > { %2808 = vmatpush1.bf16.msra.mxu0 %v5442_v59 }
 0x821   : > { %2809 = vmatprep.subr.bf16.mxu0 %v5445_v60 }
 0x824   : > { %2810 = vmatpush1.bf16.msra.mxu0 %v5448_v61 }
 0x825   : > { %2811 = vmatprep.subr.bf16.mxu0 %v5451_v62 }
 0x828   : > { %2812 = vmatpush1.bf16.msra.mxu0 %v5454_v63 }
 0x829   : > { %2813 = vmatprep.subr.bf16.mxu0 %v5457_v0 }
 0x82c   : > { %2814 = vmatpush1.bf16.msra.mxu0 %v5460_v49 }
 0x82d   : > { %2815 = vmatprep.subr.bf16.mxu0 %v5463_v1 }
 0x830   : > { %2816 = vmatpush1.bf16.msra.mxu0 %v5466_v3 }
 0x831   : > { %2817 = vmatprep.subr.bf16.mxu0 %v5469_v4 }
 0x834   : > { %2818 = vmatpush1.bf16.msra.mxu0 %v5472_v5 }
 0x835   : > { %2819 = vmatprep.subr.bf16.mxu0 %v5475_v6 }
 0x838   : > { %2820 = vmatpush1.bf16.msra.mxu0 %v5478_v7 }
 0x839   : > { %2821 = vmatprep.subr.bf16.mxu0 %v5481_v8 }
 0x83c   : > { %2822 = vmatpush1.bf16.msra.mxu0 %v5484_v9 }
 0x83d   : > { %2823 = vmatprep.subr.bf16.mxu0 %v5487_v10 }
 0x840   : > { %2824 = vmatpush1.bf16.msra.mxu0 %v5490_v11 }
 0x841   : > { %2825 = vmatprep.subr.bf16.mxu0 %v5493_v12 }
 0x844   : > { %2826 = vmatpush1.bf16.msra.mxu0 %v5496_v13 }
 0x845   : > { %2827 = vmatprep.subr.bf16.mxu0 %v5499_v14 }
 0x848   : > { %2828 = vmatpush1.bf16.msra.mxu0 %v5502_v15 }
 0x849   : > { %2829 = vmatprep.subr.bf16.mxu0 %v5505_v16 }
 0x84c   : > { %2830 = vmatpush1.bf16.msra.mxu0 %v5508_v17 }
 0x84d   : > { %2831 = vmatprep.subr.bf16.mxu0 %v5511_v18 }
 0x850   : > { %2832 = vmatpush1.bf16.msra.mxu0 %v5514_v19 }
 0x851   : > { %2833 = vmatprep.subr.bf16.mxu0 %v5517_v20 }
 0x854   : > { %2834 = vmatpush1.bf16.msra.mxu0 %v5520_v21 }
 0x855   : > { %2835 = vmatprep.subr.bf16.mxu0 %v5523_v22 }
 0x858   : > { %2836 = vmatpush1.bf16.msra.mxu0 %v5526_v23 }
 0x859   : > { %2958 = vmatprep.subr.bf16.mxu0 %v4744_v25  ;;  %v2902_v25 = vld [vmem:[%s5746_s2] sm:$0xff] }
 0x85a   : > { %2905 = vperm.xlu0 %4310, %v2902_v25   ;;  %v4794_v25 = vld [vmem:[#allocation5 + $0x94] ss:$8 sps:$4 sm:$0xff]  }
 0x85b   : > { %2838 = vmatmul.mubr.bf16.vlgmr.msra.gmra.mrb[36].mxu0 %v5381_v24  ;;  %v4755_v24 = vld [vmem:[#allocation5 + $0x150] ss:$8 sps:$4 sm:$0xff]  }
 0x85c   : > { %2959 = vmatpush1.bf16.msra.mxu0 %v4745_v26  ;;  %v3784_v26 = vld [vmem:[%s5748_s4] sm:$0xff] }
 0x85d   : > { %2960 = vmatprep.subr.bf16.mxu0 %v4746_v27 }
 0x85e   : > { %3787 = vperm.xlu0 %4310, %v3784_v26   ;;  %v4795_v26 = vld [vmem:[#allocation5 + $0x90] ss:$8 sps:$4 sm:$0xff]  }
 0x860   : > { %2961 = vmatpush1.bf16.msra.mxu0 %v4747_v28 }
 0x861   : > { %2962 = vmatprep.subr.bf16.mxu0 %v4748_v29 }
 0x864   : > { %2963 = vmatpush1.bf16.msra.mxu0 %v4749_v30 }
 0x865   : > { %2964 = vmatprep.subr.bf16.mxu0 %v4750_v31 }
 0x868   : > { %2965 = vmatpush1.bf16.msra.mxu0 %v4751_v32 }
 0x869   : > { %2966 = vmatprep.subr.bf16.mxu0 %v4752_v33 }
 0x86c   : > { %2967 = vmatpush1.bf16.msra.mxu0 %v4753_v34 }
 0x86d   : > { %2968 = vmatprep.subr.bf16.mxu0 %v4754_v35 }
 0x870   : > { %2969 = vmatpush1.bf16.msra.mxu0 %v4755_v24 }
 0x871   : > { %2970 = vmatprep.subr.bf16.mxu0 %v4756_v36 }
 0x874   : > { %2971 = vmatpush1.bf16.msra.mxu0 %v4757_v37 }
 0x875   : > { %2972 = vmatprep.subr.bf16.mxu0 %v4758_v38 }
 0x878   : > { %2973 = vmatpush1.bf16.msra.mxu0 %v4759_v39  ;;  %v4776_v39 = vld [vmem:[#allocation5 + $0x4] ss:$8 sps:$4 sm:$0xff]  }
 0x879   : > { %2974 = vmatprep.subr.bf16.mxu0 %v4760_v40  ;;  %v4778_v40 = vld [vmem:[#allocation5 + $0x14] ss:$8 sps:$4 sm:$0xff]  }
 0x87c   : > { %2975 = vmatpush1.bf16.msra.mxu0 %v4761_v41  ;;  %v4779_v41 = vld [vmem:[#allocation5 + $0x10] ss:$8 sps:$4 sm:$0xff]  }
 0x87d   : > { %2976 = vmatprep.subr.bf16.mxu0 %v4762_v43  ;;  %v4780_v43 = vld [vmem:[#allocation5 + $0x24] ss:$8 sps:$4 sm:$0xff]  }
 0x880   : > { %2977 = vmatpush1.bf16.msra.mxu0 %v4763_v45  ;;  %v4781_v45 = vld [vmem:[#allocation5 + $0x20] ss:$8 sps:$4 sm:$0xff]  }
 0x881   : > { %2978 = vmatprep.subr.bf16.mxu0 %v4764_v46  ;;  %v4782_v46 = vld [vmem:[#allocation5 + $0x34] ss:$8 sps:$4 sm:$0xff]  }
 0x884   : > { %2979 = vmatpush1.bf16.msra.mxu0 %v4765_v48  ;;  %v4783_v48 = vld [vmem:[#allocation5 + $0x30] ss:$8 sps:$4 sm:$0xff]  }
 0x885   : > { %2980 = vmatprep.subr.bf16.mxu0 %v4766_v50  ;;  %v4784_v50 = vld [vmem:[#allocation5 + $0x44] ss:$8 sps:$4 sm:$0xff]  }
 0x888   : > { %2981 = vmatpush1.bf16.msra.mxu0 %v4767_v51  ;;  %v4785_v51 = vld [vmem:[#allocation5 + $0x40] ss:$8 sps:$4 sm:$0xff]  }
 0x889   : > { %2982 = vmatprep.subr.bf16.mxu0 %v4768_v52  ;;  %v4786_v52 = vld [vmem:[#allocation5 + $0x54] ss:$8 sps:$4 sm:$0xff]  }
 0x88c   : > { %2983 = vmatpush1.bf16.msra.mxu0 %v4769_v53  ;;  %v4787_v53 = vld [vmem:[#allocation5 + $0x50] ss:$8 sps:$4 sm:$0xff]  }
 0x88d   : > { %2984 = vmatprep.subr.bf16.mxu0 %v4770_v47  ;;  %v4788_v47 = vld [vmem:[#allocation5 + $0x64] ss:$8 sps:$4 sm:$0xff]  }
 0x890   : > { %2985 = vmatpush1.bf16.msra.mxu0 %v4771_v54  ;;  %v4789_v54 = vld [vmem:[#allocation5 + $0x60] ss:$8 sps:$4 sm:$0xff]  }
 0x891   : > { %2986 = vmatprep.subr.bf16.mxu0 %v4772_v55  ;;  %v4790_v55 = vld [vmem:[#allocation5 + $0x74] ss:$8 sps:$4 sm:$0xff]  }
 0x894   : > { %2987 = vmatpush1.bf16.msra.mxu0 %v4773_v56  ;;  %v4791_v56 = vld [vmem:[#allocation5 + $0x70] ss:$8 sps:$4 sm:$0xff]  }
 0x895   : > { %2988 = vmatprep.subr.bf16.mxu0 %v4774_v57  ;;  %v4792_v57 = vld [vmem:[#allocation5 + $0x84] ss:$8 sps:$4 sm:$0xff]  }
 0x898   : > { %2989 = vmatpush1.bf16.msra.mxu0 %v4775_v58  ;;  %v4793_v58 = vld [vmem:[#allocation5 + $0x80] ss:$8 sps:$4 sm:$0xff]  }
 0x8ee   : > { %v2603_v27 = vpop.f32.mrb[32].mxu0 }
 0x8ef   : > { %v5538_v28 = vadd.f32 %v2603_v27, %v5431_v42  ;;  %v2605_v29 = vpop.f32.mrb[33].mxu0  ;;  %v4214_v42 = vld [vmem:[%s5745_s1 + $0x20] sm:$0xf]  ;;  %v4796_v27 = vld [vmem:[#allocation5 + $0xa4] ss:$8 sps:$4 sm:$0xff]  }
 0x8f0   : > { %v5541_v30 = vadd.f32 %v2605_v29, %v5434_v44  ;;  %v2607_v31 = vpop.f32.mrb[34].mxu0  ;;  %v4777_v44 = vld [vmem:[#allocation5] ss:$8 sps:$4 sm:$0xff]  }
 0x8f1   : > { %v2608_v32 = vpop.f32.mrb[35].mxu0  ;;  %v4797_v29 = vld [vmem:[#allocation5 + $0xa0] ss:$8 sps:$4 sm:$0xff]   ;;  %v4798_v31 = vld [vmem:[#allocation5 + $0xb4] ss:$8 sps:$4 sm:$0xff]  }
 0x8f2   : > { %v4799_v32 = vld [vmem:[#allocation5 + $0xb0] ss:$8 sps:$4 sm:$0xff]  }
 0x92e   : > { %v2839_v33 = vpop.f32.mrb[36].mxu0 }
 0x92f   : > { %v2846_v34 = vpack.c.bf16 %v2839_v33, %v2839_v33  ;;  %v2841_v35 = vpop.f32.mrb[37].mxu0  ;;  %v4800_v33 = vld [vmem:[#allocation5 + $0xc4] ss:$8 sps:$4 sm:$0xff]  }
 0x930   : > { %v2847_v24 = vpack.c.bf16 %v2841_v35, %v2841_v35  ;;  %v2843_v36 = vpop.f32.mrb[38].mxu0  ;;  %v4802_v35 = vld [vmem:[#allocation5 + $0xd4] ss:$8 sps:$4 sm:$0xff]  }
 0x931   : > { %v2854_v37 = vsel %vm774_vm0, %v2846_v34, 0  ;;  %v2844_v38 = vpop.f32.mrb[39].mxu0  ;;  %v4801_v34 = vld [vmem:[#allocation5 + $0xc0] ss:$8 sps:$4 sm:$0xff]   ;;  %v4804_v36 = vld [vmem:[#allocation5 + $0xe4] ss:$8 sps:$4 sm:$0xff]  }
 0x932   : > { %4215 = vmatprep.subr.msk.bf16.mxu1 %vm774_vm0, %v2847_v24  ;;  %v4803_v24 = vld [vmem:[#allocation5 + $0xd0] ss:$8 sps:$4 sm:$0xff]   ;;  %v4806_v38 = vld [vmem:[#allocation5 + $0xf4] ss:$8 sps:$4 sm:$0xff]  }
 0x933   : > { %2860 = vmatpush1.bf16.msra.mxu1 %v2854_v37  ;;  %v4805_v37 = vld [vmem:[#allocation5 + $0xe0] ss:$8 sps:$4 sm:$0xff]  }
 0x934   : > { %2914 = vmatprep.subr.bf16.mxu1 %v4776_v39 }
 0x936   : > { %4216 = vmatmul.mubr.msk.bf16.vlgmr.msra.gmra.mrb[28].mxu1 %vm770_vm1, %v4214_v42  ;;  %v4807_v42 = vld [vmem:[#allocation5 + $0xf0] ss:$8 sps:$4 sm:$0xff]  }
 0x937   : > { %2915 = vmatpush1.bf16.msra.mxu1 %v4777_v44 }
 0x938   : > { %2916 = vmatprep.subr.bf16.mxu1 %v4778_v40 }
 0x93b   : > { %2917 = vmatpush1.bf16.msra.mxu1 %v4779_v41  ;;  %v2906_v41 = vpop.permute.xlu0 %2905 }
 0x93c   : > { %2918 = vmatprep.subr.bf16.mxu1 %v4780_v43 }
 0x93f   : > { %2919 = vmatpush1.bf16.msra.mxu1 %v4781_v45 }
 0x940   : > { %2920 = vmatprep.subr.bf16.mxu1 %v4782_v46 }
 0x943   : > { %2921 = vmatpush1.bf16.msra.mxu1 %v4783_v48 }
 0x944   : > { %2922 = vmatprep.subr.bf16.mxu1 %v4784_v50 }
 0x947   : > { %2923 = vmatpush1.bf16.msra.mxu1 %v4785_v51 }
 0x948   : > { %2924 = vmatprep.subr.bf16.mxu1 %v4786_v52 }
 0x94b   : > { %2925 = vmatpush1.bf16.msra.mxu1 %v4787_v53 }
 0x94c   : > { %2926 = vmatprep.subr.bf16.mxu1 %v4788_v47 }
 0x94f   : > { %2927 = vmatpush1.bf16.msra.mxu1 %v4789_v54 }
 0x950   : > { %2928 = vmatprep.subr.bf16.mxu1 %v4790_v55 }
 0x953   : > { %2929 = vmatpush1.bf16.msra.mxu1 %v4791_v56 }
 0x954   : > { %2930 = vmatprep.subr.bf16.mxu1 %v4792_v57 }
 0x957   : > { %2931 = vmatpush1.bf16.msra.mxu1 %v4793_v58 }
 0x958   : > { %2932 = vmatprep.subr.bf16.mxu1 %v4794_v25 }
 0x95b   : > { %2933 = vmatpush1.bf16.msra.mxu1 %v4795_v26 }
 0x95c   : > { %2934 = vmatprep.subr.bf16.mxu1 %v4796_v27 }
 0x95f   : > { %2935 = vmatpush1.bf16.msra.mxu1 %v4797_v29 }
 0x960   : > { %2936 = vmatprep.subr.bf16.mxu1 %v4798_v31 }
 0x963   : > { %2937 = vmatpush1.bf16.msra.mxu1 %v4799_v32 }
 0x964   : > { %2938 = vmatprep.subr.bf16.mxu1 %v4800_v33  ;;  %v4217_v33 = vld [vmem:[%s5747_s3 + $0x4] sm:$0xf] }
 0x967   : > { %2939 = vmatpush1.bf16.msra.mxu1 %v4801_v34 }
 0x968   : > { %2940 = vmatprep.subr.bf16.mxu1 %v4802_v35  ;;  %v4808_v35 = vld [vmem:[#allocation5 + $0x204] ss:$8 sps:$4 sm:$0xff]  }
 0x96b   : > { %2941 = vmatpush1.bf16.msra.mxu1 %v4803_v24  ;;  %v2957_v24 = vld [vmem:[%s5747_s3] sm:$0xf] }
 0x96c   : > { %2942 = vmatprep.subr.bf16.mxu1 %v4804_v36  ;;  %v4809_v36 = vld [vmem:[#allocation5 + $0x200] ss:$8 sps:$4 sm:$0xff]  }
 0x96f   : > { %2943 = vmatpush1.bf16.msra.mxu1 %v4805_v37  ;;  %v4810_v37 = vld [vmem:[#allocation5 + $0x214] ss:$8 sps:$4 sm:$0xff]  }
 0x970   : > { %2944 = vmatprep.subr.bf16.mxu1 %v4806_v38  ;;  %v4811_v38 = vld [vmem:[#allocation5 + $0x210] ss:$8 sps:$4 sm:$0xff]  }
 0x973   : > { %2945 = vmatpush1.bf16.msra.mxu1 %v4807_v42  ;;  %v4812_v42 = vld [vmem:[#allocation5 + $0x224] ss:$8 sps:$4 sm:$0xff]  }
 0xa09   : > { %v2893_v39 = vpop.f32.mrb[28].mxu1 }
 0xa0a   : > { %v2900_v44 = vadd.f32 %v2893_v39, %v5538_v28  ;;  %v2895_v40 = vpop.f32.mrb[29].mxu1  ;;  %v4813_v39 = vld [vmem:[#allocation5 + $0x220] ss:$8 sps:$4 sm:$0xff]  }
 0xa0b   : > { %v2901_v43 = vadd.f32 %v2895_v40, %v5541_v30  ;;  %v2897_v45 = vpop.f32.mrb[30].mxu1  ;;  %v4815_v40 = vld [vmem:[#allocation5 + $0x230] ss:$8 sps:$4 sm:$0xff]  }
 0xa0c   : > { %v2908_v46 = vadd.f32 %v2906_v41, %v2900_v44  ;;  %v2898_v48 = vpop.f32.mrb[31].mxu1  ;;  %v4814_v44 = vld [vmem:[#allocation5 + $0x234] ss:$8 sps:$4 sm:$0xff]  }
 0xa0d   : > { %v2909_v50 = vadd.f32 %v2906_v41, %v2901_v43  ;;  %v4816_v41 = vld [vmem:[#allocation5 + $0x244] ss:$8 sps:$4 sm:$0xff]   ;;  %v4817_v43 = vld [vmem:[#allocation5 + $0x240] ss:$8 sps:$4 sm:$0xff]   ;;  %v4818_v45 = vld [vmem:[#allocation5 + $0x254] ss:$8 sps:$4 sm:$0xff]  }
 0xa0e   : > { %v2910_v51 = vmax.f32 %v2908_v46, 0.0  ;;  %v4819_v46 = vld [vmem:[#allocation5 + $0x250] ss:$8 sps:$4 sm:$0xff]   ;;  %v4820_v48 = vld [vmem:[#allocation5 + $0x264] ss:$8 sps:$4 sm:$0xff]  }
 0xa0f   : > { %v2911_v52 = vmax.f32 %v2909_v50, 0.0  ;;  %v4821_v50 = vld [vmem:[#allocation5 + $0x260] ss:$8 sps:$4 sm:$0xff]  }
 0xa10   : > { %v5553_v47 = vpack.c.bf16 %v2910_v51, %v2910_v51  ;;  %v4822_v51 = vld [vmem:[#allocation5 + $0x274] ss:$8 sps:$4 sm:$0xff]  }
 0xa11   : > { %v5551_v53 = vpack.c.bf16 %v2911_v52, %v2911_v52  ;;  %v4823_v52 = vld [vmem:[#allocation5 + $0x270] ss:$8 sps:$4 sm:$0xff]  }
 0xa13   : > { %2946 = vmatprep.mubr.bf16.mxu1 %v5551_v53  ;;  %2990 = vmatprep.mubr.bf16.mxu0 %v5551_v53 }
 0xa14   : > { %2947 = vmatmul.mubr.bf16.vlgmr.msra.gmra.mrb[32].mxu1 %v5553_v47  ;;  %2991 = vmatmul.mubr.bf16.vlgmr.msra.gmra.mrb[40].mxu0 %v5553_v47 }
 0xa15   : > { %3046 = vmatprep.mubr.bf16.mxu1 %v5137_v2  ;;  %3191 = vmatprep.mubr.bf16.mxu0 %v5137_v2 }
 0xae7   : > { %v2948_v28 = vpop.f32.mrb[32].mxu1  ;;  %v2992_v30 = vpop.f32.mrb[40].mxu0 }
 0xae8   : > { %v2999_v54 = vpack.c.bf16 %v2992_v30, %v2992_v30  ;;  %v2950_v55 = vpop.f32.mrb[33].mxu1  ;;  %v2994_v56 = vpop.f32.mrb[41].mxu0  ;;  %v2955_v31 = vpack.c.bf16 %v2948_v28, %v2948_v28  ;;  %v4824_v28 = vld [vmem:[#allocation5 + $0x284] ss:$8 sps:$4 sm:$0xff]   ;;  %v4825_v30 = vld [vmem:[#allocation5 + $0x280] ss:$8 sps:$4 sm:$0xff]  }
 0xae9   : > { %v3000_v57 = vpack.c.bf16 %v2994_v56, %v2994_v56  ;;  %v2952_v58 = vpop.f32.mrb[34].mxu1  ;;  %v2996_v25 = vpop.f32.mrb[42].mxu0  ;;  %v2956_v32 = vpack.c.bf16 %v2950_v55, %v2950_v55  ;;  %v4827_v55 = vld [vmem:[#allocation5 + $0x290] ss:$8 sps:$4 sm:$0xff]   ;;  %v4828_v56 = vld [vmem:[#allocation5 + $0x2a4] ss:$8 sps:$4 sm:$0xff]  }
 0xaea   : > { %v3009_v26 = vsel %vm3007_vm2, %v2999_v54, 0  ;;  %v2953_v27 = vpop.f32.mrb[35].mxu1  ;;  %v2997_v29 = vpop.f32.mrb[43].mxu0  ;;  %v3059_v34 = vsel %vm3007_vm2, %v2955_v31, 0  ;;  %v4826_v54 = vld [vmem:[#allocation5 + $0x294] ss:$8 sps:$4 sm:$0xff]  }
 0xaeb   : > { %4218 = vmatprep.subr.msk.bf16.mxu1 %vm3007_vm2, %v3000_v57  ;;  %v4829_v57 = vld [vmem:[#allocation5 + $0x2a0] ss:$8 sps:$4 sm:$0xff]   ;;  %v4830_v58 = vld [vmem:[#allocation5 + $0x2b4] ss:$8 sps:$4 sm:$0xff]   ;;  %v4831_v25 = vld [vmem:[#allocation5 + $0x2b0] ss:$8 sps:$4 sm:$0xff]  }
 0xaec   : > { %3015 = vmatpush1.bf16.msra.mxu1 %v3009_v26  ;;  %v4832_v26 = vld [vmem:[#allocation5 + $0x2c4] ss:$8 sps:$4 sm:$0xff]   ;;  %v4833_v27 = vld [vmem:[#allocation5 + $0x2c0] ss:$8 sps:$4 sm:$0xff]   ;;  %v4834_v29 = vld [vmem:[#allocation5 + $0x2d4] ss:$8 sps:$4 sm:$0xff]  }
 0xaed   : > { %4220 = vmatprep.subr.msk.bf16.mxu1 %vm3007_vm2, %v2956_v32  ;;  %v4835_v31 = vld [vmem:[#allocation5 + $0x2d0] ss:$8 sps:$4 sm:$0xff]   ;;  %v4836_v32 = vld [vmem:[#allocation5 + $0x2e4] ss:$8 sps:$4 sm:$0xff]  }
 0xaef   : > { %4219 = vmatmul.mubr.msk.bf16.vlgmr.msra.gmra.mrb[36].mxu1 %vm3003_vm3, %v4217_v33  ;;  %v4837_v33 = vld [vmem:[#allocation5 + $0x2e0] ss:$8 sps:$4 sm:$0xff]  }
 0xaf0   : > { %3065 = vmatpush1.bf16.msra.mxu1 %v3059_v34  ;;  %3096 = vmatprep.mubr.bf16.mxu1 %v5137_v2  ;;  %v4838_v34 = vld [vmem:[#allocation5 + $0x2f4] ss:$8 sps:$4 sm:$0xff]  }
 0xaf1   : > { %3105 = vmatprep.subr.bf16.mxu1 %v4808_v35  ;;  %v4839_v35 = vld [vmem:[#allocation5 + $0x2f0] ss:$8 sps:$4 sm:$0xff]  }
 0xaf7   : > { %4221 = vmatmul.mubr.msk.bf16.vlgmr.msra.gmra.mrb[40].mxu1 %vm3003_vm3, %v2957_v24 }
 0xaf8   : > { %3106 = vmatpush1.bf16.msra.mxu1 %v4809_v36  ;;  %3137 = vmatprep.mubr.bf16.mxu1 %v5551_v53 }
 0xaf9   : > { %3107 = vmatprep.subr.bf16.mxu1 %v4810_v37 }
 0xafc   : > { %3108 = vmatpush1.bf16.msra.mxu1 %v4811_v38 }
 0xafd   : > { %3109 = vmatprep.subr.bf16.mxu1 %v4812_v42 }
 0xb00   : > { %3110 = vmatpush1.bf16.msra.mxu1 %v4813_v39 }
 0xb01   : > { %3111 = vmatprep.subr.bf16.mxu1 %v4814_v44 }
 0xb04   : > { %3112 = vmatpush1.bf16.msra.mxu1 %v4815_v40 }
 0xb05   : > { %3113 = vmatprep.subr.bf16.mxu1 %v4816_v41 }
 0xb08   : > { %3114 = vmatpush1.bf16.msra.mxu1 %v4817_v43 }
 0xb09   : > { %3115 = vmatprep.subr.bf16.mxu1 %v4818_v45 }
 0xb0c   : > { %3116 = vmatpush1.bf16.msra.mxu1 %v4819_v46 }
 0xb0d   : > { %3117 = vmatprep.subr.bf16.mxu1 %v4820_v48 }
 0xb10   : > { %3118 = vmatpush1.bf16.msra.mxu1 %v4821_v50 }
 0xb11   : > { %3119 = vmatprep.subr.bf16.mxu1 %v4822_v51 }
 0xb14   : > { %3120 = vmatpush1.bf16.msra.mxu1 %v4823_v52 }
 0xb15   : > { %3121 = vmatprep.subr.bf16.mxu1 %v4824_v28 }
 0xb18   : > { %3122 = vmatpush1.bf16.msra.mxu1 %v4825_v30  ;;  %v4222_v30 = vld [vmem:[%s5747_s3 + $0x8] sm:$0xf] }
 0xb19   : > { %3123 = vmatprep.subr.bf16.mxu1 %v4826_v54  ;;  %v4840_v54 = vld [vmem:[#allocation5 + $0x304] ss:$8 sps:$4 sm:$0xff]  }
 0xb1c   : > { %3124 = vmatpush1.bf16.msra.mxu1 %v4827_v55  ;;  %v4841_v55 = vld [vmem:[#allocation5 + $0x300] ss:$8 sps:$4 sm:$0xff]  }
 0xb1d   : > { %3125 = vmatprep.subr.bf16.mxu1 %v4828_v56  ;;  %v4842_v56 = vld [vmem:[#allocation5 + $0x314] ss:$8 sps:$4 sm:$0xff]  }
 0xb20   : > { %3126 = vmatpush1.bf16.msra.mxu1 %v4829_v57  ;;  %v4843_v57 = vld [vmem:[#allocation5 + $0x310] ss:$8 sps:$4 sm:$0xff]  }
 0xb21   : > { %3127 = vmatprep.subr.bf16.mxu1 %v4830_v58  ;;  %v4844_v58 = vld [vmem:[#allocation5 + $0x324] ss:$8 sps:$4 sm:$0xff]  }
 0xb24   : > { %3128 = vmatpush1.bf16.msra.mxu1 %v4831_v25  ;;  %v4845_v25 = vld [vmem:[#allocation5 + $0x320] ss:$8 sps:$4 sm:$0xff]  }
 0xb25   : > { %3129 = vmatprep.subr.bf16.mxu1 %v4832_v26  ;;  %v4846_v26 = vld [vmem:[#allocation5 + $0x334] ss:$8 sps:$4 sm:$0xff]  }
 0xb28   : > { %3130 = vmatpush1.bf16.msra.mxu1 %v4833_v27  ;;  %v4847_v27 = vld [vmem:[#allocation5 + $0x330] ss:$8 sps:$4 sm:$0xff]  }
 0xb29   : > { %3131 = vmatprep.subr.bf16.mxu1 %v4834_v29  ;;  %v4848_v29 = vld [vmem:[#allocation5 + $0x344] ss:$8 sps:$4 sm:$0xff]  }
 0xb2c   : > { %3132 = vmatpush1.bf16.msra.mxu1 %v4835_v31  ;;  %v4849_v31 = vld [vmem:[#allocation5 + $0x340] ss:$8 sps:$4 sm:$0xff]  }
 0xb2d   : > { %3133 = vmatprep.subr.bf16.mxu1 %v4836_v32  ;;  %v4850_v32 = vld [vmem:[#allocation5 + $0x354] ss:$8 sps:$4 sm:$0xff]  }
 0xb30   : > { %3134 = vmatpush1.bf16.msra.mxu1 %v4837_v33  ;;  %v4851_v33 = vld [vmem:[#allocation5 + $0x350] ss:$8 sps:$4 sm:$0xff]  }
 0xb31   : > { %3135 = vmatprep.subr.bf16.mxu1 %v4838_v34  ;;  %v4852_v34 = vld [vmem:[#allocation5 + $0x364] ss:$8 sps:$4 sm:$0xff]  }
 0xb34   : > { %3136 = vmatpush1.bf16.msra.mxu1 %v4839_v35  ;;  %v4853_v35 = vld [vmem:[#allocation5 + $0x360] ss:$8 sps:$4 sm:$0xff]  }
 0xb37   : > { %3138 = vmatmul.mubr.bf16.vlgmr.msra.gmra.mrb[44].mxu1 %v5553_v47 }
 0xb38   : > { %3288 = vmatprep.mubr.bf16.mxu1 %v5137_v2 }
 0xbc2   : > { %v3048_v24 = vpop.f32.mrb[36].mxu1 }
 0xbc3   : > { %v3050_v36 = vpop.f32.mrb[37].mxu1 }
 0xbc4   : > { %v3052_v37 = vpop.f32.mrb[38].mxu1 }
 0xbc5   : > { %v3053_v38 = vpop.f32.mrb[39].mxu1  ;;  %v4856_v37 = vld [vmem:[#allocation5 + $0x384] ss:$8 sps:$4 sm:$0xff]  }
 0xbc6   : > { %v4857_v38 = vld [vmem:[#allocation5 + $0x380] ss:$8 sps:$4 sm:$0xff]  }
 0xbca   : > { %v3098_v42 = vpop.f32.mrb[40].mxu1 }
 0xbcb   : > { %v5577_v39 = vadd.f32 %v3098_v42, %v3048_v24  ;;  %v3100_v44 = vpop.f32.mrb[41].mxu1  ;;  %v4854_v24 = vld [vmem:[#allocation5 + $0x374] ss:$8 sps:$4 sm:$0xff]  }
 0xbcc   : > { %v5579_v40 = vadd.f32 %v3100_v44, %v3050_v36  ;;  %v3102_v41 = vpop.f32.mrb[42].mxu1  ;;  %v4855_v36 = vld [vmem:[#allocation5 + $0x370] ss:$8 sps:$4 sm:$0xff]   ;;  %v4858_v42 = vld [vmem:[#allocation5 + $0x394] ss:$8 sps:$4 sm:$0xff]  }
 0xbcd   : > { %v3103_v43 = vpop.f32.mrb[43].mxu1  ;;  %v4859_v44 = vld [vmem:[#allocation5 + $0x390] ss:$8 sps:$4 sm:$0xff]   ;;  %v4860_v41 = vld [vmem:[#allocation5 + $0x3a4] ss:$8 sps:$4 sm:$0xff]  }
 0xbce   : > { %v4861_v43 = vld [vmem:[#allocation5 + $0x3a0] ss:$8 sps:$4 sm:$0xff]  }
 0xc0a   : > { %v3139_v45 = vpop.f32.mrb[44].mxu1 }
 0xc0b   : > { %v3146_v46 = vpack.c.bf16 %v3139_v45, %v3139_v45  ;;  %v3141_v48 = vpop.f32.mrb[45].mxu1  ;;  %v4862_v45 = vld [vmem:[#allocation5 + $0x3b4] ss:$8 sps:$4 sm:$0xff]  }
 0xc0c   : > { %v3147_v50 = vpack.c.bf16 %v3141_v48, %v3141_v48  ;;  %v3143_v51 = vpop.f32.mrb[46].mxu1  ;;  %v4864_v48 = vld [vmem:[#allocation5 + $0x3c4] ss:$8 sps:$4 sm:$0xff]  }
 0xc0d   : > { %v3154_v52 = vsel %vm3007_vm2, %v3146_v46, 0  ;;  %v3144_v28 = vpop.f32.mrb[47].mxu1  ;;  %v4863_v46 = vld [vmem:[#allocation5 + $0x3b0] ss:$8 sps:$4 sm:$0xff]   ;;  %v4866_v51 = vld [vmem:[#allocation5 + $0x3d4] ss:$8 sps:$4 sm:$0xff]  }
 0xc0e   : > { %4223 = vmatprep.subr.msk.bf16.mxu0 %vm3007_vm2, %v3147_v50  ;;  %v4865_v50 = vld [vmem:[#allocation5 + $0x3c0] ss:$8 sps:$4 sm:$0xff]   ;;  %v4868_v28 = vld [vmem:[#allocation5 + $0x3e4] ss:$8 sps:$4 sm:$0xff]  }
 0xc0f   : > { %3160 = vmatpush1.bf16.msra.mxu0 %v3154_v52  ;;  %v4867_v52 = vld [vmem:[#allocation5 + $0x3d0] ss:$8 sps:$4 sm:$0xff]  }
 0xc10   : > { %3202 = vmatprep.subr.bf16.mxu0 %v4840_v54  ;;  %v4870_v54 = vld [vmem:[#allocation5 + $0x3f4] ss:$8 sps:$4 sm:$0xff]  }
 0xc12   : > { %4224 = vmatmul.mubr.msk.bf16.vlgmr.msra.gmra.mrb[44].mxu0 %vm3003_vm3, %v4222_v30  ;;  %v4869_v30 = vld [vmem:[#allocation5 + $0x3e0] ss:$8 sps:$4 sm:$0xff]  }
 0xc13   : > { %3203 = vmatpush1.bf16.msra.mxu0 %v4841_v55  ;;  %3234 = vmatprep.mubr.bf16.mxu0 %v5551_v53  ;;  %v4871_v55 = vld [vmem:[#allocation5 + $0x3f0] ss:$8 sps:$4 sm:$0xff]  }
 0xc14   : > { %3204 = vmatprep.subr.bf16.mxu0 %v4842_v56 }
 0xc17   : > { %3205 = vmatpush1.bf16.msra.mxu0 %v4843_v57 }
 0xc18   : > { %3206 = vmatprep.subr.bf16.mxu0 %v4844_v58 }
 0xc1b   : > { %3207 = vmatpush1.bf16.msra.mxu0 %v4845_v25 }
 0xc1c   : > { %3208 = vmatprep.subr.bf16.mxu0 %v4846_v26 }
 0xc1f   : > { %3209 = vmatpush1.bf16.msra.mxu0 %v4847_v27 }
 0xc20   : > { %3210 = vmatprep.subr.bf16.mxu0 %v4848_v29 }
 0xc23   : > { %3211 = vmatpush1.bf16.msra.mxu0 %v4849_v31 }
 0xc24   : > { %3212 = vmatprep.subr.bf16.mxu0 %v4850_v32 }
 0xc27   : > { %3213 = vmatpush1.bf16.msra.mxu0 %v4851_v33 }
 0xc28   : > { %3214 = vmatprep.subr.bf16.mxu0 %v4852_v34 }
 0xc2b   : > { %3215 = vmatpush1.bf16.msra.mxu0 %v4853_v35 }
 0xc2c   : > { %3216 = vmatprep.subr.bf16.mxu0 %v4854_v24 }
 0xc2f   : > { %3217 = vmatpush1.bf16.msra.mxu0 %v4855_v36  ;;  %v4872_v36 = vld [vmem:[#allocation5 + $0x404] ss:$8 sps:$4 sm:$0xff]  }
 0xc30   : > { %3218 = vmatprep.subr.bf16.mxu0 %v4856_v37  ;;  %v4874_v37 = vld [vmem:[#allocation5 + $0x414] ss:$8 sps:$4 sm:$0xff]  }
 0xc33   : > { %3219 = vmatpush1.bf16.msra.mxu0 %v4857_v38  ;;  %v4875_v38 = vld [vmem:[#allocation5 + $0x410] ss:$8 sps:$4 sm:$0xff]  }
 0xc34   : > { %3220 = vmatprep.subr.bf16.mxu0 %v4858_v42  ;;  %v4876_v42 = vld [vmem:[#allocation5 + $0x424] ss:$8 sps:$4 sm:$0xff]  }
 0xc37   : > { %3221 = vmatpush1.bf16.msra.mxu0 %v4859_v44  ;;  %v4877_v44 = vld [vmem:[#allocation5 + $0x420] ss:$8 sps:$4 sm:$0xff]  }
 0xc38   : > { %3222 = vmatprep.subr.bf16.mxu0 %v4860_v41  ;;  %v4878_v41 = vld [vmem:[#allocation5 + $0x434] ss:$8 sps:$4 sm:$0xff]  }
 0xc3b   : > { %3223 = vmatpush1.bf16.msra.mxu0 %v4861_v43  ;;  %v4879_v43 = vld [vmem:[#allocation5 + $0x430] ss:$8 sps:$4 sm:$0xff]  }
 0xc3c   : > { %3224 = vmatprep.subr.bf16.mxu0 %v4862_v45  ;;  %v4880_v45 = vld [vmem:[#allocation5 + $0x444] ss:$8 sps:$4 sm:$0xff]  }
 0xc3f   : > { %3225 = vmatpush1.bf16.msra.mxu0 %v4863_v46  ;;  %v4881_v46 = vld [vmem:[#allocation5 + $0x440] ss:$8 sps:$4 sm:$0xff]  }
 0xc40   : > { %3226 = vmatprep.subr.bf16.mxu0 %v4864_v48  ;;  %v4882_v48 = vld [vmem:[#allocation5 + $0x454] ss:$8 sps:$4 sm:$0xff]  }
 0xc43   : > { %3227 = vmatpush1.bf16.msra.mxu0 %v4865_v50  ;;  %v4883_v50 = vld [vmem:[#allocation5 + $0x450] ss:$8 sps:$4 sm:$0xff]  }
 0xc44   : > { %3228 = vmatprep.subr.bf16.mxu0 %v4866_v51  ;;  %v4884_v51 = vld [vmem:[#allocation5 + $0x464] ss:$8 sps:$4 sm:$0xff]  }
 0xc47   : > { %3229 = vmatpush1.bf16.msra.mxu0 %v4867_v52  ;;  %v4885_v52 = vld [vmem:[#allocation5 + $0x460] ss:$8 sps:$4 sm:$0xff]  }
 0xc48   : > { %3230 = vmatprep.subr.bf16.mxu0 %v4868_v28  ;;  %v4886_v28 = vld [vmem:[#allocation5 + $0x474] ss:$8 sps:$4 sm:$0xff]  }
 0xc4b   : > { %3231 = vmatpush1.bf16.msra.mxu0 %v4869_v30  ;;  %v4887_v30 = vld [vmem:[#allocation5 + $0x470] ss:$8 sps:$4 sm:$0xff]  }
 0xc4c   : > { %3232 = vmatprep.subr.bf16.mxu0 %v4870_v54  ;;  %v4888_v54 = vld [vmem:[#allocation5 + $0x484] ss:$8 sps:$4 sm:$0xff]  }
 0xc4f   : > { %3233 = vmatpush1.bf16.msra.mxu0 %v4871_v55  ;;  %v4889_v55 = vld [vmem:[#allocation5 + $0x480] ss:$8 sps:$4 sm:$0xff]  }
 0xc52   : > { %3235 = vmatmul.mubr.bf16.vlgmr.msra.gmra.mrb[48].mxu0 %v5553_v47 }
 0xc53   : > { %3385 = vmatprep.mubr.bf16.mxu0 %v5137_v2 }
 0xce5   : > { %v3193_v56 = vpop.f32.mrb[44].mxu0 }
 0xce6   : > { %v5591_v57 = vadd.f32 %v3193_v56, %v5577_v39  ;;  %v3195_v58 = vpop.f32.mrb[45].mxu0  ;;  %v4225_v39 = vld [vmem:[%s5747_s3 + $0xc] sm:$0xf]  ;;  %v4890_v56 = vld [vmem:[#allocation5 + $0x494] ss:$8 sps:$4 sm:$0xff]  }
 0xce7   : > { %v5594_v25 = vadd.f32 %v3195_v58, %v5579_v40  ;;  %v3197_v26 = vpop.f32.mrb[46].mxu0  ;;  %v4873_v40 = vld [vmem:[#allocation5 + $0x400] ss:$8 sps:$4 sm:$0xff]   ;;  %v4891_v58 = vld [vmem:[#allocation5 + $0x490] ss:$8 sps:$4 sm:$0xff]  }
 0xce8   : > { %v3198_v27 = vpop.f32.mrb[47].mxu0  ;;  %v4892_v26 = vld [vmem:[#allocation5 + $0x4a4] ss:$8 sps:$4 sm:$0xff]  }
 0xce9   : > { %v4893_v27 = vld [vmem:[#allocation5 + $0x4a0] ss:$8 sps:$4 sm:$0xff]  }
 0xd25   : > { %v3236_v29 = vpop.f32.mrb[48].mxu0 }
 0xd26   : > { %v3243_v31 = vpack.c.bf16 %v3236_v29, %v3236_v29  ;;  %v3238_v32 = vpop.f32.mrb[49].mxu0  ;;  %v4894_v29 = vld [vmem:[#allocation5 + $0x4b4] ss:$8 sps:$4 sm:$0xff]  }
 0xd27   : > { %v3244_v33 = vpack.c.bf16 %v3238_v32, %v3238_v32  ;;  %v3240_v34 = vpop.f32.mrb[50].mxu0  ;;  %v4896_v32 = vld [vmem:[#allocation5 + $0x4c4] ss:$8 sps:$4 sm:$0xff]  }
 0xd28   : > { %v3251_v35 = vsel %vm3007_vm2, %v3243_v31, 0  ;;  %v3241_v24 = vpop.f32.mrb[51].mxu0  ;;  %v4895_v31 = vld [vmem:[#allocation5 + $0x4b0] ss:$8 sps:$4 sm:$0xff]   ;;  %v4898_v34 = vld [vmem:[#allocation5 + $0x4d4] ss:$8 sps:$4 sm:$0xff]  }
 0xd29   : > { %4226 = vmatprep.subr.msk.bf16.mxu1 %vm3007_vm2, %v3244_v33  ;;  %v4897_v33 = vld [vmem:[#allocation5 + $0x4c0] ss:$8 sps:$4 sm:$0xff]   ;;  %v4900_v24 = vld [vmem:[#allocation5 + $0x4e4] ss:$8 sps:$4 sm:$0xff]  }
 0xd2a   : > { %3257 = vmatpush1.bf16.msra.mxu1 %v3251_v35  ;;  %v4899_v35 = vld [vmem:[#allocation5 + $0x4d0] ss:$8 sps:$4 sm:$0xff]  }
 0xd2b   : > { %3299 = vmatprep.subr.bf16.mxu1 %v4872_v36  ;;  %v4902_v36 = vld [vmem:[#allocation5 + $0x4f4] ss:$8 sps:$4 sm:$0xff]  }
 0xd2d   : > { %4227 = vmatmul.mubr.msk.bf16.vlgmr.msra.gmra.mrb[48].mxu1 %vm3003_vm3, %v4225_v39  ;;  %v4901_v39 = vld [vmem:[#allocation5 + $0x4e0] ss:$8 sps:$4 sm:$0xff]  }
 0xd2e   : > { %3300 = vmatpush1.bf16.msra.mxu1 %v4873_v40  ;;  %3331 = vmatprep.mubr.bf16.mxu1 %v5551_v53  ;;  %v4903_v40 = vld [vmem:[#allocation5 + $0x4f0] ss:$8 sps:$4 sm:$0xff]  }
 0xd2f   : > { %3301 = vmatprep.subr.bf16.mxu1 %v4874_v37 }
 0xd32   : > { %3302 = vmatpush1.bf16.msra.mxu1 %v4875_v38 }
 0xd33   : > { %3303 = vmatprep.subr.bf16.mxu1 %v4876_v42 }
 0xd36   : > { %3304 = vmatpush1.bf16.msra.mxu1 %v4877_v44 }
 0xd37   : > { %3305 = vmatprep.subr.bf16.mxu1 %v4878_v41 }
 0xd3a   : > { %3306 = vmatpush1.bf16.msra.mxu1 %v4879_v43 }
 0xd3b   : > { %3307 = vmatprep.subr.bf16.mxu1 %v4880_v45 }
 0xd3e   : > { %3308 = vmatpush1.bf16.msra.mxu1 %v4881_v46 }
 0xd3f   : > { %3309 = vmatprep.subr.bf16.mxu1 %v4882_v48 }
 0xd42   : > { %3310 = vmatpush1.bf16.msra.mxu1 %v4883_v50 }
 0xd43   : > { %3311 = vmatprep.subr.bf16.mxu1 %v4884_v51 }
 0xd46   : > { %3312 = vmatpush1.bf16.msra.mxu1 %v4885_v52 }
 0xd47   : > { %3313 = vmatprep.subr.bf16.mxu1 %v4886_v28 }
 0xd4a   : > { %3314 = vmatpush1.bf16.msra.mxu1 %v4887_v30  ;;  %v4904_v30 = vld [vmem:[#allocation5 + $0x504] ss:$8 sps:$4 sm:$0xff]  }
 0xd4b   : > { %3315 = vmatprep.subr.bf16.mxu1 %v4888_v54  ;;  %v4906_v54 = vld [vmem:[#allocation5 + $0x514] ss:$8 sps:$4 sm:$0xff]  }
 0xd4e   : > { %3316 = vmatpush1.bf16.msra.mxu1 %v4889_v55  ;;  %v4907_v55 = vld [vmem:[#allocation5 + $0x510] ss:$8 sps:$4 sm:$0xff]  }
 0xd4f   : > { %3317 = vmatprep.subr.bf16.mxu1 %v4890_v56  ;;  %v4908_v56 = vld [vmem:[#allocation5 + $0x524] ss:$8 sps:$4 sm:$0xff]  }
 0xd52   : > { %3318 = vmatpush1.bf16.msra.mxu1 %v4891_v58  ;;  %v4909_v58 = vld [vmem:[#allocation5 + $0x520] ss:$8 sps:$4 sm:$0xff]  }
 0xd53   : > { %3319 = vmatprep.subr.bf16.mxu1 %v4892_v26  ;;  %v4910_v26 = vld [vmem:[#allocation5 + $0x534] ss:$8 sps:$4 sm:$0xff]  }
 0xd56   : > { %3320 = vmatpush1.bf16.msra.mxu1 %v4893_v27  ;;  %v4911_v27 = vld [vmem:[#allocation5 + $0x530] ss:$8 sps:$4 sm:$0xff]  }
 0xd57   : > { %3321 = vmatprep.subr.bf16.mxu1 %v4894_v29  ;;  %v4912_v29 = vld [vmem:[#allocation5 + $0x544] ss:$8 sps:$4 sm:$0xff]  }
 0xd5a   : > { %3322 = vmatpush1.bf16.msra.mxu1 %v4895_v31  ;;  %v4913_v31 = vld [vmem:[#allocation5 + $0x540] ss:$8 sps:$4 sm:$0xff]  }
 0xd5b   : > { %3323 = vmatprep.subr.bf16.mxu1 %v4896_v32  ;;  %v4914_v32 = vld [vmem:[#allocation5 + $0x554] ss:$8 sps:$4 sm:$0xff]  }
 0xd5e   : > { %3324 = vmatpush1.bf16.msra.mxu1 %v4897_v33  ;;  %v4915_v33 = vld [vmem:[#allocation5 + $0x550] ss:$8 sps:$4 sm:$0xff]  }
 0xd5f   : > { %3325 = vmatprep.subr.bf16.mxu1 %v4898_v34  ;;  %v4916_v34 = vld [vmem:[#allocation5 + $0x564] ss:$8 sps:$4 sm:$0xff]  }
 0xd62   : > { %3326 = vmatpush1.bf16.msra.mxu1 %v4899_v35  ;;  %v4917_v35 = vld [vmem:[#allocation5 + $0x560] ss:$8 sps:$4 sm:$0xff]  }
 0xd63   : > { %3327 = vmatprep.subr.bf16.mxu1 %v4900_v24  ;;  %v4918_v24 = vld [vmem:[#allocation5 + $0x574] ss:$8 sps:$4 sm:$0xff]  }
 0xd66   : > { %3328 = vmatpush1.bf16.msra.mxu1 %v4901_v39  ;;  %v4919_v39 = vld [vmem:[#allocation5 + $0x570] ss:$8 sps:$4 sm:$0xff]  }
 0xd67   : > { %3329 = vmatprep.subr.bf16.mxu1 %v4902_v36  ;;  %v4920_v36 = vld [vmem:[#allocation5 + $0x584] ss:$8 sps:$4 sm:$0xff]  }
 0xd6a   : > { %3330 = vmatpush1.bf16.msra.mxu1 %v4903_v40  ;;  %v4921_v40 = vld [vmem:[#allocation5 + $0x580] ss:$8 sps:$4 sm:$0xff]  }
 0xd6d   : > { %3332 = vmatmul.mubr.bf16.vlgmr.msra.gmra.mrb[52].mxu1 %v5553_v47 }
 0xd6e   : > { %3482 = vmatprep.mubr.bf16.mxu1 %v5137_v2 }
 0xe00   : > { %v3290_v37 = vpop.f32.mrb[48].mxu1 }
 0xe01   : > { %v5606_v38 = vadd.f32 %v3290_v37, %v5591_v57  ;;  %v3292_v42 = vpop.f32.mrb[49].mxu1  ;;  %v4228_v57 = vld [vmem:[%s5747_s3 + $0x10] sm:$0xf]  ;;  %v4922_v37 = vld [vmem:[#allocation5 + $0x594] ss:$8 sps:$4 sm:$0xff]  }
 0xe02   : > { %v5609_v44 = vadd.f32 %v3292_v42, %v5594_v25  ;;  %v3294_v41 = vpop.f32.mrb[50].mxu1  ;;  %v4905_v25 = vld [vmem:[#allocation5 + $0x500] ss:$8 sps:$4 sm:$0xff]   ;;  %v4923_v42 = vld [vmem:[#allocation5 + $0x590] ss:$8 sps:$4 sm:$0xff]  }
 0xe03   : > { %v3295_v43 = vpop.f32.mrb[51].mxu1  ;;  %v4924_v41 = vld [vmem:[#allocation5 + $0x5a4] ss:$8 sps:$4 sm:$0xff]  }
 0xe04   : > { %v4925_v43 = vld [vmem:[#allocation5 + $0x5a0] ss:$8 sps:$4 sm:$0xff]  }
 0xe40   : > { %v3333_v45 = vpop.f32.mrb[52].mxu1 }
 0xe41   : > { %v3340_v46 = vpack.c.bf16 %v3333_v45, %v3333_v45  ;;  %v3335_v48 = vpop.f32.mrb[53].mxu1  ;;  %v4926_v45 = vld [vmem:[#allocation5 + $0x5b4] ss:$8 sps:$4 sm:$0xff]  }
 0xe42   : > { %v3341_v50 = vpack.c.bf16 %v3335_v48, %v3335_v48  ;;  %v3337_v51 = vpop.f32.mrb[54].mxu1  ;;  %v4928_v48 = vld [vmem:[#allocation5 + $0x5c4] ss:$8 sps:$4 sm:$0xff]  }
 0xe43   : > { %v3348_v52 = vsel %vm3007_vm2, %v3340_v46, 0  ;;  %v3338_v28 = vpop.f32.mrb[55].mxu1  ;;  %v4927_v46 = vld [vmem:[#allocation5 + $0x5b0] ss:$8 sps:$4 sm:$0xff]   ;;  %v4930_v51 = vld [vmem:[#allocation5 + $0x5d4] ss:$8 sps:$4 sm:$0xff]  }
 0xe44   : > { %4229 = vmatprep.subr.msk.bf16.mxu0 %vm3007_vm2, %v3341_v50  ;;  %v4929_v50 = vld [vmem:[#allocation5 + $0x5c0] ss:$8 sps:$4 sm:$0xff]   ;;  %v4932_v28 = vld [vmem:[#allocation5 + $0x5e4] ss:$8 sps:$4 sm:$0xff]  }
 0xe45   : > { %3354 = vmatpush1.bf16.msra.mxu0 %v3348_v52  ;;  %v4931_v52 = vld [vmem:[#allocation5 + $0x5d0] ss:$8 sps:$4 sm:$0xff]  }
 0xe46   : > { %3396 = vmatprep.subr.bf16.mxu0 %v4904_v30  ;;  %v4934_v30 = vld [vmem:[#allocation5 + $0x5f4] ss:$8 sps:$4 sm:$0xff]  }
 0xe48   : > { %4230 = vmatmul.mubr.msk.bf16.vlgmr.msra.gmra.mrb[52].mxu0 %vm3003_vm3, %v4228_v57  ;;  %v4933_v57 = vld [vmem:[#allocation5 + $0x5e0] ss:$8 sps:$4 sm:$0xff]  }
 0xe49   : > { %3397 = vmatpush1.bf16.msra.mxu0 %v4905_v25  ;;  %3428 = vmatprep.mubr.bf16.mxu0 %v5551_v53  ;;  %v4935_v25 = vld [vmem:[#allocation5 + $0x5f0] ss:$8 sps:$4 sm:$0xff]  }
 0xe4a   : > { %3398 = vmatprep.subr.bf16.mxu0 %v4906_v54 }
 0xe4d   : > { %3399 = vmatpush1.bf16.msra.mxu0 %v4907_v55 }
 0xe4e   : > { %3400 = vmatprep.subr.bf16.mxu0 %v4908_v56 }
 0xe51   : > { %3401 = vmatpush1.bf16.msra.mxu0 %v4909_v58 }
 0xe52   : > { %3402 = vmatprep.subr.bf16.mxu0 %v4910_v26 }
 0xe55   : > { %3403 = vmatpush1.bf16.msra.mxu0 %v4911_v27 }
 0xe56   : > { %3404 = vmatprep.subr.bf16.mxu0 %v4912_v29 }
 0xe59   : > { %3405 = vmatpush1.bf16.msra.mxu0 %v4913_v31 }
 0xe5a   : > { %3406 = vmatprep.subr.bf16.mxu0 %v4914_v32 }
 0xe5d   : > { %3407 = vmatpush1.bf16.msra.mxu0 %v4915_v33 }
 0xe5e   : > { %3408 = vmatprep.subr.bf16.mxu0 %v4916_v34 }
 0xe61   : > { %3409 = vmatpush1.bf16.msra.mxu0 %v4917_v35 }
 0xe62   : > { %3410 = vmatprep.subr.bf16.mxu0 %v4918_v24 }
 0xe65   : > { %3411 = vmatpush1.bf16.msra.mxu0 %v4919_v39  ;;  %v4936_v39 = vld [vmem:[#allocation5 + $0x604] ss:$8 sps:$4 sm:$0xff]  }
 0xe66   : > { %3412 = vmatprep.subr.bf16.mxu0 %v4920_v36  ;;  %v4938_v36 = vld [vmem:[#allocation5 + $0x614] ss:$8 sps:$4 sm:$0xff]  }
 0xe69   : > { %3413 = vmatpush1.bf16.msra.mxu0 %v4921_v40  ;;  %v4939_v40 = vld [vmem:[#allocation5 + $0x610] ss:$8 sps:$4 sm:$0xff]  }
 0xe6a   : > { %3414 = vmatprep.subr.bf16.mxu0 %v4922_v37  ;;  %v4940_v37 = vld [vmem:[#allocation5 + $0x624] ss:$8 sps:$4 sm:$0xff]  }
 0xe6d   : > { %3415 = vmatpush1.bf16.msra.mxu0 %v4923_v42  ;;  %v4941_v42 = vld [vmem:[#allocation5 + $0x620] ss:$8 sps:$4 sm:$0xff]  }
 0xe6e   : > { %3416 = vmatprep.subr.bf16.mxu0 %v4924_v41  ;;  %v4942_v41 = vld [vmem:[#allocation5 + $0x634] ss:$8 sps:$4 sm:$0xff]  }
 0xe71   : > { %3417 = vmatpush1.bf16.msra.mxu0 %v4925_v43  ;;  %v4943_v43 = vld [vmem:[#allocation5 + $0x630] ss:$8 sps:$4 sm:$0xff]  }
 0xe72   : > { %3418 = vmatprep.subr.bf16.mxu0 %v4926_v45  ;;  %v4944_v45 = vld [vmem:[#allocation5 + $0x644] ss:$8 sps:$4 sm:$0xff]  }
 0xe75   : > { %3419 = vmatpush1.bf16.msra.mxu0 %v4927_v46  ;;  %v4945_v46 = vld [vmem:[#allocation5 + $0x640] ss:$8 sps:$4 sm:$0xff]  }
 0xe76   : > { %3420 = vmatprep.subr.bf16.mxu0 %v4928_v48  ;;  %v4946_v48 = vld [vmem:[#allocation5 + $0x654] ss:$8 sps:$4 sm:$0xff]  }
 0xe79   : > { %3421 = vmatpush1.bf16.msra.mxu0 %v4929_v50  ;;  %v4947_v50 = vld [vmem:[#allocation5 + $0x650] ss:$8 sps:$4 sm:$0xff]  }
 0xe7a   : > { %3422 = vmatprep.subr.bf16.mxu0 %v4930_v51  ;;  %v4948_v51 = vld [vmem:[#allocation5 + $0x664] ss:$8 sps:$4 sm:$0xff]  }
 0xe7d   : > { %3423 = vmatpush1.bf16.msra.mxu0 %v4931_v52  ;;  %v4949_v52 = vld [vmem:[#allocation5 + $0x660] ss:$8 sps:$4 sm:$0xff]  }
 0xe7e   : > { %3424 = vmatprep.subr.bf16.mxu0 %v4932_v28  ;;  %v4950_v28 = vld [vmem:[#allocation5 + $0x674] ss:$8 sps:$4 sm:$0xff]  }
 0xe81   : > { %3425 = vmatpush1.bf16.msra.mxu0 %v4933_v57  ;;  %v4951_v57 = vld [vmem:[#allocation5 + $0x670] ss:$8 sps:$4 sm:$0xff]  }
 0xe82   : > { %3426 = vmatprep.subr.bf16.mxu0 %v4934_v30  ;;  %v4952_v30 = vld [vmem:[#allocation5 + $0x684] ss:$8 sps:$4 sm:$0xff]  }
 0xe85   : > { %3427 = vmatpush1.bf16.msra.mxu0 %v4935_v25  ;;  %v4953_v25 = vld [vmem:[#allocation5 + $0x680] ss:$8 sps:$4 sm:$0xff]  }
 0xe88   : > { %3429 = vmatmul.mubr.bf16.vlgmr.msra.gmra.mrb[56].mxu0 %v5553_v47 }
 0xe89   : > { %3579 = vmatprep.mubr.bf16.mxu0 %v5137_v2 }
 0xf1b   : > { %v3387_v54 = vpop.f32.mrb[52].mxu0 }
 0xf1c   : > { %v5621_v55 = vadd.f32 %v3387_v54, %v5606_v38  ;;  %v3389_v56 = vpop.f32.mrb[53].mxu0  ;;  %v4231_v38 = vld [vmem:[%s5747_s3 + $0x14] sm:$0xf]  ;;  %v4954_v54 = vld [vmem:[#allocation5 + $0x694] ss:$8 sps:$4 sm:$0xff]  }
 0xf1d   : > { %v5624_v58 = vadd.f32 %v3389_v56, %v5609_v44  ;;  %v3391_v26 = vpop.f32.mrb[54].mxu0  ;;  %v4937_v44 = vld [vmem:[#allocation5 + $0x600] ss:$8 sps:$4 sm:$0xff]   ;;  %v4955_v56 = vld [vmem:[#allocation5 + $0x690] ss:$8 sps:$4 sm:$0xff]  }
 0xf1e   : > { %v3392_v27 = vpop.f32.mrb[55].mxu0  ;;  %v4956_v26 = vld [vmem:[#allocation5 + $0x6a4] ss:$8 sps:$4 sm:$0xff]  }
 0xf1f   : > { %v4957_v27 = vld [vmem:[#allocation5 + $0x6a0] ss:$8 sps:$4 sm:$0xff]  }
 0xf5b   : > { %v3430_v29 = vpop.f32.mrb[56].mxu0 }
 0xf5c   : > { %v3437_v31 = vpack.c.bf16 %v3430_v29, %v3430_v29  ;;  %v3432_v32 = vpop.f32.mrb[57].mxu0  ;;  %v4958_v29 = vld [vmem:[#allocation5 + $0x6b4] ss:$8 sps:$4 sm:$0xff]  }
 0xf5d   : > { %v3438_v33 = vpack.c.bf16 %v3432_v32, %v3432_v32  ;;  %v3434_v34 = vpop.f32.mrb[58].mxu0  ;;  %v4960_v32 = vld [vmem:[#allocation5 + $0x6c4] ss:$8 sps:$4 sm:$0xff]  }
 0xf5e   : > { %v3445_v35 = vsel %vm3007_vm2, %v3437_v31, 0  ;;  %v3435_v24 = vpop.f32.mrb[59].mxu0  ;;  %v4959_v31 = vld [vmem:[#allocation5 + $0x6b0] ss:$8 sps:$4 sm:$0xff]   ;;  %v4962_v34 = vld [vmem:[#allocation5 + $0x6d4] ss:$8 sps:$4 sm:$0xff]  }
 0xf5f   : > { %4232 = vmatprep.subr.msk.bf16.mxu1 %vm3007_vm2, %v3438_v33  ;;  %v4961_v33 = vld [vmem:[#allocation5 + $0x6c0] ss:$8 sps:$4 sm:$0xff]   ;;  %v4964_v24 = vld [vmem:[#allocation5 + $0x6e4] ss:$8 sps:$4 sm:$0xff]  }
 0xf60   : > { %3451 = vmatpush1.bf16.msra.mxu1 %v3445_v35  ;;  %v4963_v35 = vld [vmem:[#allocation5 + $0x6d0] ss:$8 sps:$4 sm:$0xff]  }
 0xf61   : > { %3493 = vmatprep.subr.bf16.mxu1 %v4936_v39  ;;  %v4966_v39 = vld [vmem:[#allocation5 + $0x6f4] ss:$8 sps:$4 sm:$0xff]  }
 0xf63   : > { %4233 = vmatmul.mubr.msk.bf16.vlgmr.msra.gmra.mrb[56].mxu1 %vm3003_vm3, %v4231_v38  ;;  %v4965_v38 = vld [vmem:[#allocation5 + $0x6e0] ss:$8 sps:$4 sm:$0xff]  }
 0xf64   : > { %3494 = vmatpush1.bf16.msra.mxu1 %v4937_v44  ;;  %3525 = vmatprep.mubr.bf16.mxu1 %v5551_v53  ;;  %v4967_v44 = vld [vmem:[#allocation5 + $0x6f0] ss:$8 sps:$4 sm:$0xff]  }
 0xf65   : > { %3495 = vmatprep.subr.bf16.mxu1 %v4938_v36 }
 0xf68   : > { %3496 = vmatpush1.bf16.msra.mxu1 %v4939_v40 }
 0xf69   : > { %3497 = vmatprep.subr.bf16.mxu1 %v4940_v37 }
 0xf6c   : > { %3498 = vmatpush1.bf16.msra.mxu1 %v4941_v42 }
 0xf6d   : > { %3499 = vmatprep.subr.bf16.mxu1 %v4942_v41 }
 0xf70   : > { %3500 = vmatpush1.bf16.msra.mxu1 %v4943_v43 }
 0xf71   : > { %3501 = vmatprep.subr.bf16.mxu1 %v4944_v45 }
 0xf74   : > { %3502 = vmatpush1.bf16.msra.mxu1 %v4945_v46 }
 0xf75   : > { %3503 = vmatprep.subr.bf16.mxu1 %v4946_v48 }
 0xf78   : > { %3504 = vmatpush1.bf16.msra.mxu1 %v4947_v50 }
 0xf79   : > { %3505 = vmatprep.subr.bf16.mxu1 %v4948_v51 }
 0xf7c   : > { %3506 = vmatpush1.bf16.msra.mxu1 %v4949_v52 }
 0xf7d   : > { %3507 = vmatprep.subr.bf16.mxu1 %v4950_v28 }
 0xf80   : > { %3508 = vmatpush1.bf16.msra.mxu1 %v4951_v57  ;;  %v4968_v57 = vld [vmem:[#allocation5 + $0x704] ss:$8 sps:$4 sm:$0xff]  }
 0xf81   : > { %3509 = vmatprep.subr.bf16.mxu1 %v4952_v30  ;;  %v4970_v30 = vld [vmem:[#allocation5 + $0x714] ss:$8 sps:$4 sm:$0xff]  }
 0xf84   : > { %3510 = vmatpush1.bf16.msra.mxu1 %v4953_v25  ;;  %v4971_v25 = vld [vmem:[#allocation5 + $0x710] ss:$8 sps:$4 sm:$0xff]  }
 0xf85   : > { %3511 = vmatprep.subr.bf16.mxu1 %v4954_v54  ;;  %v4972_v54 = vld [vmem:[#allocation5 + $0x724] ss:$8 sps:$4 sm:$0xff]  }
 0xf88   : > { %3512 = vmatpush1.bf16.msra.mxu1 %v4955_v56  ;;  %v4973_v56 = vld [vmem:[#allocation5 + $0x720] ss:$8 sps:$4 sm:$0xff]  }
 0xf89   : > { %3513 = vmatprep.subr.bf16.mxu1 %v4956_v26  ;;  %v4974_v26 = vld [vmem:[#allocation5 + $0x734] ss:$8 sps:$4 sm:$0xff]  }
 0xf8c   : > { %3514 = vmatpush1.bf16.msra.mxu1 %v4957_v27  ;;  %v4975_v27 = vld [vmem:[#allocation5 + $0x730] ss:$8 sps:$4 sm:$0xff]  }
 0xf8d   : > { %3515 = vmatprep.subr.bf16.mxu1 %v4958_v29  ;;  %v4976_v29 = vld [vmem:[#allocation5 + $0x744] ss:$8 sps:$4 sm:$0xff]  }
 0xf90   : > { %3516 = vmatpush1.bf16.msra.mxu1 %v4959_v31  ;;  %v4977_v31 = vld [vmem:[#allocation5 + $0x740] ss:$8 sps:$4 sm:$0xff]  }
 0xf91   : > { %3517 = vmatprep.subr.bf16.mxu1 %v4960_v32  ;;  %v4978_v32 = vld [vmem:[#allocation5 + $0x754] ss:$8 sps:$4 sm:$0xff]  }
 0xf94   : > { %3518 = vmatpush1.bf16.msra.mxu1 %v4961_v33  ;;  %v4979_v33 = vld [vmem:[#allocation5 + $0x750] ss:$8 sps:$4 sm:$0xff]  }
 0xf95   : > { %3519 = vmatprep.subr.bf16.mxu1 %v4962_v34  ;;  %v4980_v34 = vld [vmem:[#allocation5 + $0x764] ss:$8 sps:$4 sm:$0xff]  }
 0xf98   : > { %3520 = vmatpush1.bf16.msra.mxu1 %v4963_v35  ;;  %v4981_v35 = vld [vmem:[#allocation5 + $0x760] ss:$8 sps:$4 sm:$0xff]  }
 0xf99   : > { %3521 = vmatprep.subr.bf16.mxu1 %v4964_v24  ;;  %v4982_v24 = vld [vmem:[#allocation5 + $0x774] ss:$8 sps:$4 sm:$0xff]  }
 0xf9c   : > { %3522 = vmatpush1.bf16.msra.mxu1 %v4965_v38  ;;  %v4983_v38 = vld [vmem:[#allocation5 + $0x770] ss:$8 sps:$4 sm:$0xff]  }
 0xf9d   : > { %3523 = vmatprep.subr.bf16.mxu1 %v4966_v39  ;;  %v4984_v39 = vld [vmem:[#allocation5 + $0x784] ss:$8 sps:$4 sm:$0xff]  }
 0xfa0   : > { %3524 = vmatpush1.bf16.msra.mxu1 %v4967_v44  ;;  %v4985_v44 = vld [vmem:[#allocation5 + $0x780] ss:$8 sps:$4 sm:$0xff]  }
 0xfa3   : > { %3526 = vmatmul.mubr.bf16.vlgmr.msra.gmra.mrb[60].mxu1 %v5553_v47 }
 0xfa4   : > { %3676 = vmatprep.mubr.bf16.mxu1 %v5137_v2 }
0x1036   : > { %v3484_v36 = vpop.f32.mrb[56].mxu1 }
0x1037   : > { %v5636_v40 = vadd.f32 %v3484_v36, %v5621_v55  ;;  %v3486_v37 = vpop.f32.mrb[57].mxu1  ;;  %v4234_v55 = vld [vmem:[%s5747_s3 + $0x18] sm:$0xf]  ;;  %v4986_v36 = vld [vmem:[#allocation5 + $0x794] ss:$8 sps:$4 sm:$0xff]  }
0x1038   : > { %v5639_v42 = vadd.f32 %v3486_v37, %v5624_v58  ;;  %v3488_v41 = vpop.f32.mrb[58].mxu1  ;;  %v4969_v58 = vld [vmem:[#allocation5 + $0x700] ss:$8 sps:$4 sm:$0xff]   ;;  %v4987_v37 = vld [vmem:[#allocation5 + $0x790] ss:$8 sps:$4 sm:$0xff]  }
0x1039   : > { %v3489_v43 = vpop.f32.mrb[59].mxu1  ;;  %v4988_v41 = vld [vmem:[#allocation5 + $0x7a4] ss:$8 sps:$4 sm:$0xff]  }
0x103a   : > { %v4989_v43 = vld [vmem:[#allocation5 + $0x7a0] ss:$8 sps:$4 sm:$0xff]  }
0x1076   : > { %v3527_v45 = vpop.f32.mrb[60].mxu1 }
0x1077   : > { %v3534_v46 = vpack.c.bf16 %v3527_v45, %v3527_v45  ;;  %v3529_v48 = vpop.f32.mrb[61].mxu1  ;;  %v4990_v45 = vld [vmem:[#allocation5 + $0x7b4] ss:$8 sps:$4 sm:$0xff]  }
0x1078   : > { %v3535_v50 = vpack.c.bf16 %v3529_v48, %v3529_v48  ;;  %v3531_v51 = vpop.f32.mrb[62].mxu1  ;;  %v4992_v48 = vld [vmem:[#allocation5 + $0x7c4] ss:$8 sps:$4 sm:$0xff]  }
0x1079   : > { %v3542_v52 = vsel %vm3007_vm2, %v3534_v46, 0  ;;  %v3532_v28 = vpop.f32.mrb[63].mxu1  ;;  %v4991_v46 = vld [vmem:[#allocation5 + $0x7b0] ss:$8 sps:$4 sm:$0xff]   ;;  %v4994_v51 = vld [vmem:[#allocation5 + $0x7d4] ss:$8 sps:$4 sm:$0xff]  }
0x107a   : > { %4235 = vmatprep.subr.msk.bf16.mxu0 %vm3007_vm2, %v3535_v50  ;;  %v4993_v50 = vld [vmem:[#allocation5 + $0x7c0] ss:$8 sps:$4 sm:$0xff]   ;;  %v4996_v28 = vld [vmem:[#allocation5 + $0x7e4] ss:$8 sps:$4 sm:$0xff]  }
0x107b   : > { %3548 = vmatpush1.bf16.msra.mxu0 %v3542_v52  ;;  %v4995_v52 = vld [vmem:[#allocation5 + $0x7d0] ss:$8 sps:$4 sm:$0xff]  }
0x107c   : > { %3590 = vmatprep.subr.bf16.mxu0 %v4968_v57  ;;  %v4998_v57 = vld [vmem:[#allocation5 + $0x7f4] ss:$8 sps:$4 sm:$0xff]  }
0x107e   : > { %4236 = vmatmul.mubr.msk.bf16.vlgmr.msra.gmra.mrb[60].mxu0 %vm3003_vm3, %v4234_v55  ;;  %v4997_v55 = vld [vmem:[#allocation5 + $0x7e0] ss:$8 sps:$4 sm:$0xff]  }
0x107f   : > { %3591 = vmatpush1.bf16.msra.mxu0 %v4969_v58  ;;  %3622 = vmatprep.mubr.bf16.mxu0 %v5551_v53  ;;  %v4999_v58 = vld [vmem:[#allocation5 + $0x7f0] ss:$8 sps:$4 sm:$0xff]  }
0x1080   : > { %3592 = vmatprep.subr.bf16.mxu0 %v4970_v30 }
0x1083   : > { %3593 = vmatpush1.bf16.msra.mxu0 %v4971_v25 }
0x1084   : > { %3594 = vmatprep.subr.bf16.mxu0 %v4972_v54 }
0x1087   : > { %3595 = vmatpush1.bf16.msra.mxu0 %v4973_v56 }
0x1088   : > { %3596 = vmatprep.subr.bf16.mxu0 %v4974_v26 }
0x108b   : > { %3597 = vmatpush1.bf16.msra.mxu0 %v4975_v27 }
0x108c   : > { %3598 = vmatprep.subr.bf16.mxu0 %v4976_v29 }
0x108f   : > { %3599 = vmatpush1.bf16.msra.mxu0 %v4977_v31 }
0x1090   : > { %3600 = vmatprep.subr.bf16.mxu0 %v4978_v32 }
0x1093   : > { %3601 = vmatpush1.bf16.msra.mxu0 %v4979_v33 }
0x1094   : > { %3602 = vmatprep.subr.bf16.mxu0 %v4980_v34 }
0x1097   : > { %3603 = vmatpush1.bf16.msra.mxu0 %v4981_v35 }
0x1098   : > { %3604 = vmatprep.subr.bf16.mxu0 %v4982_v24 }
0x109b   : > { %3605 = vmatpush1.bf16.msra.mxu0 %v4983_v38  ;;  %v5002_v38 = vld [vmem:[#allocation5 + $0x814] ss:$8 sps:$4 sm:$0xff]  }
0x109c   : > { %3606 = vmatprep.subr.bf16.mxu0 %v4984_v39 }
0x109f   : > { %3607 = vmatpush1.bf16.msra.mxu0 %v4985_v44 }
0x10a0   : > { %3608 = vmatprep.subr.bf16.mxu0 %v4986_v36 }
0x10a3   : > { %3609 = vmatpush1.bf16.msra.mxu0 %v4987_v37 }
0x10a4   : > { %3610 = vmatprep.subr.bf16.mxu0 %v4988_v41 }
0x10a7   : > { %3611 = vmatpush1.bf16.msra.mxu0 %v4989_v43 }
0x10a8   : > { %3612 = vmatprep.subr.bf16.mxu0 %v4990_v45 }
0x10ab   : > { %3613 = vmatpush1.bf16.msra.mxu0 %v4991_v46 }
0x10ac   : > { %3614 = vmatprep.subr.bf16.mxu0 %v4992_v48 }
0x10af   : > { %3615 = vmatpush1.bf16.msra.mxu0 %v4993_v50 }
0x10b0   : > { %3616 = vmatprep.subr.bf16.mxu0 %v4994_v51 }
0x10b3   : > { %3617 = vmatpush1.bf16.msra.mxu0 %v4995_v52 }
0x10b4   : > { %3618 = vmatprep.subr.bf16.mxu0 %v4996_v28 }
0x10b7   : > { %3619 = vmatpush1.bf16.msra.mxu0 %v4997_v55 }
0x10b8   : > { %3620 = vmatprep.subr.bf16.mxu0 %v4998_v57 }
0x10bb   : > { %3621 = vmatpush1.bf16.msra.mxu0 %v4999_v58 }
0x10be   : > { %3623 = vmatmul.mubr.bf16.vlgmr.msra.gmra.mrb[64].mxu0 %v5553_v47 }
0x10bf   : > { %3773 = vmatprep.mubr.bf16.mxu0 %v5137_v2  ;;  %v4237_v2 = vld [vmem:[%s5747_s3 + $0x1c] sm:$0xf] }
0x1151   : > { %v3581_v30 = vpop.f32.mrb[60].mxu0 }
0x1152   : > { %v3588_v25 = vadd.f32 %v3581_v30, %v5636_v40  ;;  %v3583_v54 = vpop.f32.mrb[61].mxu0  ;;  %v5000_v40 = vld [vmem:[#allocation5 + $0x804] ss:$8 sps:$4 sm:$0xff]  }
0x1153   : > { %v3589_v56 = vadd.f32 %v3583_v54, %v5639_v42  ;;  %v3585_v26 = vpop.f32.mrb[62].mxu0  ;;  %v5001_v42 = vld [vmem:[#allocation5 + $0x800] ss:$8 sps:$4 sm:$0xff]  }
0x1154   : > { %v3586_v27 = vpop.f32.mrb[63].mxu0 }
0x1191   : > { %v3624_v29 = vpop.f32.mrb[64].mxu0 }
0x1192   : > { %v3631_v31 = vpack.c.bf16 %v3624_v29, %v3624_v29  ;;  %v3626_v32 = vpop.f32.mrb[65].mxu0 }
0x1193   : > { %v3632_v33 = vpack.c.bf16 %v3626_v32, %v3626_v32  ;;  %v3628_v34 = vpop.f32.mrb[66].mxu0 }
0x1194   : > { %v3639_v35 = vsel %vm3007_vm2, %v3631_v31, 0  ;;  %v3629_v24 = vpop.f32.mrb[67].mxu0 }
0x1195   : > { %4238 = vmatprep.subr.msk.bf16.mxu1 %vm3007_vm2, %v3632_v33 }
0x1196   : > { %3645 = vmatpush1.bf16.msra.mxu1 %v3639_v35 }
0x1197   : > { %3687 = vmatprep.subr.bf16.mxu1 %v5000_v40 }
0x1199   : > { %4239 = vmatmul.mubr.msk.bf16.vlgmr.msra.gmra.mrb[64].mxu1 %vm3003_vm3, %v4237_v2 }
0x119a   : > { %3688 = vmatpush1.bf16.msra.mxu1 %v5001_v42  ;;  %3719 = vmatprep.mubr.bf16.mxu1 %v5551_v53 }
0x119b   : > { %3689 = vmatprep.subr.bf16.mxu1 %v5002_v38 }
0x119e   : > { %3690 = vmatpush1.bf16.msra.mxu1 %v5442_v59 }
0x119f   : > { %3691 = vmatprep.subr.bf16.mxu1 %v5445_v60 }
0x11a2   : > { %3692 = vmatpush1.bf16.msra.mxu1 %v5448_v61 }
0x11a3   : > { %3693 = vmatprep.subr.bf16.mxu1 %v5451_v62 }
0x11a6   : > { %3694 = vmatpush1.bf16.msra.mxu1 %v5454_v63 }
0x11a7   : > { %3695 = vmatprep.subr.bf16.mxu1 %v5457_v0 }
0x11aa   : > { %3696 = vmatpush1.bf16.msra.mxu1 %v5460_v49 }
0x11ab   : > { %3697 = vmatprep.subr.bf16.mxu1 %v5463_v1 }
0x11ae   : > { %3698 = vmatpush1.bf16.msra.mxu1 %v5466_v3 }
0x11af   : > { %3699 = vmatprep.subr.bf16.mxu1 %v5469_v4 }
0x11b2   : > { %3700 = vmatpush1.bf16.msra.mxu1 %v5472_v5 }
0x11b3   : > { %3701 = vmatprep.subr.bf16.mxu1 %v5475_v6 }
0x11b6   : > { %3702 = vmatpush1.bf16.msra.mxu1 %v5478_v7 }
0x11b7   : > { %3703 = vmatprep.subr.bf16.mxu1 %v5481_v8  ;;  %v4240_v8 = vld [vmem:[%s5747_s3 + $0x20] sm:$0xf] }
0x11ba   : > { %3704 = vmatpush1.bf16.msra.mxu1 %v5484_v9 }
0x11bb   : > { %3705 = vmatprep.subr.bf16.mxu1 %v5487_v10 }
0x11be   : > { %3706 = vmatpush1.bf16.msra.mxu1 %v5490_v11 }
0x11bf   : > { %3707 = vmatprep.subr.bf16.mxu1 %v5493_v12  ;;  %v3788_v12 = vpop.permute.xlu0 %3787 }
0x11c2   : > { %3708 = vmatpush1.bf16.msra.mxu1 %v5496_v13 }
0x11c3   : > { %3709 = vmatprep.subr.bf16.mxu1 %v5499_v14 }
0x11c6   : > { %3710 = vmatpush1.bf16.msra.mxu1 %v5502_v15 }
0x11c7   : > { %3711 = vmatprep.subr.bf16.mxu1 %v5505_v16 }
0x11ca   : > { %3712 = vmatpush1.bf16.msra.mxu1 %v5508_v17 }
0x11cb   : > { %3713 = vmatprep.subr.bf16.mxu1 %v5511_v18 }
0x11ce   : > { %3714 = vmatpush1.bf16.msra.mxu1 %v5514_v19 }
0x11cf   : > { %3715 = vmatprep.subr.bf16.mxu1 %v5517_v20 }
0x11d2   : > { %3716 = vmatpush1.bf16.msra.mxu1 %v5520_v21 }
0x11d3   : > { %3717 = vmatprep.subr.bf16.mxu1 %v5523_v22 }
0x11d6   : > { %3718 = vmatpush1.bf16.msra.mxu1 %v5526_v23 }
0x11d9   : > { %3720 = vmatmul.mubr.bf16.vlgmr.msra.gmra.mrb[68].mxu1 %v5553_v47 }
0x126c   : > { %v3678_v59 = vpop.f32.mrb[64].mxu1 }
0x126d   : > { %v3685_v60 = vadd.f32 %v3678_v59, %v3588_v25  ;;  %v3680_v61 = vpop.f32.mrb[65].mxu1 }
0x126e   : > { %v3686_v62 = vadd.f32 %v3680_v61, %v3589_v56  ;;  %v3682_v63 = vpop.f32.mrb[66].mxu1 }
0x126f   : > { %v3683_v0 = vpop.f32.mrb[67].mxu1 }
0x12ac   : > { %v3721_v49 = vpop.f32.mrb[68].mxu1 }
0x12ad   : > { %v3728_v1 = vpack.c.bf16 %v3721_v49, %v3721_v49  ;;  %v3723_v3 = vpop.f32.mrb[69].mxu1 }
0x12ae   : > { %v3729_v4 = vpack.c.bf16 %v3723_v3, %v3723_v3  ;;  %v3725_v5 = vpop.f32.mrb[70].mxu1 }
0x12af   : > { %v3736_v6 = vsel %vm3007_vm2, %v3728_v1, 0  ;;  %v3726_v7 = vpop.f32.mrb[71].mxu1 }
0x12b0   : > { %4241 = vmatprep.subr.msk.bf16.mxu0 %vm3007_vm2, %v3729_v4 }
0x12b1   : > { %3742 = vmatpush1.bf16.msra.mxu0 %v3736_v6 }
0x12b4   : > { %4242 = vmatmul.mubr.msk.bf16.vlgmr.msra.gmra.mrb[68].mxu0 %vm3003_vm3, %v4240_v8 }
0x1387   : > { %v3775_v9 = vpop.f32.mrb[68].mxu0 }
0x1388   : > { %v3782_v10 = vadd.f32 %v3775_v9, %v3685_v60  ;;  %v3777_v11 = vpop.f32.mrb[69].mxu0 }
0x1389   : > { %v3783_v13 = vadd.f32 %v3777_v11, %v3686_v62  ;;  %v3779_v14 = vpop.f32.mrb[70].mxu0 }
0x138a   : > { %v3790_v15 = vadd.f32 %v3788_v12, %v3782_v10  ;;  %v3780_v16 = vpop.f32.mrb[71].mxu0 }
0x138b   : > { %v3791_v17 = vadd.f32 %v3788_v12, %v3783_v13 }
0x138c   : > { %v3792_v18 = vmax.f32 %v3790_v15, 0.0 }
0x138d   : > { %v3793_v19 = vmax.f32 %v3791_v17, 0.0 }
0x138e   : > { %3794 = vst [vmem:[%s282_s27] sm:$0xff] %v3792_v18 }
0x138f   : > { %3795 = vst [vmem:[%s282_s27 + $0x8] sm:$0xff] %v3793_v19 }
0x1390   : > { %5074 = shalt.err (!%p5071_p7)
}
0x1391   : > { %s5075_s26 = scalar_lea.hbm %s5700_s11, 256  ;;  %s5079_s12 = scalar_lea.hbm %s5750_s6, 512 }
0x1392   : > { %p5076_p9 = scmp.ne.s32.totalorder %s5700_s11, %s5075_s26  ;;  %p5080_p0 = scmp.lt.u32.totalorder %s5700_s11, %s5750_s6 }
0x1393   : > { %p5081_p11 = scmp.lt.u32.totalorder %s5079_s12, %s5075_s26  ;;  %p5083_p4 = scmp.lt.u32.totalorder %s5075_s26, %s5700_s11 }
0x1394   : > { %p5077_p2 = pnand %p5076_p9, %p5265_p12 }
0x1395   : > { %p5082_p1 = por %p5081_p11, %p5080_p0 }
0x1396   : > { %p5078_p5 = pneg %p5077_p2 }
0x1397   : > { %p5084_p6 = por %p5083_p4, %p5082_p1 }
0x1399   : > { %p5085_p8 = pnand %p5084_p6, %p5078_p5 }
0x139b   : > { %5088 = shalt.err (!%p5085_p8)
}
0x139c   : > { %4256 = dma.vmem_to_hbm [thread:$0]  (%p5265_p12), %s5702_s29, 256, %s5700_s11, %s3797_s20  }
0x139d PF: > { %s3823_s27 = sand.u32 1, %s5119_s21   ;;  %p5765_p10 = scmp.ne.s32.totalorder %s5755_s28, 0 }
0x139e   : > { %p5766_p13 = scmp.ge.s32.totalorder %s5131_s24, 2  ;;  %s3824_s19 = scalar_lea.sflag [#allocation4], %s3823_s27 }
0x13a0   : > { %p4267_p3 = pnand %p5766_p13, %p5765_p10 }
0x13a2   : > { %5114 = dma.done.wait (!%p4267_p3), %s3824_s19, 256  }
0x13a3   : > { %5116 = vsyncadd (!%p4267_p3), %s3824_s19, 4294967040  ;;  %p20_p7 = scmp.ge.s32.totalorder %s5230_s9, 4   ;;  %s5767_s21 = smov %s5123_s22 }
0x13a4   : > { %s5768_s22 = smov %s5127_s23  ;;  %s5769_s23 = smov %s5261_s13 }
0x13a5   : > { %s5770_s24 = smov %s5230_s9  ;;  %22 = sbr.rel (!%p20_p7) target bundleno = 6 (0x6), region = 117 }
0x13ac   :  { %3829 = vsyncpa [#allocation3], 1 }
0x13ad   :  { %3831 = vsyncpa [#allocation3 + $0x1], 1 }
0x13ae   :  { %3832 = vsyncpa [#allocation6], 1 }
0x13af   :  { %3833 = vsyncpa [#allocation4], 1 }
0x13b0   :  { %3835 = vsyncpa [#allocation4 + $0x1], 1 }

</bundles_post_ra>
